<compile_context>
chip_gen: v5e
topology: v5e:2x2
jax: 0.10.0
libtpu: 0.0.40
codegen_flags: <defaults>
</compile_context>

<pallas_src>
import numpy as np
import jax
import jax.numpy as jnp
from jax.experimental import pallas as pl
from jax.experimental.pallas import tpu as pltpu

BN_EPS = 1e-5       # nn.BatchNorm2d default eps (training mode -> batch stats)
NORM_EPS = 1e-12    # F.normalize default eps


def _make_level_kernel(B, N, Ct, Cs, CT_TILE):
    """Kernel for one pyramid level; shapes baked in as Python constants."""
    nct = Ct // CT_TILE
    inv_Ct = 1.0 / Ct
    eps2 = NORM_EPS * NORM_EPS   # 1/max(sqrt(a), eps) == rsqrt(max(a, eps^2))

    def kernel(t_ref, s_ref, w_ref, ab_ref, loss_ref, out_ref,
               at_acc, ftt_acc, fts_acc, fss_acc, mean_s_ref):
        c = pl.program_id(0)

        @pl.when(c == 0)
        def _init():
            at_acc[...] = jnp.zeros_like(at_acc)
            ftt_acc[...] = jnp.zeros_like(ftt_acc)
            fts_acc[...] = jnp.zeros_like(fts_acc)
            fss_acc[...] = jnp.zeros_like(fss_acc)
            # Hoisted once (student block is resident across the Ct grid):
            # per-channel mean over (batch, spatial) for the BN mean via linearity.
            s_all = s_ref[...].astype(jnp.float32)                        # (B, Cs, N)
            mean_s_ref[...] = jnp.mean(
                jnp.mean(s_all, axis=2, keepdims=True), axis=0)           # (Cs, 1)

        # ---------------- teacher tile (B, CT_TILE, N) ------------------------
        t = t_ref[...].astype(jnp.float32)
        tt = t * t                                                        # reused below
        at_acc[...] += jnp.sum(tt, axis=1)                                # sum_c t^2 -> (B, N)
        ft_t = jnp.mean(tt, axis=2)                                       # (B, CT_TILE)

        # -------- student projection: 1x1 conv + BN(train) + SiLU --------------
        w = w_ref[...].astype(jnp.float32)                                # (CT_TILE, Cs)
        for b in range(B):                                                # B is small & static
            out_ref[b] = jnp.dot(w, s_ref[b].astype(jnp.float32),
                                 preferred_element_type=jnp.float32)     # (CT_TILE, N)
        y = out_ref[...]                                                  # pre-BN y (f32), output
                                                                          # block doubles as scratch
        # one-pass BN stats: mu from conv linearity, var = E[y^2] - mu^2
        ey2 = jnp.mean(jnp.mean(y * y, axis=2, keepdims=True), axis=0)    # (CT_TILE, 1)
        mu = jnp.dot(w, mean_s_ref[...],
                     preferred_element_type=jnp.float32)                 # (CT_TILE, 1)
        var = jnp.maximum(ey2 - mu * mu, 0.0)                             # biased variance
        inv_std = jax.lax.rsqrt(var + BN_EPS)
        scale = ab_ref[:, 0:1] * inv_std                                  # gamma fused
        shift = ab_ref[:, 1:2] - mu * scale                               # beta fused
        y_bn = y * scale[None] + shift[None]
        sp = y_bn * jax.nn.sigmoid(y_bn)                                  # SiLU (EUP)
        out_ref[...] = sp                                                 # NCHW store, lane-dense
        ft_s = jnp.mean(sp * sp, axis=2)                                  # (B, CT_TILE)

        # per-batch Gram sums over channels, accumulated across Ct tiles
        ftt_acc[...] += jnp.sum(ft_t * ft_t, axis=1, keepdims=True)       # (B, 1)
        fts_acc[...] += jnp.sum(ft_t * ft_s, axis=1, keepdims=True)
        fss_acc[...] += jnp.sum(ft_s * ft_s, axis=1, keepdims=True)

        @pl.when(c == nct - 1)
        def _finalize():
            # ---- attention-transfer loss (per-batch Gram over the N lanes) ----
            at_t = at_acc[...] * inv_Ct                                   # (B, N)
            # NOTE: valid because the student BlockSpec is constant (full array
            # resident on every grid step).
            s_all = s_ref[...].astype(jnp.float32)
            at_s = jnp.mean(s_all * s_all, axis=1)                        # (B, N)
            a_tt = jnp.sum(at_t * at_t, axis=1, keepdims=True)            # (B, 1)
            a_ts = jnp.sum(at_t * at_s, axis=1, keepdims=True)
            a_ss = jnp.sum(at_s * at_s, axis=1, keepdims=True)
            inv_nt = jax.lax.rsqrt(jnp.maximum(a_tt, eps2))
            inv_ns = jax.lax.rsqrt(jnp.maximum(a_ss, eps2))
            at_se = (a_tt * inv_nt * inv_nt
                     - 2.0 * a_ts * inv_nt * inv_ns
                     + a_ss * inv_ns * inv_ns)                            # (B, 1)
            loss_ref[0] = jnp.sum(at_se) * (1.0 / (B * N))

            # ---- ft loss -------------------------------------------------------
            A = ftt_acc[...]
            X = fts_acc[...]
            Cm = fss_acc[...]
            inv_ft = jax.lax.rsqrt(jnp.maximum(A, eps2))
            inv_fs = jax.lax.rsqrt(jnp.maximum(Cm, eps2))
            ft_se = (A * inv_ft * inv_ft
                     - 2.0 * X * inv_ft * inv_fs
                     + Cm * inv_fs * inv_fs)                              # (B, 1)
            loss_ref[1] = jnp.sum(ft_se) * (1.0 / (B * Ct))

    return kernel


def eft_level(t_nchw, s_nchw, w, bn_ab, ct_tile=256):
    """Fused per-level EFTLoss kernel.  Returns ((atloss, ftloss), projected_s)."""
    B, Ct, H, Wd = t_nchw.shape
    Bs, Cs, Hs, Ws = s_nchw.shape
    assert (B, H, Wd) == (Bs, Hs, Ws)
    N = H * Wd
    CT_TILE = min(Ct, ct_tile)
    assert Ct % CT_TILE == 0, "Ct must be divisible by the channel tile"
    nct = Ct // CT_TILE

    # free views -- NO transposes (kernel consumes / produces native NCHW)
    t3 = t_nchw.reshape(B, Ct, N)
    s3 = s_nchw.reshape(B, Cs, N)

    kernel = _make_level_kernel(B, N, Ct, Cs, CT_TILE)

    grid_spec = pltpu.PrefetchScalarGridSpec(
        num_scalar_prefetch=0,
        grid=(nct,),
        in_specs=[
            pl.BlockSpec((B, CT_TILE, N), lambda c: (0, c, 0)),   # teacher tile
            pl.BlockSpec((B, Cs, N), lambda c: (0, 0, 0)),        # student (resident)
            pl.BlockSpec((CT_TILE, Cs), lambda c: (c, 0)),        # conv weight tile
            pl.BlockSpec((CT_TILE, 2), lambda c: (c, 0)),         # [gamma | beta]
        ],
        out_specs=(
            pl.BlockSpec(memory_space=pltpu.MemorySpace.SMEM),    # (atloss, ftloss)
            pl.BlockSpec((B, CT_TILE, N), lambda c: (0, c, 0)),   # projected student
        ),
        scratch_shapes=[
            pltpu.VMEM((B, N), jnp.float32),    # sum_c t^2 accumulator
            pltpu.VMEM((B, 1), jnp.float32),    # sum_c ft_t^2
            pltpu.VMEM((B, 1), jnp.float32),    # sum_c ft_t*ft_s
            pltpu.VMEM((B, 1), jnp.float32),    # sum_c ft_s^2
            pltpu.VMEM((Cs, 1), jnp.float32),   # hoisted per-channel student mean
        ],
    )

    flops = int(2 * B * Ct * Cs * N + 12 * B * Ct * N + 4 * B * Cs * N)
    bytes_accessed = int(4 * (2 * B * Ct * N + B * Cs * N + Ct * Cs + Ct * 2 + 2))

    losses, sproj = pl.pallas_call(
        kernel,
        out_shape=(
            jax.ShapeDtypeStruct((2,), jnp.float32),
            jax.ShapeDtypeStruct((B, Ct, N), jnp.float32),
        ),
        grid_spec=grid_spec,
        compiler_params=pltpu.CompilerParams(
            dimension_semantics=("arbitrary",),        # Ct axis carries accumulators
            vmem_limit_bytes=48 * 1024 * 1024),        # headroom < v7x 64 MiB
        cost_estimate=pl.CostEstimate(
            flops=flops, transcendentals=int(B * Ct * N),
            bytes_accessed=bytes_accessed),
    )(t3, s3, w, bn_ab)

    return losses, sproj.reshape(B, Ct, H, Wd)         # free view back to NCHW


class EFTLoss:
    """JAX/Pallas port of the PyTorch EFTLoss module (forward pass only).

    A freshly constructed nn.BatchNorm2d is in training mode, so batch statistics
    (biased variance) are used; gamma=1 / beta=0 by default.
    """

    def __init__(self, key=None):
        if key is None:
            key = jax.random.PRNGKey(0)
        self.s_t_pair = [16, 16, 32]
        self.t_s_pair = [128, 128, 256]
        self.weights = []
        self.bn_ab = []                         # per level: (Ct, 2) = [gamma | beta]
        for cs, ct in zip(self.s_t_pair, self.t_s_pair):
            key, sub = jax.random.split(key)
            bound = 1.0 / np.sqrt(cs)           # Conv2d default init (1x1 kernel)
            self.weights.append(
                jax.random.uniform(sub, (ct, cs), jnp.float32, -bound, bound))
            self.bn_ab.append(jnp.concatenate(
                [jnp.ones((ct, 1), jnp.float32),
                 jnp.zeros((ct, 1), jnp.float32)], axis=1))

    def __call__(self, t_feas, s_feas):
        atloss = jnp.zeros((1,), jnp.float32)
        ftloss = jnp.zeros((1,), jnp.float32)
        s_out = []
        for i in range(len(t_feas)):
            losses, sproj = eft_level(t_feas[i], s_feas[i],
                                      self.weights[i], self.bn_ab[i])
            atloss = atloss + losses[0]
            ftloss = ftloss + losses[1]
            s_out.append(sproj)                 # replaces s_f[i].fea in the original
        return (atloss + ftloss, jnp.concatenate([atloss, ftloss])), s_out


# ---------------------- pure-JAX reference (for checking) -------------------
def _normalize(x, eps=NORM_EPS):
    n = jnp.linalg.norm(x, axis=-1, keepdims=True)
    return x / jnp.maximum(n, eps)


def reference_forward(t_feas, s_feas, weights, bn_abs):
    atloss = jnp.zeros((1,), jnp.float32)
    ftloss = jnp.zeros((1,), jnp.float32)
    s_out = []
    for i in range(len(t_feas)):
        t, s = t_feas[i], s_feas[i]
        B = t.shape[0]
        at_t = _normalize(jnp.mean(t ** 2, axis=1).reshape(B, -1))
        at_s = _normalize(jnp.mean(s ** 2, axis=1).reshape(B, -1))
        atloss = atloss + jnp.mean((at_t - at_s) ** 2)

        w = weights[i]
        gamma = bn_abs[i][:, 0].reshape(1, -1, 1, 1)
        beta = bn_abs[i][:, 1].reshape(1, -1, 1, 1)
        y = jnp.einsum('oc,bchw->bohw', w, s)
        mu = y.mean(axis=(0, 2, 3), keepdims=True)
        var = ((y - mu) ** 2).mean(axis=(0, 2, 3), keepdims=True)
        yb = (y - mu) / jnp.sqrt(var + BN_EPS) * gamma + beta
        sp = yb * jax.nn.sigmoid(yb)

        ft_t = _normalize(jnp.mean(t ** 2, axis=(2, 3)))
        ft_s = _normalize(jnp.mean(sp ** 2, axis=(2, 3)))
        ftloss = ftloss + jnp.mean((ft_t - ft_s) ** 2)
        s_out.append(sp)
    return atloss + ftloss, jnp.concatenate([atloss, ftloss]), s_out


if __name__ == "__main__":
    key = jax.random.PRNGKey(0)
    B = 2
    spatials = [16, 16, 8]                      # per-level H = W
    model = EFTLoss(key=jax.random.PRNGKey(0))
    s_ch, t_ch = model.s_t_pair, model.t_s_pair

    t_feas, s_feas = [], []
    for i in range(len(s_ch)):
        key, k1, k2 = jax.random.split(key, 3)
        h = w = spatials[i]
        t_feas.append(jax.random.normal(k1, (B, t_ch[i], h, w), jnp.float32))
        s_feas.append(jax.random.normal(k2, (B, s_ch[i], h, w), jnp.float32))

    (total, parts), s_proj = model(t_feas, s_feas)
    total = jax.block_until_ready(total)
    parts = jax.block_until_ready(parts)
    for x in s_proj:
        jax.block_until_ready(x)

    ref_total, ref_parts, ref_sproj = reference_forward(
        t_feas, s_feas, model.weights, model.bn_ab)
    np.testing.assert_allclose(np.asarray(parts), np.asarray(ref_parts),
                               rtol=5e-3, atol=1e-4)
    np.testing.assert_allclose(np.asarray(total), np.asarray(ref_total),
                               rtol=5e-3, atol=1e-4)
    for a, b in zip(s_proj, ref_sproj):
        np.testing.assert_allclose(np.asarray(a), np.asarray(b),
                                   rtol=5e-3, atol=5e-3)

    # Extra: exercise the multi-tile (nct > 1) accumulation path on the Ct=256 level.
    l_full, p_full = eft_level(t_feas[2], s_feas[2],
                               model.weights[2], model.bn_ab[2], ct_tile=256)
    l_t128, p_t128 = eft_level(t_feas[2], s_feas[2],
                               model.weights[2], model.bn_ab[2], ct_tile=128)
    jax.block_until_ready(l_t128)
    np.testing.assert_allclose(np.asarray(l_t128), np.asarray(l_full),
                               rtol=2e-3, atol=1e-5)
    np.testing.assert_allclose(np.asarray(p_t128), np.asarray(p_full),
                               rtol=2e-3, atol=2e-3)

    print("KERNEL_OK")
</pallas_src>

<mosaic_0001>
module attributes {stable_mosaic.version = 11 : i64} {
  func.func @kernel(%arg0: i32, %arg1: memref<2x128x256xf32, #tpu.memory_space<vmem>>, %arg2: memref<2x16x256xf32, #tpu.memory_space<vmem>>, %arg3: memref<128x16xf32, #tpu.memory_space<vmem>>, %arg4: memref<128x2xf32, #tpu.memory_space<vmem>>, %arg5: memref<2xf32, #tpu.memory_space<smem>>, %arg6: memref<2x128x256xf32, #tpu.memory_space<vmem>>, %arg7: memref<2x256xf32, #tpu.memory_space<vmem>>, %arg8: memref<2x1xf32, #tpu.memory_space<vmem>>, %arg9: memref<2x1xf32, #tpu.memory_space<vmem>>, %arg10: memref<2x1xf32, #tpu.memory_space<vmem>>, %arg11: memref<16x1xf32, #tpu.memory_space<vmem>>) attributes {dimension_semantics = [#tpu.dimension_semantics<arbitrary>], iteration_bounds = array<i64: 1>, scalar_prefetch = 0 : i64, scratch_operands = 5 : i64, tpu.core_type = #tpu.core_type<tc>, window_params = [{transform_indices = @transform_0, window_bounds = array<i64: 2, 128, 256>}, {pipeline_mode = #tpu.pipeline_mode<synchronous>, transform_indices = @transform_1, window_bounds = array<i64: 2, 16, 256>}, {transform_indices = @transform_2, window_bounds = array<i64: 128, 16>}, {transform_indices = @transform_3, window_bounds = array<i64: 128, 2>}, {transform_indices = @transform_4, window_bounds = array<i64: 2>}, {transform_indices = @transform_5, window_bounds = array<i64: 2, 128, 256>}]} {
    %c0_i32 = arith.constant 0 : i32
    %0 = arith.cmpi eq, %arg0, %c0_i32 : i32
    %1 = arith.extui %0 : i1 to i32
    %c0_i32_0 = arith.constant 0 : i32
    %2 = arith.cmpi ne, %1, %c0_i32_0 : i32
    scf.if %2 {
      %cst_63 = arith.constant 0.000000e+00 : f32
      %86 = vector.broadcast %cst_63 : f32 to vector<2x256xf32>
      %c0_64 = arith.constant 0 : index
      %c0_65 = arith.constant 0 : index
      %87 = vector.load %arg7[%c0_64, %c0_65] : memref<2x256xf32, #tpu.memory_space<vmem>>, vector<2x256xf32>
      tpu.vector_store %arg7[%c0_64, %c0_65], %86 {strides = array<i32>} : memref<2x256xf32, #tpu.memory_space<vmem>>, vector<2x256xf32>,
      %cst_66 = arith.constant 0.000000e+00 : f32
      %88 = vector.broadcast %cst_66 : f32 to vector<2x1xf32>
      %c0_67 = arith.constant 0 : index
      %c0_68 = arith.constant 0 : index
      %89 = vector.load %arg8[%c0_67, %c0_68] : memref<2x1xf32, #tpu.memory_space<vmem>>, vector<2x1xf32>
      tpu.vector_store %arg8[%c0_67, %c0_68], %88 {strides = array<i32>} : memref<2x1xf32, #tpu.memory_space<vmem>>, vector<2x1xf32>,
      %cst_69 = arith.constant 0.000000e+00 : f32
      %90 = vector.broadcast %cst_69 : f32 to vector<2x1xf32>
      %c0_70 = arith.constant 0 : index
      %c0_71 = arith.constant 0 : index
      %91 = vector.load %arg9[%c0_70, %c0_71] : memref<2x1xf32, #tpu.memory_space<vmem>>, vector<2x1xf32>
      tpu.vector_store %arg9[%c0_70, %c0_71], %90 {strides = array<i32>} : memref<2x1xf32, #tpu.memory_space<vmem>>, vector<2x1xf32>,
      %cst_72 = arith.constant 0.000000e+00 : f32
      %92 = vector.broadcast %cst_72 : f32 to vector<2x1xf32>
      %c0_73 = arith.constant 0 : index
      %c0_74 = arith.constant 0 : index
      %93 = vector.load %arg10[%c0_73, %c0_74] : memref<2x1xf32, #tpu.memory_space<vmem>>, vector<2x1xf32>
      tpu.vector_store %arg10[%c0_73, %c0_74], %92 {strides = array<i32>} : memref<2x1xf32, #tpu.memory_space<vmem>>, vector<2x1xf32>,
      %c0_75 = arith.constant 0 : index
      %c0_76 = arith.constant 0 : index
      %c0_77 = arith.constant 0 : index
      %94 = vector.load %arg2[%c0_75, %c0_76, %c0_77] : memref<2x16x256xf32, #tpu.memory_space<vmem>>, vector<2x16x256xf32>
      %cst_78 = arith.constant dense<0.000000e+00> : vector<2x16xf32>
      %95 = vector.multi_reduction <add>, %94, %cst_78 [2] : vector<2x16x256xf32> to vector<2x16xf32>
      %96 = vector.shape_cast %95 : vector<2x16xf32> to vector<2x16x1xf32>
      %cst_79 = arith.constant 2.560000e+02 : f32
      %97 = vector.broadcast %cst_79 : f32 to vector<2x16x1xf32>
      %98 = arith.divf %96, %97 : vector<2x16x1xf32>
      %cst_80 = arith.constant dense<0.000000e+00> : vector<16x1xf32>
      %99 = vector.multi_reduction <add>, %98, %cst_80 [0] : vector<2x16x1xf32> to vector<16x1xf32>
      %cst_81 = arith.constant 2.000000e+00 : f32
      %100 = vector.broadcast %cst_81 : f32 to vector<16x1xf32>
      %101 = arith.divf %99, %100 : vector<16x1xf32>
      %c0_82 = arith.constant 0 : index
      %c0_83 = arith.constant 0 : index
      %102 = vector.load %arg11[%c0_82, %c0_83] : memref<16x1xf32, #tpu.memory_space<vmem>>, vector<16x1xf32>
      tpu.vector_store %arg11[%c0_82, %c0_83], %101 {strides = array<i32>} : memref<16x1xf32, #tpu.memory_space<vmem>>, vector<16x1xf32>,
    } else {
    }
    %c0 = arith.constant 0 : index
    %c0_1 = arith.constant 0 : index
    %c0_2 = arith.constant 0 : index
    %3 = vector.load %arg1[%c0, %c0_1, %c0_2] : memref<2x128x256xf32, #tpu.memory_space<vmem>>, vector<2x128x256xf32>
    %4 = arith.mulf %3, %3 : vector<2x128x256xf32>
    %c0_3 = arith.constant 0 : index
    %c0_4 = arith.constant 0 : index
    %5 = vector.load %arg7[%c0_3, %c0_4] : memref<2x256xf32, #tpu.memory_space<vmem>>, vector<2x256xf32>
    %cst = arith.constant dense<0.000000e+00> : vector<2x256xf32>
    %6 = vector.multi_reduction <add>, %4, %cst [1] : vector<2x128x256xf32> to vector<2x256xf32>
    %7 = arith.addf %5, %6 : vector<2x256xf32>
    %c0_5 = arith.constant 0 : index
    %c0_6 = arith.constant 0 : index
    %8 = vector.load %arg7[%c0_5, %c0_6] : memref<2x256xf32, #tpu.memory_space<vmem>>, vector<2x256xf32>
    tpu.vector_store %arg7[%c0_5, %c0_6], %7 {strides = array<i32>} : memref<2x256xf32, #tpu.memory_space<vmem>>, vector<2x256xf32>,
    %cst_7 = arith.constant dense<0.000000e+00> : vector<2x128xf32>
    %9 = vector.multi_reduction <add>, %4, %cst_7 [2] : vector<2x128x256xf32> to vector<2x128xf32>
    %cst_8 = arith.constant 2.560000e+02 : f32
    %10 = vector.broadcast %cst_8 : f32 to vector<2x128xf32>
    %11 = arith.divf %9, %10 : vector<2x128xf32>
    %c0_9 = arith.constant 0 : index
    %c0_10 = arith.constant 0 : index
    %12 = vector.load %arg3[%c0_9, %c0_10] : memref<128x16xf32, #tpu.memory_space<vmem>>, vector<128x16xf32>
    %c0_11 = arith.constant 0 : index
    %c0_12 = arith.constant 0 : index
    %c0_13 = arith.constant 0 : index
    %13 = vector.load %arg2[%c0_11, %c0_12, %c0_13] : memref<2x16x256xf32, #tpu.memory_space<vmem>>, vector<1x16x256xf32>
    %14 = vector.shape_cast %13 : vector<1x16x256xf32> to vector<16x256xf32>
    %cst_14 = arith.constant dense<0.000000e+00> : vector<128x256xf32>
    %15 = tpu.matmul %12, %14, %cst_14 {dimension_numbers = #tpu.dot_dimension_numbers<[1], [0], [0], [1], [0, 0, 1, 1], [], []>} : vector<128x16xf32>, vector<16x256xf32>, vector<128x256xf32> -> vector<128x256xf32>
    %c0_15 = arith.constant 0 : index
    %c0_16 = arith.constant 0 : index
    %c0_17 = arith.constant 0 : index
    %16 = vector.load %arg6[%c0_15, %c0_16, %c0_17] : memref<2x128x256xf32, #tpu.memory_space<vmem>>, vector<1x128x256xf32>
    %17 = vector.shape_cast %16 : vector<1x128x256xf32> to vector<128x256xf32>
    %18 = vector.shape_cast %15 : vector<128x256xf32> to vector<1x128x256xf32>
    tpu.vector_store %arg6[%c0_15, %c0_16, %c0_17], %18 {strides = array<i32>} : memref<2x128x256xf32, #tpu.memory_space<vmem>>, vector<1x128x256xf32>,
    %c1 = arith.constant 1 : index
    %c0_18 = arith.constant 0 : index
    %c0_19 = arith.constant 0 : index
    %19 = vector.load %arg2[%c1, %c0_18, %c0_19] : memref<2x16x256xf32, #tpu.memory_space<vmem>>, vector<1x16x256xf32>
    %20 = vector.shape_cast %19 : vector<1x16x256xf32> to vector<16x256xf32>
    %cst_20 = arith.constant dense<0.000000e+00> : vector<128x256xf32>
    %21 = tpu.matmul %12, %20, %cst_20 {dimension_numbers = #tpu.dot_dimension_numbers<[1], [0], [0], [1], [0, 0, 1, 1], [], []>} : vector<128x16xf32>, vector<16x256xf32>, vector<128x256xf32> -> vector<128x256xf32>
    %c1_21 = arith.constant 1 : index
    %c0_22 = arith.constant 0 : index
    %c0_23 = arith.constant 0 : index
    %22 = vector.load %arg6[%c1_21, %c0_22, %c0_23] : memref<2x128x256xf32, #tpu.memory_space<vmem>>, vector<1x128x256xf32>
    %23 = vector.shape_cast %22 : vector<1x128x256xf32> to vector<128x256xf32>
    %24 = vector.shape_cast %21 : vector<128x256xf32> to vector<1x128x256xf32>
    tpu.vector_store %arg6[%c1_21, %c0_22, %c0_23], %24 {strides = array<i32>} : memref<2x128x256xf32, #tpu.memory_space<vmem>>, vector<1x128x256xf32>,
    %c0_24 = arith.constant 0 : index
    %c0_25 = arith.constant 0 : index
    %c0_26 = arith.constant 0 : index
    %25 = vector.load %arg6[%c0_24, %c0_25, %c0_26] : memref<2x128x256xf32, #tpu.memory_space<vmem>>, vector<2x128x256xf32>
    %26 = arith.mulf %25, %25 : vector<2x128x256xf32>
    %cst_27 = arith.constant dense<0.000000e+00> : vector<2x128xf32>
    %27 = vector.multi_reduction <add>, %26, %cst_27 [2] : vector<2x128x256xf32> to vector<2x128xf32>
    %28 = vector.shape_cast %27 : vector<2x128xf32> to vector<2x128x1xf32>
    %cst_28 = arith.constant 2.560000e+02 : f32
    %29 = vector.broadcast %cst_28 : f32 to vector<2x128x1xf32>
    %30 = arith.divf %28, %29 : vector<2x128x1xf32>
    %cst_29 = arith.constant dense<0.000000e+00> : vector<128x1xf32>
    %31 = vector.multi_reduction <add>, %30, %cst_29 [0] : vector<2x128x1xf32> to vector<128x1xf32>
    %cst_30 = arith.constant 2.000000e+00 : f32
    %32 = vector.broadcast %cst_30 : f32 to vector<128x1xf32>
    %33 = arith.divf %31, %32 : vector<128x1xf32>
    %c0_31 = arith.constant 0 : index
    %c0_32 = arith.constant 0 : index
    %34 = vector.load %arg11[%c0_31, %c0_32] : memref<16x1xf32, #tpu.memory_space<vmem>>, vector<16x1xf32>
    %cst_33 = arith.constant dense<0.000000e+00> : vector<128x1xf32>
    %35 = tpu.matmul %12, %34, %cst_33 {dimension_numbers = #tpu.dot_dimension_numbers<[1], [0], [0], [1], [0, 0, 1, 1], [], []>} : vector<128x16xf32>, vector<16x1xf32>, vector<128x1xf32> -> vector<128x1xf32>
    %36 = arith.mulf %35, %35 : vector<128x1xf32>
    %37 = arith.subf %33, %36 : vector<128x1xf32>
    %cst_34 = arith.constant 0.000000e+00 : f32
    %38 = vector.broadcast %cst_34 : f32 to vector<128x1xf32>
    %39 = arith.maximumf %37, %38 : vector<128x1xf32>
    %cst_35 = arith.constant 9.99999974E-6 : f32
    %40 = vector.broadcast %cst_35 : f32 to vector<128x1xf32>
    %41 = arith.addf %39, %40 : vector<128x1xf32>
    %42 = math.rsqrt %41 : vector<128x1xf32>
    %c0_36 = arith.constant 0 : index
    %c0_37 = arith.constant 0 : index
    %43 = vector.load %arg4[%c0_36, %c0_37] : memref<128x2xf32, #tpu.memory_space<vmem>>, vector<128x1xf32>
    %44 = arith.mulf %43, %42 : vector<128x1xf32>
    %c0_38 = arith.constant 0 : index
    %c1_39 = arith.constant 1 : index
    %45 = vector.load %arg4[%c0_38, %c1_39] : memref<128x2xf32, #tpu.memory_space<vmem>>, vector<128x1xf32>
    %46 = arith.mulf %35, %44 : vector<128x1xf32>
    %47 = arith.subf %45, %46 : vector<128x1xf32>
    %48 = vector.shape_cast %44 : vector<128x1xf32> to vector<1x128x1xf32>
    %49 = vector.broadcast %48 : vector<1x128x1xf32> to vector<2x128x256xf32>
    %50 = arith.mulf %25, %49 : vector<2x128x256xf32>
    %51 = vector.shape_cast %47 : vector<128x1xf32> to vector<1x128x1xf32>
    %52 = vector.broadcast %51 : vector<1x128x1xf32> to vector<2x128x256xf32>
    %53 = arith.addf %50, %52 : vector<2x128x256xf32>
    %54 = arith.negf %53 : vector<2x128x256xf32>
    %55 = math.exp %54 : vector<2x128x256xf32>
    %cst_40 = arith.constant 1.000000e+00 : f32
    %56 = vector.broadcast %cst_40 : f32 to vector<2x128x256xf32>
    %57 = arith.addf %56, %55 : vector<2x128x256xf32>
    %58 = arith.divf %56, %57 : vector<2x128x256xf32>
    %59 = arith.mulf %53, %58 : vector<2x128x256xf32>
    %c0_41 = arith.constant 0 : index
    %c0_42 = arith.constant 0 : index
    %c0_43 = arith.constant 0 : index
    %60 = vector.load %arg6[%c0_41, %c0_42, %c0_43] : memref<2x128x256xf32, #tpu.memory_space<vmem>>, vector<2x128x256xf32>
    tpu.vector_store %arg6[%c0_41, %c0_42, %c0_43], %59 {strides = array<i32>} : memref<2x128x256xf32, #tpu.memory_space<vmem>>, vector<2x128x256xf32>,
    %61 = arith.mulf %59, %59 : vector<2x128x256xf32>
    %cst_44 = arith.constant dense<0.000000e+00> : vector<2x128xf32>
    %62 = vector.multi_reduction <add>, %61, %cst_44 [2] : vector<2x128x256xf32> to vector<2x128xf32>
    %cst_45 = arith.constant 2.560000e+02 : f32
    %63 = vector.broadcast %cst_45 : f32 to vector<2x128xf32>
    %64 = arith.divf %62, %63 : vector<2x128xf32>
    %c0_46 = arith.constant 0 : index
    %c0_47 = arith.constant 0 : index
    %65 = vector.load %arg8[%c0_46, %c0_47] : memref<2x1xf32, #tpu.memory_space<vmem>>, vector<2x1xf32>
    %66 = arith.mulf %11, %11 : vector<2x128xf32>
    %cst_48 = arith.constant dense<0.000000e+00> : vector<2xf32>
    %67 = vector.multi_reduction <add>, %66, %cst_48 [1] : vector<2x128xf32> to vector<2xf32>
    %68 = vector.shape_cast %67 : vector<2xf32> to vector<2x1xf32>
    %69 = arith.addf %65, %68 : vector<2x1xf32>
    %c0_49 = arith.constant 0 : index
    %c0_50 = arith.constant 0 : index
    %70 = vector.load %arg8[%c0_49, %c0_50] : memref<2x1xf32, #tpu.memory_space<vmem>>, vector<2x1xf32>
    tpu.vector_store %arg8[%c0_49, %c0_50], %69 {strides = array<i32>} : memref<2x1xf32, #tpu.memory_space<vmem>>, vector<2x1xf32>,
    %c0_51 = arith.constant 0 : index
    %c0_52 = arith.constant 0 : index
    %71 = vector.load %arg9[%c0_51, %c0_52] : memref<2x1xf32, #tpu.memory_space<vmem>>, vector<2x1xf32>
    %72 = arith.mulf %11, %64 : vector<2x128xf32>
    %cst_53 = arith.constant dense<0.000000e+00> : vector<2xf32>
    %73 = vector.multi_reduction <add>, %72, %cst_53 [1] : vector<2x128xf32> to vector<2xf32>
    %74 = vector.shape_cast %73 : vector<2xf32> to vector<2x1xf32>
    %75 = arith.addf %71, %74 : vector<2x1xf32>
    %c0_54 = arith.constant 0 : index
    %c0_55 = arith.constant 0 : index
    %76 = vector.load %arg9[%c0_54, %c0_55] : memref<2x1xf32, #tpu.memory_space<vmem>>, vector<2x1xf32>
    tpu.vector_store %arg9[%c0_54, %c0_55], %75 {strides = array<i32>} : memref<2x1xf32, #tpu.memory_space<vmem>>, vector<2x1xf32>,
    %c0_56 = arith.constant 0 : index
    %c0_57 = arith.constant 0 : index
    %77 = vector.load %arg10[%c0_56, %c0_57] : memref<2x1xf32, #tpu.memory_space<vmem>>, vector<2x1xf32>
    %78 = arith.mulf %64, %64 : vector<2x128xf32>
    %cst_58 = arith.constant dense<0.000000e+00> : vector<2xf32>
    %79 = vector.multi_reduction <add>, %78, %cst_58 [1] : vector<2x128xf32> to vector<2xf32>
    %80 = vector.shape_cast %79 : vector<2xf32> to vector<2x1xf32>
    %81 = arith.addf %77, %80 : vector<2x1xf32>
    %c0_59 = arith.constant 0 : index
    %c0_60 = arith.constant 0 : index
    %82 = vector.load %arg10[%c0_59, %c0_60] : memref<2x1xf32, #tpu.memory_space<vmem>>, vector<2x1xf32>
    tpu.vector_store %arg10[%c0_59, %c0_60], %81 {strides = array<i32>} : memref<2x1xf32, #tpu.memory_space<vmem>>, vector<2x1xf32>,
    %c0_i32_61 = arith.constant 0 : i32
    %83 = arith.cmpi eq, %arg0, %c0_i32_61 : i32
    %84 = arith.extui %83 : i1 to i32
    %c0_i32_62 = arith.constant 0 : i32
    %85 = arith.cmpi ne, %84, %c0_i32_62 : i32
    scf.if %85 {
      %c0_63 = arith.constant 0 : index
      %c0_64 = arith.constant 0 : index
      %86 = vector.load %arg7[%c0_63, %c0_64] : memref<2x256xf32, #tpu.memory_space<vmem>>, vector<2x256xf32>
      %cst_65 = arith.constant 7.812500e-03 : f32
      %87 = vector.broadcast %cst_65 : f32 to vector<2x256xf32>
      %88 = arith.mulf %86, %87 : vector<2x256xf32>
      %c0_66 = arith.constant 0 : index
      %c0_67 = arith.constant 0 : index
      %c0_68 = arith.constant 0 : index
      %89 = vector.load %arg2[%c0_66, %c0_67, %c0_68] : memref<2x16x256xf32, #tpu.memory_space<vmem>>, vector<2x16x256xf32>
      %90 = arith.mulf %89, %89 : vector<2x16x256xf32>
      %cst_69 = arith.constant dense<0.000000e+00> : vector<2x256xf32>
      %91 = vector.multi_reduction <add>, %90, %cst_69 [1] : vector<2x16x256xf32> to vector<2x256xf32>
      %cst_70 = arith.constant 1.600000e+01 : f32
      %92 = vector.broadcast %cst_70 : f32 to vector<2x256xf32>
      %93 = arith.divf %91, %92 : vector<2x256xf32>
      %94 = arith.mulf %88, %88 : vector<2x256xf32>
      %cst_71 = arith.constant dense<0.000000e+00> : vector<2xf32>
      %95 = vector.multi_reduction <add>, %94, %cst_71 [1] : vector<2x256xf32> to vector<2xf32>
      %96 = vector.shape_cast %95 : vector<2xf32> to vector<2x1xf32>
      %97 = arith.mulf %88, %93 : vector<2x256xf32>
      %cst_72 = arith.constant dense<0.000000e+00> : vector<2xf32>
      %98 = vector.multi_reduction <add>, %97, %cst_72 [1] : vector<2x256xf32> to vector<2xf32>
      %99 = vector.shape_cast %98 : vector<2xf32> to vector<2x1xf32>
      %100 = arith.mulf %93, %93 : vector<2x256xf32>
      %cst_73 = arith.constant dense<0.000000e+00> : vector<2xf32>
      %101 = vector.multi_reduction <add>, %100, %cst_73 [1] : vector<2x256xf32> to vector<2xf32>
      %102 = vector.shape_cast %101 : vector<2xf32> to vector<2x1xf32>
      %cst_74 = arith.constant 1.000000e-24 : f32
      %103 = vector.broadcast %cst_74 : f32 to vector<2x1xf32>
      %104 = arith.maximumf %96, %103 : vector<2x1xf32>
      %105 = math.rsqrt %104 : vector<2x1xf32>
      %cst_75 = arith.constant 1.000000e-24 : f32
      %106 = vector.broadcast %cst_75 : f32 to vector<2x1xf32>
      %107 = arith.maximumf %102, %106 : vector<2x1xf32>
      %108 = math.rsqrt %107 : vector<2x1xf32>
      %109 = arith.mulf %96, %105 : vector<2x1xf32>
      %110 = arith.mulf %109, %105 : vector<2x1xf32>
      %cst_76 = arith.constant 2.000000e+00 : f32
      %111 = vector.broadcast %cst_76 : f32 to vector<2x1xf32>
      %112 = arith.mulf %111, %99 : vector<2x1xf32>
      %113 = arith.mulf %112, %105 : vector<2x1xf32>
      %114 = arith.mulf %113, %108 : vector<2x1xf32>
      %115 = arith.subf %110, %114 : vector<2x1xf32>
      %116 = arith.mulf %102, %108 : vector<2x1xf32>
      %117 = arith.mulf %116, %108 : vector<2x1xf32>
      %118 = arith.addf %115, %117 : vector<2x1xf32>
      %119 = vector.shape_cast %118 : vector<2x1xf32> to vector<1x2x1xf32>
      %cst_77 = arith.constant dense<0.000000e+00> : vector<1xf32>
      %120 = vector.multi_reduction <add>, %119, %cst_77 [1, 2] : vector<1x2x1xf32> to vector<1xf32>
      %121 = vector.shape_cast %120 : vector<1xf32> to vector<1x1x1xf32>
      %122 = vector.extract %121[0, 0, 0] : f32 from vector<1x1x1xf32>
      %cst_78 = arith.constant 0.001953125 : f32
      %123 = arith.mulf %122, %cst_78 : f32
      %c0_79 = arith.constant 0 : index
      %124 = memref.load %arg5[%c0_79] : memref<2xf32, #tpu.memory_space<smem>>
      memref.store %123, %arg5[%c0_79] : memref<2xf32, #tpu.memory_space<smem>>
      %c0_80 = arith.constant 0 : index
      %c0_81 = arith.constant 0 : index
      %125 = vector.load %arg8[%c0_80, %c0_81] : memref<2x1xf32, #tpu.memory_space<vmem>>, vector<2x1xf32>
      %c0_82 = arith.constant 0 : index
      %c0_83 = arith.constant 0 : index
      %126 = vector.load %arg9[%c0_82, %c0_83] : memref<2x1xf32, #tpu.memory_space<vmem>>, vector<2x1xf32>
      %c0_84 = arith.constant 0 : index
      %c0_85 = arith.constant 0 : index
      %127 = vector.load %arg10[%c0_84, %c0_85] : memref<2x1xf32, #tpu.memory_space<vmem>>, vector<2x1xf32>
      %cst_86 = arith.constant 1.000000e-24 : f32
      %128 = vector.broadcast %cst_86 : f32 to vector<2x1xf32>
      %129 = arith.maximumf %125, %128 : vector<2x1xf32>
      %130 = math.rsqrt %129 : vector<2x1xf32>
      %cst_87 = arith.constant 1.000000e-24 : f32
      %131 = vector.broadcast %cst_87 : f32 to vector<2x1xf32>
      %132 = arith.maximumf %127, %131 : vector<2x1xf32>
      %133 = math.rsqrt %132 : vector<2x1xf32>
      %134 = arith.mulf %125, %130 : vector<2x1xf32>
      %135 = arith.mulf %134, %130 : vector<2x1xf32>
      %cst_88 = arith.constant 2.000000e+00 : f32
      %136 = vector.broadcast %cst_88 : f32 to vector<2x1xf32>
      %137 = arith.mulf %136, %126 : vector<2x1xf32>
      %138 = arith.mulf %137, %130 : vector<2x1xf32>
      %139 = arith.mulf %138, %133 : vector<2x1xf32>
      %140 = arith.subf %135, %139 : vector<2x1xf32>
      %141 = arith.mulf %127, %133 : vector<2x1xf32>
      %142 = arith.mulf %141, %133 : vector<2x1xf32>
      %143 = arith.addf %140, %142 : vector<2x1xf32>
      %144 = vector.shape_cast %143 : vector<2x1xf32> to vector<1x2x1xf32>
      %cst_89 = arith.constant dense<0.000000e+00> : vector<1xf32>
      %145 = vector.multi_reduction <add>, %144, %cst_89 [1, 2] : vector<1x2x1xf32> to vector<1xf32>
      %146 = vector.shape_cast %145 : vector<1xf32> to vector<1x1x1xf32>
      %147 = vector.extract %146[0, 0, 0] : f32 from vector<1x1x1xf32>
      %cst_90 = arith.constant 3.906250e-03 : f32
      %148 = arith.mulf %147, %cst_90 : f32
      %c1_91 = arith.constant 1 : index
      %149 = memref.load %arg5[%c1_91] : memref<2xf32, #tpu.memory_space<smem>>
      memref.store %148, %arg5[%c1_91] : memref<2xf32, #tpu.memory_space<smem>>
    } else {
    }
    return
  }
  func.func @transform_0(%arg0: i32) -> (i32, i32, i32) {
    %c0_i32 = arith.constant 0 : i32
    %c0_i32_0 = arith.constant 0 : i32
    %c0_i32_1 = arith.constant 0 : i32
    return %c0_i32, %arg0, %c0_i32_0 : i32, i32, i32
  }
  func.func @transform_1(%arg0: i32) -> (i32, i32, i32) {
    %c0_i32 = arith.constant 0 : i32
    %c0_i32_0 = arith.constant 0 : i32
    %c0_i32_1 = arith.constant 0 : i32
    %c0_i32_2 = arith.constant 0 : i32
    return %c0_i32, %c0_i32_0, %c0_i32_1 : i32, i32, i32
  }
  func.func @transform_2(%arg0: i32) -> (i32, i32) {
    %c0_i32 = arith.constant 0 : i32
    %c0_i32_0 = arith.constant 0 : i32
    return %arg0, %c0_i32 : i32, i32
  }
  func.func @transform_3(%arg0: i32) -> (i32, i32) {
    %c0_i32 = arith.constant 0 : i32
    %c0_i32_0 = arith.constant 0 : i32
    return %arg0, %c0_i32 : i32, i32
  }
  func.func @transform_4(%arg0: i32) -> i32 {
    %c0_i32 = arith.constant 0 : i32
    %c0_i32_0 = arith.constant 0 : i32
    return %c0_i32 : i32
  }
  func.func @transform_5(%arg0: i32) -> (i32, i32, i32) {
    %c0_i32 = arith.constant 0 : i32
    %c0_i32_0 = arith.constant 0 : i32
    %c0_i32_1 = arith.constant 0 : i32
    return %c0_i32, %arg0, %c0_i32_0 : i32, i32, i32
  }
}

</mosaic_0001>

<bundles_post_ra>
// kernel: tpu_custom_call.1
= control target key start
LH: loop header
LB: loop body
LE: loop exit
PB: predicated region body
PF: predicated region fallthrough
CT: control target
= control target key end

     0   :  { %11 = vsyncpa [#allocation8], 0  ;;  %s8077_s0 = inlined_call_operand.hbm [shape: f32[2,128,256], index: 0, kind: input, shape index: {}]   ;;  %s8078_s1 = inlined_call_operand.vmem [shape: f32[2,16,256], index: 1, kind: input, shape index: {}]   ;;  %s8079_s2 = inlined_call_operand.vmem [shape: f32[128,16], index: 2, kind: input, shape index: {}]   ;;  %s8080_s3 = inlined_call_operand.vmem [shape: f32[128,2], index: 3, kind: input, shape index: {}]   ;;  %s8081_s4 = inlined_call_operand.hbm [shape: f32[2], index: 4, kind: output, shape index: {0}]   ;;  %s8082_s5 = inlined_call_operand.hbm [shape: f32[2,128,256], index: 5, kind: output, shape index: {1}]  }
   0x1   :  { %12 = vsyncpa [#allocation10], 0 }
   0x2   :  { %13 = vsyncpa [#allocation9], 0  ;;  %s18_s20 = sshll.u32 %s8077_s0, 4  ;;  %s4629_s21 = smov [#allocation7]   ;;  %s19_s20 = int_to_ptr.hbm [resolvable:$true] %s18_s20 }
   0x3   :  { %s20_s22 = sshll.u32 %s4629_s21, 4  ;;  %s4630_s23 = smov 256   ;;  %s21_s22 = int_to_ptr.vmem [resolvable:$true] %s20_s22 }
   0x4   :  { %s4631_s24 = smov 16  }
   0x5   :  { %26 = dma.hbm_to_vmem [thread:$0]  %s19_s20, 8192, %s21_s22, [#allocation8], %s4630_s23, %s4630_s23, %s4631_s24  }
   0x6   :  { %4623 = dma.done.wait [#allocation8], 8192  }
   0x7   :  { %4624 = vsyncadd [#allocation8], 4294959104  ;;  %v482_v0 = vld [vmem:[%s8078_s1 + $0x10] sm:$0xff]  ;;  %v480_v1 = vld [vmem:[%s8078_s1] sm:$0xff]  ;;  %vm484_vm0 = vcmask 130048   ;;  %vm8308_vm1 = vcmask 1041408  }
   0x8   :  { %v49_v2 = vld [vmem:[%s8078_s1 + $0x18] sm:$0xff]  ;;  %4226 = vmatpush.msra.mxu1 %v482_v0  ;;  %4227 = vmatpush.msra.mxu2 %v482_v0  ;;  %v4689_v4 = vld [vmem:[%s8079_s2 + $0x20] sm:$0xff]  ;;  %v47_v7 = vld [vmem:[%s8078_s1 + $0x8] sm:$0xff]  ;;  %vm88_vm4 = vcmask 7168   ;;  %s4635_s10 = smov 1   ;;  %s4059_s9 = sshll.u32 %s8082_s5, 4  ;;  %s4060_s9 = int_to_ptr.hbm [resolvable:$true] %s4059_s9 }
   0x9   :  { %v57_v3 = vadd.f32 %v482_v0, %v49_v2  ;;  %4228 = vmatpush.msra.mxu3 %v482_v0  ;;  %v4694_v5 = vld [vmem:[%s8079_s2 + $0x40] sm:$0xff]  ;;  %547 = vmatpush.msra.mxu0 %v482_v0  ;;  %v54_v8 = vadd.f32 %v480_v1, %v47_v7  ;;  %v4112_v9 = vld [vmem:[%s8078_s1 + $0x30] sm:$0xff]  ;;  %v4113_v10 = vld [vmem:[%s8078_s1 + $0x38] sm:$0xff]  ;;  %s4049_s12 = sshll.u32 %s8081_s4, 4  ;;  %s4640_s15 = smov [#allocation11]   ;;  %s4050_s12 = int_to_ptr.hbm [resolvable:$true] %s4049_s12 }
   0xa   :  { %4229 = vmatpush.msra.mxu1 %v480_v1  ;;  %4230 = vmatpush.msra.mxu2 %v480_v1  ;;  %v4699_v6 = vld [vmem:[%s8079_s2 + $0x60] sm:$0xff]  ;;  %v92_v13 = vld [vmem:[#allocation7 + $0x8] sm:$0xff]  ;;  %v63_v14 = vadd.f32 %v4113_v10, %v4112_v9  ;;  %v93_v19 = vld [vmem:[#allocation7 + $0x10] sm:$0xff] }
   0xb   :  { %4231 = vmatpush.msra.mxu3 %v480_v1  ;;  %58 = vadd.xlane.f32.xlu0 %v57_v3  ;;  %v4110_v11 = vld [vmem:[%s8078_s1 + $0x20] sm:$0xff]  ;;  %v4111_v15 = vld [vmem:[%s8078_s1 + $0x28] sm:$0xff]  ;;  %v156_v18 = vmul.f32 %v92_v13, %v92_v13  ;;  %v157_v26 = vmul.f32 %v93_v19, %v93_v19  ;;  %v97_v34 = vld [vmem:[#allocation7 + $0x30] sm:$0xff] }
   0xc   :  { %4082 = vmatmul.msk.f32.vlgmr.msra.gmra.mxu1 %vm484_vm0, %v4689_v4  ;;  %4086 = vmatmul.msk.f32.vlgmr.msra.gmra.mxu2 %vm484_vm0, %v4694_v5  ;;  %v91_v12 = vld [vmem:[#allocation7] sm:$0xff]  ;;  %v94_v20 = vld [vmem:[#allocation7 + $0x18] sm:$0xff]  ;;  %v60_v25 = vadd.f32 %v4111_v15, %v4110_v11  ;;  %v96_v31 = vld [vmem:[#allocation7 + $0x28] sm:$0xff]  ;;  %v161_v38 = vmul.f32 %v97_v34, %v97_v34 }
   0xd   :  { %4090 = vmatmul.msk.f32.vlgmr.msra.gmra.mxu3 %vm484_vm0, %v4699_v6  ;;  %714 = vmatpush.msrb.mxu2 %v4112_v9  ;;  %v4725_v16 = vld [vmem:[%s8079_s2] sm:$0xff]  ;;  %v155_v17 = vmul.f32 %v91_v12, %v91_v12  ;;  %v4730_v21 = vld [vmem:[%s8079_s2 + $0x28] sm:$0xff]  ;;  %v158_v27 = vmul.f32 %v94_v20, %v94_v20  ;;  %v160_v33 = vmul.f32 %v96_v31, %v96_v31  ;;  %v4758_v43 = vld [vmem:[%s8079_s2 + $0x30] sm:$0xff] }
   0xe   :  { %779 = vmatpush.msrb.mxu3 %v4113_v10  ;;  %612 = vmatpush.msrb.mxu1 %v49_v2  ;;  %v4735_v22 = vld [vmem:[%s8079_s2 + $0x48] sm:$0xff]  ;;  %v98_v35 = vld [vmem:[#allocation7 + $0x38] sm:$0xff]  ;;  %v4763_v44 = vld [vmem:[%s8079_s2 + $0x50] sm:$0xff] }
   0xf   :  { %55 = vadd.xlane.f32.xlu1 %v54_v8  ;;  %715 = vmatpush.msrb.mxu2 %v4110_v11  ;;  %v329_v23 = vadd.f32 %v156_v18, %v155_v17  ;;  %v4740_v24 = vld [vmem:[%s8079_s2 + $0x68] sm:$0xff]  ;;  %v241_v28 = vadd.f32 %v158_v27, %v156_v18  ;;  %v220_v29 = vadd.f32 %v157_v26, %v155_v17  ;;  %v4768_v45 = vld [vmem:[%s8079_s2 + $0x70] sm:$0xff]  ;;  %v102_v52 = vld [vmem:[#allocation7 + $0x58] sm:$0xff] }
  0x10   :  { %780 = vmatpush.msrb.mxu3 %v4111_v15  ;;  %613 = vmatpush.msrb.mxu1 %v47_v7  ;;  %v95_v30 = vld [vmem:[#allocation7 + $0x20] sm:$0xff]  ;;  %v332_v37 = vadd.f32 %v158_v27, %v157_v26  ;;  %v162_v39 = vmul.f32 %v98_v35, %v98_v35  ;;  %v100_v41 = vld [vmem:[#allocation7 + $0x48] sm:$0xff]  ;;  %v101_v51 = vld [vmem:[#allocation7 + $0x50] sm:$0xff]  ;;  %v166_v55 = vmul.f32 %v102_v52, %v102_v52 }
  0x11   :  { %548 = vmatpush.msra.mxu0 %v480_v1  ;;  %330 = vadd.xlane.f32.xlu2 %v329_v23  ;;  %v159_v32 = vmul.f32 %v95_v30, %v95_v30  ;;  %v4753_v36 = vld [vmem:[%s8079_s2 + $0x8] sm:$0xff]  ;;  %v164_v47 = vmul.f32 %v100_v41, %v100_v41  ;;  %v242_v50 = vadd.f32 %v241_v28, %v160_v33  ;;  %v4781_v58 = vld [vmem:[%s8079_s2 + $0x10] sm:$0xff]  ;;  %v106_v0 = vld [vmem:[#allocation7 + $0x78] sm:$0xff] }
  0x12   :  { %4078 = vmatmul.msk.f32.vlgmr.msra.gmra.mxu0 %vm484_vm0, %v4725_v16  ;;  %v99_v40 = vld [vmem:[#allocation7 + $0x40] sm:$0xff]  ;;  %v338_v48 = vadd.f32 %v162_v39, %v161_v38  ;;  %v165_v54 = vmul.f32 %v101_v51, %v101_v51  ;;  %v104_v57 = vld [vmem:[#allocation7 + $0x68] sm:$0xff]  ;;  %v105_v63 = vld [vmem:[#allocation7 + $0x70] sm:$0xff]  ;;  %v170_v11 = vmul.f32 %v106_v0, %v106_v0 }
  0x13   :  { %64 = vadd.xlane.f32.xlu0 %v63_v14  ;;  %v335_v42 = vadd.f32 %v160_v33, %v159_v32  ;;  %v163_v46 = vmul.f32 %v99_v40, %v99_v40  ;;  %v221_v49 = vadd.f32 %v220_v29, %v159_v32  ;;  %v103_v56 = vld [vmem:[#allocation7 + $0x60] sm:$0xff]  ;;  %v243_v60 = vadd.f32 %v242_v50, %v162_v39  ;;  %v4786_v2 = vld [vmem:[%s8079_s2 + $0x38] sm:$0xff]  ;;  %v108_v17 = vld [vmem:[#allocation7 + $0x88] sm:$0xff] }
  0x14   :  { %4083 = vmatmul.msk.f32.gmra.mxu1 %vm484_vm0, %v4730_v21  ;;  %4087 = vmatmul.msk.f32.gmra.mxu2 %vm484_vm0, %v4735_v22  ;;  %v167_v61 = vmul.f32 %v103_v56, %v103_v56  ;;  %v168_v62 = vmul.f32 %v104_v57, %v104_v57  ;;  %v344_v1 = vadd.f32 %v166_v55, %v165_v54  ;;  %v4791_v3 = vld [vmem:[%s8079_s2 + $0x58] sm:$0xff]  ;;  %v107_v15 = vld [vmem:[#allocation7 + $0x80] sm:$0xff]  ;;  %v112_v32 = vld [vmem:[#allocation7 + $0xa8] sm:$0xff] }
  0x15   :  { %4091 = vmatmul.msk.f32.gmra.mxu3 %vm484_vm0, %v4740_v24  ;;  %v341_v53 = vadd.f32 %v164_v47, %v163_v46  ;;  %v222_v59 = vadd.f32 %v221_v49, %v161_v38  ;;  %v244_v7 = vadd.f32 %v243_v60, %v164_v47  ;;  %v4796_v9 = vld [vmem:[%s8079_s2 + $0x78] sm:$0xff]  ;;  %v169_v10 = vmul.f32 %v105_v63, %v105_v63  ;;  %v111_v31 = vld [vmem:[#allocation7 + $0xa0] sm:$0xff]  ;;  %v116_v51 = vld [vmem:[#allocation7 + $0xc8] sm:$0xff] }
  0x16   :  { %v347_v12 = vadd.f32 %v168_v62, %v167_v61  ;;  %v171_v19 = vmul.f32 %v107_v15, %v107_v15  ;;  %v172_v20 = vmul.f32 %v108_v17, %v108_v17  ;;  %v109_v23 = vld [vmem:[#allocation7 + $0x90] sm:$0xff]  ;;  %v176_v38 = vmul.f32 %v112_v32, %v112_v32  ;;  %v115_v50 = vld [vmem:[#allocation7 + $0xc0] sm:$0xff]  ;;  %v118_v57 = vld [vmem:[#allocation7 + $0xd8] sm:$0xff] }
  0x17   :  { %61 = vadd.xlane.f32.xlu1 %v60_v25  ;;  %v223_v8 = vadd.f32 %v222_v59, %v163_v46  ;;  %v245_v14 = vadd.f32 %v244_v7, %v166_v55  ;;  %v350_v18 = vadd.f32 %v170_v11, %v169_v10  ;;  %v110_v25 = vld [vmem:[#allocation7 + $0x98] sm:$0xff]  ;;  %v173_v29 = vmul.f32 %v109_v23, %v109_v23  ;;  %v117_v56 = vld [vmem:[#allocation7 + $0xd0] sm:$0xff]  ;;  %v123_v23 = vld [vmem:[#allocation7 + $0x100] sm:$0xff] }
  0x18   :  { %v4809_v26 = vld [vmem:[%s8079_s2 + $0x18] sm:$0xff]  ;;  %v174_v30 = vmul.f32 %v110_v25, %v110_v25  ;;  %v353_v33 = vadd.f32 %v172_v20, %v171_v19  ;;  %v180_v55 = vmul.f32 %v116_v51, %v116_v51  ;;  %v182_v63 = vmul.f32 %v118_v57, %v118_v57  ;;  %v124_v25 = vld [vmem:[#allocation7 + $0x108] sm:$0xff] }
  0x19   :  { %333 = vadd.xlane.f32.xlu2 %v332_v37  ;;  %v224_v13 = vadd.f32 %v223_v8, %v165_v54  ;;  %v246_v28 = vadd.f32 %v245_v14, %v168_v62  ;;  %v175_v37 = vmul.f32 %v111_v31, %v111_v31  ;;  %v114_v46 = vld [vmem:[#allocation7 + $0xb8] sm:$0xff]  ;;  %v179_v54 = vmul.f32 %v115_v50, %v115_v50  ;;  %v119_v8 = vld [vmem:[#allocation7 + $0xe0] sm:$0xff]  ;;  %v121_v14 = vld [vmem:[#allocation7 + $0xf0] sm:$0xff] }
  0x1a   :  { %4079 = vmatmul.msk.f32.gmra.mxu0 %vm484_vm0, %v4753_v36  ;;  %v356_v39 = vadd.f32 %v174_v30, %v173_v29  ;;  %v178_v49 = vmul.f32 %v114_v46, %v114_v46  ;;  %v181_v62 = vmul.f32 %v117_v56, %v117_v56  ;;  %v122_v15 = vld [vmem:[#allocation7 + $0xf8] sm:$0xff]  ;;  %v188_v31 = vmul.f32 %v124_v25, %v124_v25  ;;  %v129_v50 = vld [vmem:[#allocation7 + $0x130] sm:$0xff] }
  0x1b   :  { %336 = vadd.xlane.f32.xlu0 %v335_v42  ;;  %v225_v27 = vadd.f32 %v224_v13, %v167_v61  ;;  %v247_v34 = vadd.f32 %v246_v28, %v170_v11  ;;  %v113_v42 = vld [vmem:[#allocation7 + $0xb0] sm:$0xff]  ;;  %v359_v47 = vadd.f32 %v176_v38, %v175_v37  ;;  %v365_v0 = vadd.f32 %v180_v55, %v179_v54  ;;  %v130_v51 = vld [vmem:[#allocation7 + $0x138] sm:$0xff] }
  0x1c   :  { %4084 = vmatmul.msk.f32.gmra.mxu1 %vm484_vm0, %v4758_v43  ;;  %4088 = vmatmul.msk.f32.gmra.mxu2 %vm484_vm0, %v4763_v44  ;;  %v368_v11 = vadd.f32 %v182_v63, %v181_v62  ;;  %v194_v56 = vmul.f32 %v130_v51, %v130_v51 }
  0x1d   :  { %4092 = vmatmul.msk.f32.gmra.mxu3 %vm484_vm0, %v4768_v45  ;;  %v226_v35 = vadd.f32 %v225_v27, %v169_v10  ;;  %v248_v41 = vadd.f32 %v247_v34, %v172_v20  ;;  %v120_v10 = vld [vmem:[#allocation7 + $0xe8] sm:$0xff]  ;;  %v186_v20 = vmul.f32 %v122_v15, %v122_v15 }
  0x1e   :  { %v184_v13 = vmul.f32 %v120_v10, %v120_v10 }
  0x1f   :  { %339 = vadd.xlane.f32.xlu1 %v338_v48  ;;  %v227_v40 = vadd.f32 %v226_v35, %v171_v19  ;;  %v177_v48 = vmul.f32 %v113_v42, %v113_v42  ;;  %v185_v19 = vmul.f32 %v121_v14, %v121_v14  ;;  %v125_v35 = vld [vmem:[#allocation7 + $0x110] sm:$0xff]  ;;  %v128_v42 = vld [vmem:[#allocation7 + $0x128] sm:$0xff] }
  0x21   :  { %342 = vadd.xlane.f32.xlu2 %v341_v53  ;;  %v228_v52 = vadd.f32 %v227_v40, %v173_v29  ;;  %v249_v53 = vadd.f32 %v248_v41, %v174_v30  ;;  %v362_v59 = vadd.f32 %v178_v49, %v177_v48  ;;  %v187_v30 = vmul.f32 %v123_v23, %v123_v23  ;;  %v127_v41 = vld [vmem:[#allocation7 + $0x120] sm:$0xff] }
  0x22   :  { %4080 = vmatmul.msk.f32.gmra.mxu0 %vm484_vm0, %v4781_v58  ;;  %v374_v32 = vadd.f32 %v186_v20, %v185_v19 }
  0x23   :  { %345 = vadd.xlane.f32.xlu0 %v344_v1  ;;  %v250_v60 = vadd.f32 %v249_v53, %v176_v38  ;;  %v229_v61 = vadd.f32 %v228_v52, %v175_v37  ;;  %v126_v37 = vld [vmem:[#allocation7 + $0x118] sm:$0xff]  ;;  %v377_v38 = vadd.f32 %v188_v31, %v187_v30 }
  0x24   :  { %4085 = vmatmul.msk.f32.gmra.mxu1 %vm484_vm0, %v4786_v2  ;;  %4089 = vmatmul.msk.f32.gmra.mxu2 %vm484_vm0, %v4791_v3  ;;  %v190_v40 = vmul.f32 %v126_v37, %v126_v37 }
  0x25   :  { %4093 = vmatmul.msk.f32.gmra.mxu3 %vm484_vm0, %v4796_v9  ;;  %v230_v1 = vadd.f32 %v229_v61, %v177_v48  ;;  %v251_v7 = vadd.f32 %v250_v60, %v178_v49  ;;  %v191_v48 = vmul.f32 %v127_v41, %v127_v41  ;;  %v192_v49 = vmul.f32 %v128_v42, %v128_v42  ;;  %v137_v41 = vld [vmem:[#allocation7 + $0x170] sm:$0xff]  ;;  %v138_v42 = vld [vmem:[#allocation7 + $0x178] sm:$0xff] }
  0x27   :  { %348 = vadd.xlane.f32.xlu1 %v347_v12  ;;  %v183_v12 = vmul.f32 %v119_v8, %v119_v8  ;;  %v231_v17 = vadd.f32 %v230_v1, %v179_v54  ;;  %v383_v60 = vadd.f32 %v192_v49, %v191_v48  ;;  %v131_v1 = vld [vmem:[#allocation7 + $0x140] sm:$0xff] }
  0x28   :  { %v195_v10 = vmul.f32 %v131_v1, %v131_v1 }
  0x29   :  { %351 = vadd.xlane.f32.xlu2 %v350_v18  ;;  %v252_v18 = vadd.f32 %v251_v7, %v180_v55  ;;  %v371_v27 = vadd.f32 %v184_v13, %v183_v12  ;;  %v232_v29 = vadd.f32 %v231_v17, %v181_v62  ;;  %v193_v55 = vmul.f32 %v129_v50, %v129_v50  ;;  %v132_v7 = vld [vmem:[#allocation7 + $0x148] sm:$0xff] }
  0x2a   :  { %4081 = vmatmul.msk.f32.gmra.mxu0 %vm484_vm0, %v4809_v26  ;;  %v140_v50 = vld [vmem:[#allocation7 + $0x188] sm:$0xff] }
  0x2b   :  { %354 = vadd.xlane.f32.xlu0 %v353_v33  ;;  %v253_v28 = vadd.f32 %v252_v18, %v182_v63  ;;  %v233_v33 = vadd.f32 %v232_v29, %v183_v12  ;;  %v386_v8 = vadd.f32 %v194_v56, %v193_v55  ;;  %v133_v12 = vld [vmem:[#allocation7 + $0x150] sm:$0xff] }
  0x2c   :  { %4094 = vmatmul.msk.f32.vlgmr.msrb.gmra.mxu1 %vm484_vm0, %v4725_v16  ;;  %4114 = vmatmul.msk.f32.vlgmr.msrb.gmra.mxu2 %vm484_vm0, %v4725_v16  ;;  %v197_v25 = vmul.f32 %v133_v12, %v133_v12 }
  0x2d   :  { %4130 = vmatmul.msk.f32.vlgmr.msrb.gmra.mxu3 %vm484_vm0, %v4725_v16  ;;  %v254_v34 = vadd.f32 %v253_v28, %v184_v13  ;;  %v234_v46 = vadd.f32 %v233_v33, %v185_v19  ;;  %v134_v13 = vld [vmem:[#allocation7 + $0x158] sm:$0xff]  ;;  %v135_v19 = vld [vmem:[#allocation7 + $0x160] sm:$0xff] }
  0x2f   :  { %357 = vadd.xlane.f32.xlu1 %v356_v39  ;;  %v189_v39 = vmul.f32 %v125_v35, %v125_v35  ;;  %v235_v53 = vrot.slane %v234_v46, 4 }
  0x31   :  { %360 = vadd.xlane.f32.xlu2 %v359_v47  ;;  %v255_v47 = vadd.f32 %v254_v34, %v186_v20  ;;  %v380_v52 = vadd.f32 %v190_v40, %v189_v39  ;;  %v236_v57 = vadd.f32 %v235_v53, %v234_v46  ;;  %v262_v63 = vadd.f32 %v189_v39, %v187_v30  ;;  %v136_v20 = vld [vmem:[#allocation7 + $0x168] sm:$0xff] }
  0x32   :  { %v200_v33 = vmul.f32 %v136_v20, %v136_v20 }
  0x33   :  { %363 = vadd.xlane.f32.xlu0 %v362_v59  ;;  %v256_v54 = vrot.slane %v255_v47, 4  ;;  %v237_v61 = vrot.slane %v236_v57, 2  ;;  %v263_v17 = vadd.f32 %v262_v63, %v191_v48  ;;  %v202_v48 = vmul.f32 %v138_v42, %v138_v42 }
  0x34   :  { %4095 = vmatmul.msk.f32.gmra.mxu1 %vm484_vm0, %v4753_v36  ;;  %4115 = vmatmul.msk.f32.gmra.mxu2 %vm484_vm0, %v4753_v36 }
  0x35   :  { %4131 = vmatmul.msk.f32.gmra.mxu3 %vm484_vm0, %v4753_v36  ;;  %v257_v59 = vadd.f32 %v256_v54, %v255_v47  ;;  %v238_v14 = vadd.f32 %v237_v61, %v236_v57  ;;  %v264_v30 = vadd.f32 %v263_v17, %v193_v55  ;;  %v201_v47 = vmul.f32 %v137_v41, %v137_v41  ;;  %v141_v55 = vld [vmem:[#allocation7 + $0x190] sm:$0xff] }
  0x37   :  { %366 = vadd.xlane.f32.xlu1 %v365_v0  ;;  %v258_v62 = vrot.slane %v257_v59, 2  ;;  %v283_v0 = vadd.f32 %v190_v40, %v188_v31  ;;  %v239_v28 = vrot.slane %v238_v14, 1  ;;  %v265_v39 = vadd.f32 %v264_v30, %v195_v10 }
  0x38   :  { %v398_v57 = vadd.f32 %v202_v48, %v201_v47 }
  0x39   :  { %369 = vadd.xlane.f32.xlu2 %v368_v11  ;;  %v196_v11 = vmul.f32 %v132_v7, %v132_v7  ;;  %v259_v15 = vadd.f32 %v258_v62, %v257_v59  ;;  %v284_v18 = vadd.f32 %v283_v0, %v192_v49  ;;  %v240_v34 = vadd.f32 %v239_v28, %v238_v14  ;;  %v139_v49 = vld [vmem:[#allocation7 + $0x180] sm:$0xff]  ;;  %v145_v14 = vld [vmem:[#allocation7 + $0x1b0] sm:$0xff] }
  0x3a   :  { %v203_v54 = vmul.f32 %v139_v49, %v139_v49  ;;  %v204_v59 = vmul.f32 %v140_v50, %v140_v50  ;;  %v205_v62 = vmul.f32 %v141_v55, %v141_v55  ;;  %v154_v49 = vld [vmem:[#allocation7 + $0x1f8] sm:$0xff] }
  0x3b   :  { %372 = vadd.xlane.f32.xlu0 %v371_v27  ;;  %v389_v23 = vadd.f32 %v196_v11, %v195_v10  ;;  %v198_v27 = vmul.f32 %v134_v13, %v134_v13  ;;  %v260_v29 = vrot.slane %v259_v15, 1  ;;  %v285_v31 = vadd.f32 %v284_v18, %v194_v56  ;;  %v142_v56 = vld [vmem:[#allocation7 + $0x198] sm:$0xff]  ;;  %v144_v10 = vld [vmem:[#allocation7 + $0x1a8] sm:$0xff] }
  0x3c   :  { %4096 = vmatmul.msk.f32.gmra.mxu1 %vm484_vm0, %v4781_v58  ;;  %4116 = vmatmul.msk.f32.gmra.mxu2 %vm484_vm0, %v4781_v58  ;;  %v206_v63 = vmul.f32 %v142_v56, %v142_v56  ;;  %v401_v0 = vadd.f32 %v204_v59, %v203_v54  ;;  %v208_v13 = vmul.f32 %v144_v10, %v144_v10 }
  0x3d   :  { %4132 = vmatmul.msk.f32.gmra.mxu3 %vm484_vm0, %v4781_v58  ;;  %v261_v35 = vadd.f32 %v260_v29, %v259_v15  ;;  %v392_v37 = vadd.f32 %v198_v27, %v197_v25  ;;  %v286_v40 = vadd.f32 %v285_v31, %v196_v11  ;;  %v146_v15 = vld [vmem:[#allocation7 + $0x1b8] sm:$0xff]  ;;  %v218_v55 = vmul.f32 %v154_v49, %v154_v49 }
  0x3e   :  { %v404_v11 = vadd.f32 %v206_v63, %v205_v62  ;;  %v210_v20 = vmul.f32 %v146_v15, %v146_v15 }
  0x3f   :  { %375 = vadd.xlane.f32.xlu1 %v374_v32  ;;  %v199_v32 = vmul.f32 %v135_v19, %v135_v19  ;;  %v287_v53 = vadd.f32 %v286_v40, %v198_v27  ;;  %v209_v19 = vmul.f32 %v145_v14, %v145_v14  ;;  %v152_v40 = vld [vmem:[#allocation7 + $0x1e8] sm:$0xff] }
  0x41   :  { %378 = vadd.xlane.f32.xlu2 %v377_v38  ;;  %v308_v38 = vrot.slane %v261_v35, 6  ;;  %v395_v46 = vadd.f32 %v200_v33, %v199_v32  ;;  %v288_v61 = vadd.f32 %v287_v53, %v200_v33  ;;  %v149_v33 = vld [vmem:[#allocation7 + $0x1d0] sm:$0xff] }
  0x43   :  { %381 = vadd.xlane.f32.xlu0 %v380_v52  ;;  %v4844_v51 = vsel %vm8308_vm1, %v240_v34, %v308_v38  ;;  %v266_v52 = vadd.f32 %v265_v39, %v197_v25  ;;  %v289_v7 = vadd.f32 %v288_v61, %v202_v48  ;;  %v148_v25 = vld [vmem:[#allocation7 + $0x1c8] sm:$0xff]  ;;  %v150_v34 = vld [vmem:[#allocation7 + $0x1d8] sm:$0xff]  ;;  %v151_v39 = vld [vmem:[#allocation7 + $0x1e0] sm:$0xff]  ;;  %v4632_v61 = vmov 256.0  }
  0x44   :  { %4097 = vmatmul.msk.f32.gmra.mxu1 %vm484_vm0, %v4809_v26  ;;  %4117 = vmatmul.msk.f32.gmra.mxu2 %vm484_vm0, %v4809_v26  ;;  %8315 = vst [vmem:[#allocation16_spill] sm:$0xff] %v4844_v51  ;;  %v212_v31 = vmul.f32 %v148_v25, %v148_v25  ;;  %v214_v38 = vmul.f32 %v150_v34, %v150_v34  ;;  %v153_v48 = vld [vmem:[#allocation7 + $0x1f0] sm:$0xff]  ;;  %4254 = vrcp.f32 %v4632_v61 }
  0x45   :  { %4133 = vmatmul.msk.f32.gmra.mxu3 %vm484_vm0, %v4809_v26  ;;  %v290_v18 = vadd.f32 %v289_v7, %v204_v59 }
  0x47   :  { %384 = vadd.xlane.f32.xlu1 %v383_v60  ;;  %v267_v60 = vadd.f32 %v266_v52, %v199_v32  ;;  %v291_v29 = vadd.f32 %v290_v18, %v206_v63  ;;  %v410_v32 = vadd.f32 %v210_v20, %v209_v19 }
  0x49   :  { %387 = vadd.xlane.f32.xlu2 %v386_v8  ;;  %v268_v1 = vadd.f32 %v267_v60, %v201_v47  ;;  %v143_v8 = vld [vmem:[#allocation7 + $0x1a0] sm:$0xff]  ;;  %v292_v42 = vadd.f32 %v291_v29, %v208_v13  ;;  %v216_v47 = vmul.f32 %v152_v40, %v152_v40 }
  0x4a   :  { %v207_v12 = vmul.f32 %v143_v8, %v143_v8 }
  0x4b   :  { %390 = vadd.xlane.f32.xlu0 %v389_v23  ;;  %v269_v17 = vadd.f32 %v268_v1, %v203_v54  ;;  %v147_v23 = vld [vmem:[#allocation7 + $0x1c0] sm:$0xff]  ;;  %v293_v53 = vadd.f32 %v292_v42, %v210_v20  ;;  %v217_v54 = vmul.f32 %v153_v48, %v153_v48  ;;  %v4633_v1 = vmov 2.0  }
  0x4c   :  { %4098 = vmatmul.msk.f32.gmra.mxu1 %vm484_vm0, %v4689_v4  ;;  %4118 = vmatmul.msk.f32.gmra.mxu2 %vm484_vm0, %v4689_v4  ;;  %v407_v27 = vadd.f32 %v208_v13, %v207_v12  ;;  %v211_v30 = vmul.f32 %v147_v23, %v147_v23  ;;  %4256 = vrcp.f32 %v4633_v1 }
  0x4d   :  { %4134 = vmatmul.msk.f32.gmra.mxu3 %vm484_vm0, %v4689_v4  ;;  %v270_v28 = vadd.f32 %v269_v17, %v205_v62  ;;  %v422_v60 = vadd.f32 %v218_v55, %v217_v54 }
  0x4e   :  { %v413_v35 = vadd.f32 %v212_v31, %v211_v30 }
  0x4f   :  { %393 = vadd.xlane.f32.xlu1 %v392_v37  ;;  %v213_v37 = vmul.f32 %v149_v33, %v149_v33  ;;  %v271_v41 = vadd.f32 %v270_v28, %v207_v12 }
  0x51   :  { %396 = vadd.xlane.f32.xlu2 %v395_v46  ;;  %v215_v46 = vmul.f32 %v151_v39, %v151_v39  ;;  %v416_v50 = vadd.f32 %v214_v38, %v213_v37  ;;  %v272_v52 = vadd.f32 %v271_v41, %v209_v19 }
  0x53   :  { %399 = vadd.xlane.f32.xlu0 %v398_v57  ;;  %v273_v56 = vadd.f32 %v272_v52, %v211_v30  ;;  %v294_v57 = vadd.f32 %v293_v53, %v212_v31  ;;  %v419_v59 = vadd.f32 %v216_v47, %v215_v46 }
  0x54   :  { %4099 = vmatmul.msk.f32.gmra.mxu1 %vm484_vm0, %v4730_v21  ;;  %4119 = vmatmul.msk.f32.gmra.mxu2 %vm484_vm0, %v4730_v21 }
  0x55   :  { %4135 = vmatmul.msk.f32.gmra.mxu3 %vm484_vm0, %v4730_v21  ;;  %v274_v62 = vadd.f32 %v273_v56, %v213_v37  ;;  %v295_v63 = vadd.f32 %v294_v57, %v214_v38 }
  0x57   :  { %402 = vadd.xlane.f32.xlu1 %v401_v0  ;;  %v4255_v0 = vpop.eup %4254  ;;  %v275_v7 = vadd.f32 %v274_v62, %v215_v46  ;;  %v296_v8 = vadd.f32 %v295_v63, %v216_v47 }
  0x58   :  { %v4257_v15 = vpop.eup %4256  ;;  %vm71_vm2 = vweird.f32 %v4255_v0 }
  0x59   :  { %405 = vadd.xlane.f32.xlu2 %v404_v11  ;;  %v276_v10 = vadd.f32 %v275_v7, %v217_v54  ;;  %v67_v11 = vmul.f32 256.0, %v4255_v0  ;;  %v297_v12 = vadd.f32 %v296_v8, %v218_v55  ;;  %v80_v20 = vmul.f32 2.0, %v4257_v15 }
  0x5a   :  { %vm84_vm3 = vweird.f32 %v4257_v15 }
  0x5b   :  { %408 = vadd.xlane.f32.xlu0 %v407_v27  ;;  %v277_v13 = vrot.slane %v276_v10, 4  ;;  %v298_v14 = vrot.slane %v297_v12, 4  ;;  %v68_v17 = vsub.f32 1.0, %v67_v11  ;;  %v81_v30 = vsub.f32 1.0, %v80_v20 }
  0x5c   :  { %4100 = vmatmul.msk.f32.gmra.mxu1 %vm484_vm0, %v4758_v43  ;;  %4120 = vmatmul.msk.f32.gmra.mxu2 %vm484_vm0, %v4758_v43 }
  0x5d   :  { %4136 = vmatmul.msk.f32.gmra.mxu3 %vm484_vm0, %v4758_v43  ;;  %v299_v18 = vadd.f32 %v298_v14, %v297_v12  ;;  %v69_v27 = vmul.f32 %v4255_v0, %v68_v17  ;;  %v82_v37 = vmul.f32 %v4257_v15, %v81_v30 }
  0x5f   :  { %411 = vadd.xlane.f32.xlu1 %v410_v32  ;;  %v300_v23 = vrot.slane %v299_v18, 2  ;;  %v70_v32 = vadd.f32 %v4255_v0, %v69_v27  ;;  %v83_v42 = vadd.f32 %v4257_v15, %v82_v37 }
  0x61   :  { %414 = vadd.xlane.f32.xlu2 %v413_v35  ;;  %v301_v28 = vadd.f32 %v300_v23, %v299_v18  ;;  %v4882_v39 = vsel %vm71_vm2, %v4255_v0, %v70_v32  ;;  %v4895_v49 = vsel %vm84_vm3, %v4257_v15, %v83_v42 }
  0x62   :  { %8316 = vst [vmem:[#allocation17_spill] sm:$0xff] %v4882_v39 }
  0x63   :  { %417 = vadd.xlane.f32.xlu0 %v416_v50  ;;  %v302_v31 = vrot.slane %v301_v28, 1 }
  0x64   :  { %4101 = vmatmul.msk.f32.gmra.mxu1 %vm484_vm0, %v4786_v2  ;;  %4121 = vmatmul.msk.f32.gmra.mxu2 %vm484_vm0, %v4786_v2 }
  0x65   :  { %4137 = vmatmul.msk.f32.gmra.mxu3 %vm484_vm0, %v4786_v2  ;;  %v303_v35 = vadd.f32 %v302_v31, %v301_v28 }
  0x67   :  { %420 = vadd.xlane.f32.xlu1 %v419_v59  ;;  %v309_v38 = vrot.slane %v303_v35, 6 }
  0x69   :  { %423 = vadd.xlane.f32.xlu2 %v422_v60 }
  0x6c   :  { %4102 = vmatmul.msk.f32.gmra.mxu1 %vm484_vm0, %v4694_v5  ;;  %4122 = vmatmul.msk.f32.gmra.mxu2 %vm484_vm0, %v4694_v5 }
  0x6d   :  { %4138 = vmatmul.msk.f32.gmra.mxu3 %vm484_vm0, %v4694_v5  ;;  %v278_v5 = vadd.f32 %v277_v13, %v276_v10 }
  0x6f   :  { %v279_v19 = vrot.slane %v278_v5, 2 }
  0x71   :  { %v280_v25 = vadd.f32 %v279_v19, %v278_v5 }
  0x73   :  { %v281_v29 = vrot.slane %v280_v25, 1 }
  0x74   :  { %4103 = vmatmul.msk.f32.gmra.mxu1 %vm484_vm0, %v4735_v22  ;;  %4123 = vmatmul.msk.f32.gmra.mxu2 %vm484_vm0, %v4735_v22 }
  0x75   :  { %4139 = vmatmul.msk.f32.gmra.mxu3 %vm484_vm0, %v4735_v22  ;;  %v282_v34 = vadd.f32 %v281_v29, %v280_v25 }
  0x77   :  { %v4885_v41 = vsel %vm8308_vm1, %v282_v34, %v309_v38 }
  0x78   :  { %8317 = vst [vmem:[#allocation18_spill] sm:$0xff] %v4885_v41 }
  0x7c   :  { %4104 = vmatmul.msk.f32.gmra.mxu1 %vm484_vm0, %v4763_v44  ;;  %4124 = vmatmul.msk.f32.gmra.mxu2 %vm484_vm0, %v4763_v44 }
  0x7d   :  { %4140 = vmatmul.msk.f32.gmra.mxu3 %vm484_vm0, %v4763_v44 }
  0x7e   :  { %v59_v33 = vpop.xlane.xlu0 %58 }
  0x7f   :  { %v74_v46 = vmul.f32 %v4882_v39, %v59_v33 }
  0x82   :  { %v56_v40 = vpop.xlane.xlu1 %55 }
  0x83   :  { %v73_v52 = vmul.f32 %v4882_v39, %v56_v40 }
  0x84   :  { %4105 = vmatmul.msk.f32.gmra.mxu1 %vm484_vm0, %v4791_v3  ;;  %4125 = vmatmul.msk.f32.gmra.mxu2 %vm484_vm0, %v4791_v3  ;;  %v4995_v33 = vpop.xlane.xlu2 %330 }
  0x85   :  { %4141 = vmatmul.msk.f32.gmra.mxu3 %vm484_vm0, %v4791_v3 }
  0x86   :  { %v65_v47 = vpop.xlane.xlu0 %64 }
  0x87   :  { %v76_v48 = vmul.f32 %v4882_v39, %v65_v47 }
  0x89   :  { %v78_v50 = vadd.f32 %v76_v48, %v74_v46  ;;  %v4898_v53 = vpop.f32.mrf.mxu1 }
  0x8a   :  { %8318 = vst [vmem:[#allocation19_spill] sm:$0xff] %v4898_v53  ;;  %v62_v54 = vpop.xlane.xlu1 %61 }
  0x8b   :  { %v87_v55 = vmul.f32 %v4895_v49, %v78_v50  ;;  %v75_v56 = vmul.f32 %v4882_v39, %v62_v54 }
  0x8c   :  { %4106 = vmatmul.msk.f32.gmra.mxu1 %vm484_vm0, %v4699_v6  ;;  %4126 = vmatmul.msk.f32.gmra.mxu2 %vm484_vm0, %v4699_v6  ;;  %v5021_v54 = vpop.xlane.xlu2 %333 }
  0x8d   :  { %90 = vst.msk [vmem:[#allocation6 + $0x8] sm:$0xff] %vm88_vm4, %v87_v55  ;;  %4142 = vmatmul.msk.f32.gmra.mxu3 %vm484_vm0, %v4699_v6  ;;  %v77_v57 = vadd.f32 %v75_v56, %v73_v52 }
  0x8e   :  { %v5003_v40 = vpop.xlane.xlu0 %336 }
  0x8f   :  { %v4908_v59 = vpop.f32.mrf.mxu2  ;;  %v86_v60 = vmul.f32 %v4895_v49, %v77_v57  ;;  %v4937_v8 = vpop.f32.mrf.mxu0 }
  0x90   :  { %8319 = vst [vmem:[#allocation20_spill] sm:$0xff] %v4908_v59  ;;  %v4911_v61 = vpop.f32.mrf.mxu3  ;;  %v927_v12 = vmul.f32 %v4937_v8, %v4937_v8 }
  0x91   :  { %8320 = vst [vmem:[#allocation21_spill] sm:$0xff] %v4911_v61  ;;  %v4913_v62 = vpop.f32.mrf.mxu1 }
  0x92   :  { %89 = vst.msk [vmem:[#allocation6] sm:$0xff] %vm88_vm4, %v86_v60  ;;  %v5023_v57 = vpop.xlane.xlu1 %339 }
  0x93   :  { %8321 = vst [vmem:[#allocation22_spill] sm:$0xff] %v4913_v62 }
  0x94   :  { %4107 = vmatmul.msk.f32.gmra.mxu1 %vm484_vm0, %v4740_v24  ;;  %4127 = vmatmul.msk.f32.gmra.mxu2 %vm484_vm0, %v4740_v24  ;;  %v1159_v63 = vld [vmem:[#allocation6 + $0x8] sm:$0xff]  ;;  %8326 = vst [vmem:[#allocation27_spill] sm:$0xff] %v4937_v8 }
  0x95   :  { %4143 = vmatmul.msk.f32.gmra.mxu3 %vm484_vm0, %v4740_v24  ;;  %1174 = vmatpush.msrb.mxu0 %v1159_v63 }
  0x97   :  { %v4921_v6 = vpop.f32.mrf.mxu2  ;;  %v4959_v14 = vpop.f32.mrf.mxu0 }
  0x98   :  { %8322 = vst [vmem:[#allocation23_spill] sm:$0xff] %v4921_v6  ;;  %v4923_v0 = vpop.f32.mrf.mxu3  ;;  %v929_v18 = vmul.f32 %v4959_v14, %v4959_v14 }
  0x99   :  { %8323 = vst [vmem:[#allocation24_spill] sm:$0xff] %v4923_v0  ;;  %v1158_v1 = vld [vmem:[#allocation6] sm:$0xff]  ;;  %v4925_v7 = vpop.f32.mrf.mxu1 }
  0x9a   :  { %8324 = vst [vmem:[#allocation25_spill] sm:$0xff] %v4925_v7  ;;  %1175 = vmatpush.msrb.mxu0 %v1158_v1 }
  0x9b   :  { %4146 = vmatmul.msk.f32.vlgmr.msrb.gmra.mxu0 %vm484_vm0, %v4725_v16  ;;  %8332 = vst [vmem:[#allocation33_spill] sm:$0xff] %v4959_v14 }
  0x9c   :  { %4108 = vmatmul.msk.f32.gmra.mxu1 %vm484_vm0, %v4768_v45  ;;  %4128 = vmatmul.msk.f32.gmra.mxu2 %vm484_vm0, %v4768_v45 }
  0x9d   :  { %4144 = vmatmul.msk.f32.gmra.mxu3 %vm484_vm0, %v4768_v45 }
  0x9f   :  { %v4935_v24 = vpop.f32.mrf.mxu2  ;;  %v4981_v23 = vpop.f32.mrf.mxu0 }
  0xa0   :  { %8325 = vst [vmem:[#allocation26_spill] sm:$0xff] %v4935_v24  ;;  %v4939_v10 = vpop.f32.mrf.mxu3  ;;  %v931_v30 = vmul.f32 %v4981_v23, %v4981_v23 }
  0xa1   :  { %8327 = vst [vmem:[#allocation28_spill] sm:$0xff] %v4939_v10  ;;  %v4941_v11 = vpop.f32.mrf.mxu1 }
  0xa2   :  { %8328 = vst [vmem:[#allocation29_spill] sm:$0xff] %v4941_v11 }
  0xa3   :  { %4147 = vmatmul.msk.f32.gmra.mxu0 %vm484_vm0, %v4753_v36  ;;  %8336 = vst [vmem:[#allocation37_spill] sm:$0xff] %v4981_v23 }
  0xa4   :  { %4109 = vmatmul.msk.f32.gmra.mxu1 %vm484_vm0, %v4796_v9  ;;  %4129 = vmatmul.msk.f32.gmra.mxu2 %vm484_vm0, %v4796_v9 }
  0xa5   :  { %4145 = vmatmul.msk.f32.gmra.mxu3 %vm484_vm0, %v4796_v9 }
  0xa7   :  { %v4951_v16 = vpop.f32.mrf.mxu2  ;;  %v5001_v38 = vpop.f32.mrf.mxu0 }
  0xa8   :  { %8329 = vst [vmem:[#allocation30_spill] sm:$0xff] %v4951_v16  ;;  %v4953_v45 = vpop.f32.mrf.mxu3  ;;  %v933_v48 = vmul.f32 %v5001_v38, %v5001_v38 }
  0xa9   :  { %8330 = vst [vmem:[#allocation31_spill] sm:$0xff] %v4953_v45  ;;  %v4957_v13 = vpop.f32.mrf.mxu1 }
  0xaa   :  { %8331 = vst [vmem:[#allocation32_spill] sm:$0xff] %v4957_v13  ;;  %v928_v36 = vmul.f32 %v4957_v13, %v4957_v13 }
  0xab   :  { %4148 = vmatmul.msk.f32.gmra.mxu0 %vm484_vm0, %v4781_v58  ;;  %8340 = vst [vmem:[#allocation41_spill] sm:$0xff] %v5001_v38 }
  0xac   :  { %v991_v15 = vadd.f32 %v928_v36, %v927_v12  ;;  %v5031_v12 = vpop.xlane.xlu0 %345 }
  0xae   :  { %992 = vadd.xlane.f32.xlu0 %v991_v15  ;;  %v935_v15 = vmul.f32 %v4898_v53, %v4898_v53 }
  0xaf   :  { %v4965_v9 = vpop.f32.mrf.mxu2 }
  0xb0   :  { %8333 = vst [vmem:[#allocation34_spill] sm:$0xff] %v4965_v9  ;;  %v4967_v5 = vpop.f32.mrf.mxu3  ;;  %v959_v17 = vmul.f32 %v4965_v9, %v4965_v9 }
  0xb1   :  { %8334 = vst [vmem:[#allocation35_spill] sm:$0xff] %v4967_v5  ;;  %v4973_v19 = vpop.f32.mrf.mxu1  ;;  %v960_v20 = vmul.f32 %v4967_v5, %v4967_v5 }
  0xb2   :  { %8335 = vst [vmem:[#allocation36_spill] sm:$0xff] %v4973_v19  ;;  %v930_v58 = vmul.f32 %v4973_v19, %v4973_v19 }
  0xb3   :  { %4149 = vmatmul.msk.f32.gmra.mxu0 %vm484_vm0, %v4809_v26  ;;  %v1039_v25 = vadd.f32 %v960_v20, %v959_v17 }
  0xb4   :  { %v994_v27 = vadd.f32 %v930_v58, %v929_v18  ;;  %v5043_v58 = vpop.xlane.xlu2 %342 }
  0xb6   :  { %1040 = vadd.xlane.f32.xlu0 %v1039_v25  ;;  %995 = vadd.xlane.f32.xlu1 %v994_v27  ;;  %v5047_v27 = vpop.xlane.xlu1 %348 }
  0xb7   :  { %v4983_v28 = vpop.f32.mrf.mxu2 }
  0xb8   :  { %8337 = vst [vmem:[#allocation38_spill] sm:$0xff] %v4983_v28  ;;  %v4985_v29 = vpop.f32.mrf.mxu3  ;;  %v961_v31 = vmul.f32 %v4983_v28, %v4983_v28 }
  0xb9   :  { %8338 = vst [vmem:[#allocation39_spill] sm:$0xff] %v4985_v29  ;;  %v4991_v32 = vpop.f32.mrf.mxu1  ;;  %v962_v26 = vmul.f32 %v4985_v29, %v4985_v29 }
  0xba   :  { %8339 = vst [vmem:[#allocation40_spill] sm:$0xff] %v4991_v32  ;;  %v932_v34 = vmul.f32 %v4991_v32, %v4991_v32 }
  0xbb   :  { %4150 = vmatmul.msk.f32.gmra.mxu0 %vm484_vm0, %v4689_v4  ;;  %v1042_v37 = vadd.f32 %v962_v26, %v961_v31 }
  0xbc   :  { %v997_v35 = vadd.f32 %v932_v34, %v931_v30  ;;  %v937_v34 = vmul.f32 %v4913_v62, %v4913_v62 }
  0xbe   :  { %998 = vadd.xlane.f32.xlu2 %v997_v35  ;;  %1043 = vadd.xlane.f32.xlu1 %v1042_v37  ;;  %v5063_v37 = vpop.xlane.xlu0 %354 }
  0xbf   :  { %v5005_v42 = vpop.f32.mrf.mxu2 }
  0xc0   :  { %8341 = vst [vmem:[#allocation42_spill] sm:$0xff] %v5005_v42  ;;  %v5007_v46 = vpop.f32.mrf.mxu3  ;;  %v963_v47 = vmul.f32 %v5005_v42, %v5005_v42 }
  0xc1   :  { %8342 = vst [vmem:[#allocation43_spill] sm:$0xff] %v5007_v46  ;;  %v5013_v50 = vpop.f32.mrf.mxu1  ;;  %v964_v4 = vmul.f32 %v5007_v46, %v5007_v46 }
  0xc2   :  { %8343 = vst [vmem:[#allocation44_spill] sm:$0xff] %v5013_v50  ;;  %v934_v52 = vmul.f32 %v5013_v50, %v5013_v50 }
  0xc3   :  { %4151 = vmatmul.msk.f32.gmra.mxu0 %vm484_vm0, %v4730_v21  ;;  %v1045_v55 = vadd.f32 %v964_v4, %v963_v47 }
  0xc4   :  { %v1000_v56 = vadd.f32 %v934_v52, %v933_v48  ;;  %v5067_v52 = vpop.xlane.xlu2 %351 }
  0xc6   :  { %1046 = vadd.xlane.f32.xlu2 %v1045_v55  ;;  %1001 = vadd.xlane.f32.xlu0 %v1000_v56 }
  0xc7   :  { %v5025_v60 = vpop.f32.mrf.mxu2 }
  0xc8   :  { %8344 = vst [vmem:[#allocation45_spill] sm:$0xff] %v5025_v60  ;;  %v5027_v63 = vpop.f32.mrf.mxu3  ;;  %v965_v1 = vmul.f32 %v5025_v60, %v5025_v60 }
  0xc9   :  { %8345 = vst [vmem:[#allocation46_spill] sm:$0xff] %v5027_v63  ;;  %v5033_v36 = vpop.f32.mrf.mxu1  ;;  %v966_v21 = vmul.f32 %v5027_v63, %v5027_v63 }
  0xca   :  { %8346 = vst [vmem:[#allocation47_spill] sm:$0xff] %v5033_v36  ;;  %v936_v17 = vmul.f32 %v5033_v36, %v5033_v36 }
  0xcb   :  { %4152 = vmatmul.msk.f32.gmra.mxu0 %vm484_vm0, %v4758_v43  ;;  %v1048_v18 = vadd.f32 %v966_v21, %v965_v1  ;;  %v5077_v21 = vpop.xlane.xlu1 %357 }
  0xcc   :  { %v1003_v20 = vadd.f32 %v936_v17, %v935_v15  ;;  %v939_v15 = vmul.f32 %v4925_v7, %v4925_v7  ;;  %v5099_v41 = vpop.xlane.xlu2 %360 }
  0xce   :  { %1049 = vadd.xlane.f32.xlu0 %v1048_v18  ;;  %1004 = vadd.xlane.f32.xlu1 %v1003_v20  ;;  %v4556_v18 = vld [vmem:[%s8079_s2 + $0x40] sm:$0xff] }
  0xcf   :  { %v5045_v25 = vpop.f32.mrf.mxu2 }
  0xd0   :  { %8347 = vst [vmem:[#allocation48_spill] sm:$0xff] %v5045_v25  ;;  %v5049_v30 = vpop.f32.mrf.mxu3  ;;  %v967_v31 = vmul.f32 %v5045_v25, %v5045_v25 }
  0xd1   :  { %8348 = vst [vmem:[#allocation49_spill] sm:$0xff] %v5049_v30  ;;  %v5053_v26 = vpop.f32.mrf.mxu1  ;;  %v968_v43 = vmul.f32 %v5049_v30, %v5049_v30 }
  0xd2   :  { %8349 = vst [vmem:[#allocation50_spill] sm:$0xff] %v5053_v26  ;;  %v938_v35 = vmul.f32 %v5053_v26, %v5053_v26 }
  0xd3   :  { %4153 = vmatmul.msk.f32.gmra.mxu0 %vm484_vm0, %v4786_v2  ;;  %v1051_v48 = vadd.f32 %v968_v43, %v967_v31  ;;  %v5087_v43 = vpop.xlane.xlu0 %363 }
  0xd4   :  { %v1006_v47 = vadd.f32 %v938_v35, %v937_v34 }
  0xd6   :  { %1007 = vadd.xlane.f32.xlu2 %v1006_v47  ;;  %1052 = vadd.xlane.f32.xlu1 %v1051_v48 }
  0xd7   :  { %v5065_v4 = vpop.f32.mrf.mxu2 }
  0xd8   :  { %8350 = vst [vmem:[#allocation51_spill] sm:$0xff] %v5065_v4  ;;  %v5069_v55 = vpop.f32.mrf.mxu3  ;;  %v969_v56 = vmul.f32 %v5065_v4, %v5065_v4 }
  0xd9   :  { %8351 = vst [vmem:[#allocation52_spill] sm:$0xff] %v5069_v55  ;;  %v5073_v1 = vpop.f32.mrf.mxu1  ;;  %v970_v2 = vmul.f32 %v5069_v55, %v5069_v55 }
  0xda   :  { %8352 = vst [vmem:[#allocation53_spill] sm:$0xff] %v5073_v1  ;;  %v940_v17 = vmul.f32 %v5073_v1, %v5073_v1 }
  0xdb   :  { %4154 = vmatmul.msk.f32.gmra.mxu0 %vm484_vm0, %v4556_v18  ;;  %v1054_v20 = vadd.f32 %v970_v2, %v969_v56  ;;  %v941_v56 = vmul.f32 %v4941_v11, %v4941_v11 }
  0xdc   :  { %v1009_v31 = vadd.f32 %v940_v17, %v939_v15  ;;  %v5107_v15 = vpop.xlane.xlu1 %366 }
  0xdd   :  { %8356 = vst [vmem:[#allocation57_spill] sm:$0xff] %v5107_v15 }
  0xde   :  { %1055 = vadd.xlane.f32.xlu2 %v1054_v20  ;;  %1010 = vadd.xlane.f32.xlu0 %v1009_v31  ;;  %v5109_v20 = vpop.xlane.xlu0 %372 }
  0xdf   :  { %v5089_v34 = vpop.f32.mrf.mxu2  ;;  %8357 = vst [vmem:[#allocation58_spill] sm:$0xff] %v5109_v20 }
  0xe0   :  { %8353 = vst [vmem:[#allocation54_spill] sm:$0xff] %v5089_v34  ;;  %v5091_v35 = vpop.f32.mrf.mxu3  ;;  %v971_v47 = vmul.f32 %v5089_v34, %v5089_v34 }
  0xe1   :  { %8354 = vst [vmem:[#allocation55_spill] sm:$0xff] %v5091_v35  ;;  %v5095_v48 = vpop.f32.mrf.mxu1  ;;  %v972_v51 = vmul.f32 %v5091_v35, %v5091_v35 }
  0xe2   :  { %8355 = vst [vmem:[#allocation56_spill] sm:$0xff] %v5095_v48  ;;  %v942_v2 = vmul.f32 %v5095_v48, %v5095_v48 }
  0xe3   :  { %4155 = vmatmul.msk.f32.gmra.mxu0 %vm484_vm0, %v4735_v22  ;;  %v1057_v17 = vadd.f32 %v972_v51, %v971_v47  ;;  %v943_v51 = vmul.f32 %v4908_v59, %v4908_v59 }
  0xe4   :  { %v1012_v18 = vadd.f32 %v942_v2, %v941_v56  ;;  %v5127_v56 = vpop.xlane.xlu2 %369 }
  0xe5   :  { %8361 = vst [vmem:[#allocation62_spill] sm:$0xff] %v5127_v56 }
  0xe6   :  { %1058 = vadd.xlane.f32.xlu0 %v1057_v17  ;;  %1013 = vadd.xlane.f32.xlu1 %v1012_v18  ;;  %v5129_v18 = vpop.xlane.xlu1 %375  ;;  %v5137_v48 = vpop.xlane.xlu0 %381 }
  0xe7   :  { %v5111_v31 = vpop.f32.mrf.mxu2  ;;  %8362 = vst [vmem:[#allocation63_spill] sm:$0xff] %v5129_v18 }
  0xe8   :  { %8358 = vst [vmem:[#allocation59_spill] sm:$0xff] %v5111_v31  ;;  %v5113_v35 = vpop.f32.mrf.mxu3  ;;  %v973_v11 = vmul.f32 %v5111_v31, %v5111_v31 }
  0xe9   :  { %8359 = vst [vmem:[#allocation60_spill] sm:$0xff] %v5113_v35  ;;  %v5117_v34 = vpop.f32.mrf.mxu1  ;;  %v974_v22 = vmul.f32 %v5113_v35, %v5113_v35 }
  0xea   :  { %8360 = vst [vmem:[#allocation61_spill] sm:$0xff] %v5117_v34  ;;  %v944_v47 = vmul.f32 %v5117_v34, %v5117_v34 }
  0xeb   :  { %4156 = vmatmul.msk.f32.gmra.mxu0 %vm484_vm0, %v4763_v44  ;;  %v1060_v17 = vadd.f32 %v974_v22, %v973_v11  ;;  %v945_v11 = vmul.f32 %v4921_v6, %v4921_v6 }
  0xec   :  { %v1015_v2 = vadd.f32 %v944_v47, %v943_v51 }
  0xee   :  { %1016 = vadd.xlane.f32.xlu2 %v1015_v2  ;;  %1061 = vadd.xlane.f32.xlu1 %v1060_v17  ;;  %v5149_v2 = vpop.xlane.xlu2 %378 }
  0xef   :  { %v5131_v31 = vpop.f32.mrf.mxu2 }
  0xf0   :  { %8363 = vst [vmem:[#allocation64_spill] sm:$0xff] %v5131_v31  ;;  %v5133_v35 = vpop.f32.mrf.mxu3  ;;  %v975_v59 = vmul.f32 %v5131_v31, %v5131_v31  ;;  %v5153_v31 = vpop.xlane.xlu1 %384 }
  0xf1   :  { %8364 = vst [vmem:[#allocation65_spill] sm:$0xff] %v5133_v35  ;;  %v5139_v34 = vpop.f32.mrf.mxu1  ;;  %v976_v44 = vmul.f32 %v5133_v35, %v5133_v35 }
  0xf2   :  { %8365 = vst [vmem:[#allocation66_spill] sm:$0xff] %v5139_v34  ;;  %v946_v22 = vmul.f32 %v5139_v34, %v5139_v34 }
  0xf3   :  { %4157 = vmatmul.msk.f32.gmra.mxu0 %vm484_vm0, %v4791_v3  ;;  %v1063_v51 = vadd.f32 %v976_v44, %v975_v59  ;;  %v947_v59 = vmul.f32 %v4935_v24, %v4935_v24 }
  0xf4   :  { %v1018_v47 = vadd.f32 %v946_v22, %v945_v11  ;;  %v4557_v11 = vld [vmem:[%s8079_s2 + $0x60] sm:$0xff]  ;;  %v5171_v22 = vpop.xlane.xlu0 %390 }
  0xf6   :  { %1064 = vadd.xlane.f32.xlu2 %v1063_v51  ;;  %1019 = vadd.xlane.f32.xlu0 %v1018_v47 }
  0xf7   :  { %v5151_v17 = vpop.f32.mrf.mxu2 }
  0xf8   :  { %8366 = vst [vmem:[#allocation67_spill] sm:$0xff] %v5151_v17  ;;  %v5155_v35 = vpop.f32.mrf.mxu3  ;;  %v977_v6 = vmul.f32 %v5151_v17, %v5151_v17  ;;  %v5185_v7 = vpop.xlane.xlu1 %393 }
  0xf9   :  { %8367 = vst [vmem:[#allocation68_spill] sm:$0xff] %v5155_v35  ;;  %v5159_v1 = vpop.f32.mrf.mxu1  ;;  %v978_v3 = vmul.f32 %v5155_v35, %v5155_v35  ;;  %v5175_v35 = vpop.xlane.xlu2 %387 }
  0xfa   :  { %8368 = vst [vmem:[#allocation69_spill] sm:$0xff] %v5159_v1  ;;  %v948_v44 = vmul.f32 %v5159_v1, %v5159_v1 }
  0xfb   :  { %4158 = vmatmul.msk.f32.gmra.mxu0 %vm484_vm0, %v4557_v11  ;;  %v1066_v51 = vadd.f32 %v978_v3, %v977_v6  ;;  %v949_v6 = vmul.f32 %v4951_v16, %v4951_v16 }
  0xfc   :  { %v1021_v47 = vadd.f32 %v948_v44, %v947_v59  ;;  %v4558_v59 = vld [vmem:[%s8079_s2 + $0x68] sm:$0xff] }
  0xfe   :  { %1067 = vadd.xlane.f32.xlu0 %v1066_v51  ;;  %1022 = vadd.xlane.f32.xlu1 %v1021_v47  ;;  %v5195_v47 = vpop.xlane.xlu0 %399 }
  0xff   :  { %v5173_v17 = vpop.f32.mrf.mxu2 }
 0x100   :  { %8369 = vst [vmem:[#allocation70_spill] sm:$0xff] %v5173_v17  ;;  %v5177_v24 = vpop.f32.mrf.mxu3  ;;  %v979_v1 = vmul.f32 %v5173_v17, %v5173_v17 }
 0x101   :  { %8370 = vst [vmem:[#allocation71_spill] sm:$0xff] %v5177_v24  ;;  %v5181_v34 = vpop.f32.mrf.mxu1  ;;  %v980_v11 = vmul.f32 %v5177_v24, %v5177_v24  ;;  %v5207_v4 = vpop.xlane.xlu2 %396 }
 0x102   :  { %8371 = vst [vmem:[#allocation72_spill] sm:$0xff] %v5181_v34  ;;  %v950_v3 = vmul.f32 %v5181_v34, %v5181_v34 }
 0x103   :  { %4159 = vmatmul.msk.f32.gmra.mxu0 %vm484_vm0, %v4558_v59  ;;  %v1069_v51 = vadd.f32 %v980_v11, %v979_v1  ;;  %v951_v1 = vmul.f32 %v4911_v61, %v4911_v61 }
 0x104   :  { %v1024_v44 = vadd.f32 %v950_v3, %v949_v6  ;;  %v4559_v6 = vld [vmem:[%s8079_s2 + $0x70] sm:$0xff]  ;;  %v5217_v3 = vpop.xlane.xlu1 %402 }
 0x106   :  { %1025 = vadd.xlane.f32.xlu2 %v1024_v44  ;;  %1070 = vadd.xlane.f32.xlu1 %v1069_v51  ;;  %v5219_v51 = vpop.xlane.xlu0 %408 }
 0x107   :  { %v5197_v24 = vpop.f32.mrf.mxu2 }
 0x108   :  { %8372 = vst [vmem:[#allocation73_spill] sm:$0xff] %v5197_v24  ;;  %v5199_v17 = vpop.f32.mrf.mxu3  ;;  %v981_v16 = vmul.f32 %v5197_v24, %v5197_v24 }
 0x109   :  { %8373 = vst [vmem:[#allocation74_spill] sm:$0xff] %v5199_v17  ;;  %v5203_v34 = vpop.f32.mrf.mxu1  ;;  %v982_v55 = vmul.f32 %v5199_v17, %v5199_v17 }
 0x10a   :  { %8374 = vst [vmem:[#allocation75_spill] sm:$0xff] %v5203_v34  ;;  %v952_v11 = vmul.f32 %v5203_v34, %v5203_v34 }
 0x10b   :  { %4160 = vmatmul.msk.f32.gmra.mxu0 %vm484_vm0, %v4559_v6  ;;  %v1072_v59 = vadd.f32 %v982_v55, %v981_v16  ;;  %v953_v16 = vmul.f32 %v4923_v0, %v4923_v0 }
 0x10c   :  { %v1027_v44 = vadd.f32 %v952_v11, %v951_v1  ;;  %v4560_v1 = vld [vmem:[%s8079_s2 + $0x78] sm:$0xff] }
 0x10e   :  { %1073 = vadd.xlane.f32.xlu2 %v1072_v59  ;;  %1028 = vadd.xlane.f32.xlu0 %v1027_v44  ;;  %v5239_v59 = vpop.xlane.xlu2 %405  ;;  %v5251_v62 = vpop.xlane.xlu0 %417 }
 0x10f   :  { %v5221_v17 = vpop.f32.mrf.mxu2  ;;  %8381 = vst [vmem:[#allocation82_spill] sm:$0xff] %v5251_v62 }
 0x110   :  { %8375 = vst [vmem:[#allocation76_spill] sm:$0xff] %v5221_v17  ;;  %v5223_v61 = vpop.f32.mrf.mxu3  ;;  %v983_v34 = vmul.f32 %v5221_v17, %v5221_v17  ;;  %v5241_v17 = vpop.xlane.xlu1 %411 }
 0x111   :  { %8376 = vst [vmem:[#allocation77_spill] sm:$0xff] %v5223_v61  ;;  %v5227_v24 = vpop.f32.mrf.mxu1  ;;  %v984_v6 = vmul.f32 %v5223_v61, %v5223_v61 }
 0x112   :  { %8377 = vst [vmem:[#allocation78_spill] sm:$0xff] %v5227_v24  ;;  %v954_v55 = vmul.f32 %v5227_v24, %v5227_v24 }
 0x113   :  { %4161 = vmatmul.msk.f32.gmra.mxu0 %vm484_vm0, %v4560_v1  ;;  %v1075_v11 = vadd.f32 %v984_v6, %v983_v34  ;;  %8378 = vst [vmem:[#allocation79_spill] sm:$0xff] %v5241_v17  ;;  %v955_v6 = vmul.f32 %v4939_v10, %v4939_v10 }
 0x114   :  { %v1030_v44 = vadd.f32 %v954_v55, %v953_v16 }
 0x115   :  { %1076 = vadd.xlane.f32.xlu1 %v1075_v11 }
 0x116   :  { %1031 = vadd.xlane.f32.xlu2 %v1030_v44  ;;  %v5261_v44 = vpop.xlane.xlu2 %414 }
 0x117   :  { %v5243_v61 = vpop.f32.mrf.mxu2  ;;  %8383 = vst [vmem:[#allocation84_spill] sm:$0xff] %v5261_v44 }
 0x118   :  { %8379 = vst [vmem:[#allocation80_spill] sm:$0xff] %v5243_v61  ;;  %v5245_v0 = vpop.f32.mrf.mxu0  ;;  %v5247_v26 = vpop.f32.mrf.mxu3  ;;  %v985_v24 = vmul.f32 %v5243_v61, %v5243_v61 }
 0x119   :  { %8380 = vst [vmem:[#allocation81_spill] sm:$0xff] %v5247_v26  ;;  %v5253_v1 = vpop.f32.mrf.mxu1  ;;  %v986_v34 = vmul.f32 %v5247_v26, %v5247_v26  ;;  %v5267_v42 = vpop.xlane.xlu1 %420  ;;  %v1225_v36 = vmul.f32 %v5245_v0, %v5245_v0 }
 0x11a   :  { %8382 = vst [vmem:[#allocation83_spill] sm:$0xff] %v5253_v1  ;;  %v956_v16 = vmul.f32 %v5253_v1, %v5253_v1 }
 0x11b   :  { %v1078_v55 = vadd.f32 %v986_v34, %v985_v24  ;;  %8385 = vst [vmem:[#allocation86_spill] sm:$0xff] %v5267_v42  ;;  %v957_v34 = vmul.f32 %v4953_v45, %v4953_v45 }
 0x11c   :  { %v1033_v11 = vadd.f32 %v956_v16, %v955_v6 }
 0x11d   :  { %1079 = vadd.xlane.f32.xlu0 %v1078_v55 }
 0x11e   :  { %1034 = vadd.xlane.f32.xlu1 %v1033_v11 }
 0x11f   :  { %v5263_v61 = vpop.f32.mrf.mxu2 }
 0x120   :  { %8384 = vst [vmem:[#allocation85_spill] sm:$0xff] %v5263_v61  ;;  %v5265_v46 = vpop.f32.mrf.mxu0  ;;  %v5269_v32 = vpop.f32.mrf.mxu3  ;;  %v987_v26 = vmul.f32 %v5263_v61, %v5263_v61 }
 0x121   :  { %8386 = vst [vmem:[#allocation87_spill] sm:$0xff] %v5269_v32  ;;  %v5273_v10 = vpop.f32.mrf.mxu1  ;;  %v993_v1 = vpop.xlane.xlu0 %992  ;;  %v988_v24 = vmul.f32 %v5269_v32, %v5269_v32 }
 0x122   :  { %8387 = vst [vmem:[#allocation88_spill] sm:$0xff] %v5273_v10  ;;  %v958_v6 = vmul.f32 %v5273_v10, %v5273_v10  ;;  %v5285_v61 = vpop.xlane.xlu2 %423 }
 0x123   :  { %v1081_v16 = vadd.f32 %v988_v24, %v987_v26  ;;  %8389 = vst [vmem:[#allocation90_spill] sm:$0xff] %v5285_v61  ;;  %v1087_v26 = vmul.f32 %v993_v1, %v4882_v39 }
 0x124   :  { %v1036_v55 = vadd.f32 %v958_v6, %v957_v34 }
 0x125   :  { %1082 = vadd.xlane.f32.xlu2 %v1081_v16  ;;  %v4634_v16 = vmov 0  }
 0x126   :  { %1037 = vadd.xlane.f32.xlu0 %v1036_v55  ;;  %4249 = vset.pattern.permute.xlu2 %v4634_v16 }
 0x127   :  { %v5281_v11 = vpop.f32.mrf.mxu2  ;;  %4248 = vset.pattern.permute.xlu0 %v4634_v16  ;;  %4250 = vset.pattern.permute.xlu1 %v4634_v16 }
 0x128   :  { %8388 = vst [vmem:[#allocation89_spill] sm:$0xff] %v5281_v11  ;;  %v5283_v23 = vpop.f32.mrf.mxu0  ;;  %v5287_v30 = vpop.f32.mrf.mxu3  ;;  %v989_v32 = vmul.f32 %v5281_v11, %v5281_v11 }
 0x129   :  { %8390 = vst [vmem:[#allocation91_spill] sm:$0xff] %v5287_v30  ;;  %v1041_v25 = vpop.xlane.xlu0 %1040  ;;  %v996_v45 = vpop.xlane.xlu1 %995  ;;  %v990_v10 = vmul.f32 %v5287_v30, %v5287_v30 }
 0x12a   :  { %v1103_v24 = vmul.f32 %v1041_v25, %v4882_v39  ;;  %v1088_v1 = vmul.f32 %v996_v45, %v4882_v39 }
 0x12b   :  { %v1084_v34 = vadd.f32 %v990_v10, %v989_v32 }
 0x12c   :  { %v1119_v6 = vadd.f32 %v1103_v24, %v1087_v26 }
 0x12d   :  { %1085 = vadd.xlane.f32.xlu1 %v1084_v34  ;;  %v1226_v34 = vmul.f32 %v5265_v46, %v5265_v46 }
 0x12e   :  { %v1142_v55 = vmul.f32 %v1119_v6, %v4895_v49 }
 0x130   :  { %v5298_v11 = vpop.f32.mrf.mxu0  ;;  %v1241_v53 = vsub.f32 %v1142_v55, %v1225_v36 }
 0x131   :  { %v999_v30 = vpop.xlane.xlu2 %998  ;;  %v1044_v63 = vpop.xlane.xlu1 %1043 }
 0x132   :  { %v1257_v25 = vmax.f32 %v1241_v53, 0.0  ;;  %v1104_v10 = vmul.f32 %v1044_v63, %v4882_v39  ;;  %v1089_v55 = vmul.f32 %v999_v30, %v4882_v39 }
 0x134   :  { %v1273_v32 = vadd.f32 1e-05, %v1257_v25  ;;  %v1120_v26 = vadd.f32 %v1104_v10, %v1088_v1 }
 0x136   :  { %4258 = vrsqrt.f32 %v1273_v32  ;;  %v1143_v24 = vmul.f32 %v1120_v26, %v4895_v49  ;;  %v1227_v26 = vmul.f32 %v5283_v23, %v5283_v23  ;;  %vm1295_vm6 = vweird.f32 %v1273_v32 }
 0x138   :  { %v5305_v6 = vpop.f32.mrf.mxu0  ;;  %v1242_v16 = vsub.f32 %v1143_v24, %v1226_v34 }
 0x139   :  { %v1047_v60 = vpop.xlane.xlu2 %1046  ;;  %v1002_v36 = vpop.xlane.xlu0 %1001 }
 0x13a   :  { %v1258_v50 = vmax.f32 %v1242_v16, 0.0  ;;  %v1105_v53 = vmul.f32 %v1047_v60, %v4882_v39  ;;  %v1090_v16 = vmul.f32 %v1002_v36, %v4882_v39 }
 0x13c   :  { %v4259_v45 = vpop.eup %4258  ;;  %v1274_v63 = vadd.f32 1e-05, %v1258_v50  ;;  %v1121_v25 = vadd.f32 %v1105_v53, %v1089_v55 }
 0x13d   :  { %v1290_v1 = vmul.f32 %v4259_v45, %v1273_v32  ;;  %vm1296_vm5 = vweird.f32 %v4259_v45 }
 0x13e   :  { %4260 = vrsqrt.f32 %v1274_v63  ;;  %v1144_v10 = vmul.f32 %v1121_v25, %v4895_v49  ;;  %vm1297_vm7 = vmor %vm1295_vm6, %vm1296_vm5  ;;  %vm1305_vm9 = vweird.f32 %v1274_v63 }
 0x13f   :  { %v1291_v38 = vmul.f32 %v4259_v45, %v1290_v1  ;;  %v5319_v1 = vld [vmem:[%s8080_s3] sm:$0xff] }
 0x140   :  { %v5312_v5 = vpop.f32.mrf.mxu0  ;;  %v1243_v24 = vsub.f32 %v1144_v10, %v1227_v26 }
 0x141   :  { %v1292_v34 = vmul.f32 0.5, %v1291_v38  ;;  %v1050_v9 = vpop.xlane.xlu0 %1049  ;;  %v1005_v30 = vpop.xlane.xlu1 %1004 }
 0x142   :  { %v1259_v60 = vmax.f32 %v1243_v24, 0.0  ;;  %v1106_v50 = vmul.f32 %v1050_v9, %v4882_v39  ;;  %v1228_v9 = vmul.f32 %v5298_v11, %v5298_v11  ;;  %v1091_v29 = vmul.f32 %v1005_v30, %v4882_v39 }
 0x143   :  { %v1293_v55 = vsub.f32 1.5, %v1292_v34 }
 0x144   :  { %v4261_v53 = vpop.eup %4260  ;;  %v1275_v13 = vadd.f32 1e-05, %v1259_v60  ;;  %v1122_v25 = vadd.f32 %v1106_v50, %v1090_v16 }
 0x145   :  { %v1294_v8 = vmul.f32 %v4259_v45, %v1293_v55  ;;  %v1300_v38 = vmul.f32 %v4261_v53, %v1274_v63  ;;  %vm1306_vm8 = vweird.f32 %v4261_v53 }
 0x146   :  { %4262 = vrsqrt.f32 %v1275_v13  ;;  %v1145_v36 = vmul.f32 %v1122_v25, %v4895_v49  ;;  %vm1307_vm10 = vmor %vm1305_vm9, %vm1306_vm8  ;;  %vm1315_vm12 = vweird.f32 %v1275_v13 }
 0x147   :  { %v1298_v10 = vsel %vm1297_vm7, %v4259_v45, %v1294_v8  ;;  %v1301_v26 = vmul.f32 %v4261_v53, %v1300_v38 }
 0x148   :  { %v5324_v24 = vpop.f32.mrf.mxu0  ;;  %v1465_v34 = vmul.f32 %v5319_v1, %v1298_v10  ;;  %v1244_v32 = vsub.f32 %v1145_v36, %v1228_v9  ;;  %v1229_v10 = vmul.f32 %v5305_v6, %v5305_v6 }
 0x149   :  { %v1302_v16 = vmul.f32 0.5, %v1301_v26  ;;  %v1008_v60 = vpop.xlane.xlu2 %1007  ;;  %v1053_v50 = vpop.xlane.xlu1 %1052 }
 0x14a   :  { %v1481_v55 = vmul.f32 %v1465_v34, %v5245_v0  ;;  %v1260_v28 = vmax.f32 %v1244_v32, 0.0  ;;  %v1107_v25 = vmul.f32 %v1053_v50, %v4882_v39  ;;  %1579 = vperm.xlu0 %4248, %v1465_v34   ;;  %v5334_v0 = vld [vmem:[%s8080_s3 + $0x8] sm:$0xff] }
 0x14b   :  { %v1303_v19 = vsub.f32 1.5, %v1302_v16 }
 0x14c   :  { %v4263_v8 = vpop.eup %4262  ;;  %v1276_v45 = vadd.f32 1e-05, %v1260_v28  ;;  %v1123_v38 = vadd.f32 %v1107_v25, %v1091_v29  ;;  %1513 = vrot.lane.b32.xlu2 %v1481_v55, %s4635_s10  ;;  %v1092_v55 = vmul.f32 %v1008_v60, %v4882_v39 }
 0x14d   :  { %v1304_v36 = vmul.f32 %v4261_v53, %v1303_v19  ;;  %v1310_v30 = vmul.f32 %v4263_v8, %v1275_v13  ;;  %vm1316_vm11 = vweird.f32 %v4263_v8 }
 0x14e   :  { %4264 = vrsqrt.f32 %v1276_v45  ;;  %v1146_v9 = vmul.f32 %v1123_v38, %v4895_v49  ;;  %vm1317_vm13 = vmor %vm1315_vm12, %vm1316_vm11  ;;  %vm1325_vm15 = vweird.f32 %v1276_v45 }
 0x14f   :  { %v1308_v28 = vsel %vm1307_vm10, %v4261_v53, %v1304_v36  ;;  %v1311_v29 = vmul.f32 %v4263_v8, %v1310_v30 }
 0x150   :  { %v1466_v26 = vmul.f32 %v5334_v0, %v1308_v28  ;;  %v1245_v34 = vsub.f32 %v1146_v9, %v1229_v10  ;;  %v5340_v19 = vpop.f32.mrf.mxu0  ;;  %v5349_v9 = vld [vmem:[%s8080_s3 + $0x10] sm:$0xff]  ;;  %v1230_v10 = vmul.f32 %v5312_v5, %v5312_v5 }
 0x151   :  { %v1312_v63 = vmul.f32 0.5, %v1311_v29  ;;  %v1056_v32 = vpop.xlane.xlu2 %1055  ;;  %v1011_v16 = vpop.xlane.xlu0 %1010 }
 0x152   :  { %v1482_v50 = vmul.f32 %v1466_v26, %v5265_v46  ;;  %v1261_v25 = vmax.f32 %v1245_v34, 0.0  ;;  %v1108_v38 = vmul.f32 %v1056_v32, %v4882_v39  ;;  %v1093_v32 = vmul.f32 %v1011_v16, %v4882_v39 }
 0x153   :  { %v1313_v14 = vsub.f32 1.5, %v1312_v63 }
 0x154   :  { %v4265_v61 = vpop.eup %4264  ;;  %v1277_v53 = vadd.f32 1e-05, %v1261_v25  ;;  %v1124_v36 = vadd.f32 %v1108_v38, %v1092_v55  ;;  %1584 = vperm.xlu2 %4249, %v1466_v26   ;;  %1515 = vrot.lane.b32.xlu0 %v1482_v50, %s4635_s10 }
 0x155   :  { %v1314_v30 = vmul.f32 %v4263_v8, %v1313_v14  ;;  %v1320_v46 = vmul.f32 %v4265_v61, %v1276_v45  ;;  %vm1326_vm14 = vweird.f32 %v4265_v61 }
 0x156   :  { %4266 = vrsqrt.f32 %v1277_v53  ;;  %v1147_v60 = vmul.f32 %v1124_v36, %v4895_v49  ;;  %vm1327_vm0 = vmor %vm1325_vm15, %vm1326_vm14  ;;  %vm1335_vm3 = vweird.f32 %v1277_v53 }
 0x157   :  { %v1318_v28 = vsel %vm1317_vm13, %v4263_v8, %v1314_v30  ;;  %v1321_v29 = vmul.f32 %v4265_v61, %v1320_v46  ;;  %v5364_v46 = vld [vmem:[%s8080_s3 + $0x18] sm:$0xff] }
 0x158   :  { %v1467_v26 = vmul.f32 %v5349_v9, %v1318_v28  ;;  %v1246_v34 = vsub.f32 %v1147_v60, %v1230_v10  ;;  %v5357_v25 = vpop.f32.mrf.mxu0  ;;  %v1231_v10 = vmul.f32 %v5324_v24, %v5324_v24 }
 0x159   :  { %v1322_v14 = vmul.f32 0.5, %v1321_v29  ;;  %v1059_v13 = vpop.xlane.xlu0 %1058  ;;  %v1014_v63 = vpop.xlane.xlu1 %1013 }
 0x15a   :  { %v1262_v50 = vmax.f32 %v1246_v34, 0.0  ;;  %v1109_v55 = vmul.f32 %v1059_v13, %v4882_v39  ;;  %1589 = vperm.xlu1 %4250, %v1467_v26   ;;  %v1483_v34 = vmul.f32 %v1467_v26, %v5283_v23 }
 0x15b   :  { %v1323_v38 = vsub.f32 1.5, %v1322_v14 }
 0x15c   :  { %v4267_v36 = vpop.eup %4266  ;;  %v5359_v42 = vadd.f32 1e-05, %v1262_v50  ;;  %v1125_v8 = vadd.f32 %v1109_v55, %v1093_v32  ;;  %v1094_v55 = vmul.f32 %v1014_v63, %v4882_v39  ;;  %v5382_v63 = vld [vmem:[%s8080_s3 + $0x20] sm:$0xff] }
 0x15d   :  { %v1324_v30 = vmul.f32 %v4265_v61, %v1323_v38  ;;  %v1330_v16 = vmul.f32 %v4267_v36, %v1277_v53  ;;  %vm1336_vm2 = vweird.f32 %v4267_v36 }
 0x15e   :  { %4268 = vrsqrt.f32 %v5359_v42  ;;  %v1148_v60 = vmul.f32 %v1125_v8, %v4895_v49  ;;  %vm1337_vm4 = vmor %vm1335_vm3, %vm1336_vm2  ;;  %vm1345_vm6 = vweird.f32 %v5359_v42 }
 0x15f   :  { %v1328_v28 = vsel %vm1327_vm0, %v4265_v61, %v1324_v30  ;;  %v1331_v29 = vmul.f32 %v4267_v36, %v1330_v16 }
 0x160   :  { %v1468_v45 = vmul.f32 %v5364_v46, %v1328_v28  ;;  %v1247_v14 = vsub.f32 %v1148_v60, %v1231_v10  ;;  %v5377_v26 = vpop.f32.mrf.mxu0  ;;  %v1232_v28 = vmul.f32 %v5340_v19, %v5340_v19 }
 0x161   :  { %v1332_v13 = vmul.f32 0.5, %v1331_v29  ;;  %v1017_v32 = vpop.xlane.xlu2 %1016  ;;  %v1062_v50 = vpop.xlane.xlu1 %1061 }
 0x162   :  { %v1263_v38 = vmax.f32 %v1247_v14, 0.0  ;;  %v1110_v18 = vmul.f32 %v1062_v50, %v4882_v39  ;;  %1517 = vrot.lane.b32.xlu1 %v1483_v34, %s4635_s10  ;;  %1594 = vperm.xlu2 %4249, %v1468_v45   ;;  %v1484_v53 = vmul.f32 %v1468_v45, %v5298_v11 }
 0x163   :  { %v1333_v8 = vsub.f32 1.5, %v1332_v13 }
 0x164   :  { %v5375_v61 = vpop.eup %4268  ;;  %v1279_v30 = vadd.f32 1e-05, %v1263_v38  ;;  %v1126_v23 = vadd.f32 %v1110_v18, %v1094_v55 }
 0x165   :  { %v1334_v16 = vmul.f32 %v4267_v36, %v1333_v8  ;;  %v1340_v60 = vmul.f32 %v5375_v61, %v5359_v42  ;;  %v1095_v8 = vmul.f32 %v1017_v32, %v4882_v39  ;;  %vm1346_vm5 = vweird.f32 %v5375_v61  ;;  %v5418_v42 = vld [vmem:[%s8080_s3 + $0x30] sm:$0xff] }
 0x166   :  { %4270 = vrsqrt.f32 %v1279_v30  ;;  %v1149_v10 = vmul.f32 %v1126_v23, %v4895_v49  ;;  %vm1347_vm8 = vmor %vm1345_vm6, %vm1346_vm5  ;;  %vm1355_vm9 = vweird.f32 %v1279_v30 }
 0x167   :  { %v1338_v18 = vsel %vm1337_vm4, %v4267_v36, %v1334_v16  ;;  %v1341_v29 = vmul.f32 %v5375_v61, %v1340_v60 }
 0x168   :  { %v1469_v34 = vmul.f32 %v5382_v63, %v1338_v18  ;;  %v1248_v14 = vsub.f32 %v1149_v10, %v1232_v28  ;;  %v5400_v28 = vpop.f32.mrf.mxu0 }
 0x169   :  { %v1342_v13 = vmul.f32 0.5, %v1341_v29  ;;  %v1065_v50 = vpop.xlane.xlu2 %1064  ;;  %v1020_v55 = vpop.xlane.xlu0 %1019 }
 0x16a   :  { %v1485_v38 = vmul.f32 %v1469_v34, %v5305_v6  ;;  %v1264_v20 = vmax.f32 %v1248_v14, 0.0  ;;  %v1111_v23 = vmul.f32 %v1065_v50, %v4882_v39  ;;  %1519 = vrot.lane.b32.xlu2 %v1484_v53, %s4635_s10  ;;  %v1233_v6 = vmul.f32 %v5357_v25, %v5357_v25 }
 0x16b   :  { %v1343_v11 = vsub.f32 1.5, %v1342_v13  ;;  %v1096_v13 = vmul.f32 %v1020_v55, %v4882_v39 }
 0x16c   :  { %v4271_v36 = vpop.eup %4270  ;;  %v1280_v16 = vadd.f32 1e-05, %v1264_v20  ;;  %v1127_v60 = vadd.f32 %v1111_v23, %v1095_v8  ;;  %1521 = vrot.lane.b32.xlu0 %v1485_v38, %s4635_s10 }
 0x16d   :  { %v1350_v45 = vmul.f32 %v4271_v36, %v1279_v30  ;;  %v1344_v29 = vmul.f32 %v5375_v61, %v1343_v11  ;;  %vm1356_vm7 = vweird.f32 %v4271_v36 }
 0x16e   :  { %4272 = vrsqrt.f32 %v1280_v16  ;;  %v1150_v10 = vmul.f32 %v1127_v60, %v4895_v49  ;;  %vm1357_vm10 = vmor %vm1355_vm9, %vm1356_vm7  ;;  %vm1365_vm12 = vweird.f32 %v1280_v16 }
 0x16f   :  { %v1351_v32 = vmul.f32 %v4271_v36, %v1350_v45  ;;  %v1348_v45 = vsel %vm1347_vm8, %v5375_v61, %v1344_v29  ;;  %v1234_v61 = vmul.f32 %v5377_v26, %v5377_v26 }
 0x170   :  { %v1249_v18 = vsub.f32 %v1150_v10, %v1233_v6  ;;  %v5413_v10 = vld [vmem:[%s8080_s3 + $0x28] sm:$0xff] }
 0x171   :  { %v1352_v20 = vmul.f32 0.5, %v1351_v32  ;;  %v1068_v53 = vpop.xlane.xlu0 %1067  ;;  %v1023_v14 = vpop.xlane.xlu1 %1022  ;;  %v1470_v29 = vmul.f32 %v5413_v10, %v1348_v45 }
 0x172   :  { %v1265_v50 = vmax.f32 %v1249_v18, 0.0  ;;  %v1112_v38 = vmul.f32 %v1068_v53, %v4882_v39  ;;  %1599 = vperm.xlu2 %4249, %v1469_v34   ;;  %v5426_v53 = vpop.f32.mrf.mxu0  ;;  %v1097_v62 = vmul.f32 %v1023_v14, %v4882_v39 }
 0x173   :  { %v1353_v8 = vsub.f32 1.5, %v1352_v20 }
 0x174   :  { %v4273_v23 = vpop.eup %4272  ;;  %v5407_v60 = vadd.f32 1e-05, %v1265_v50  ;;  %v1128_v11 = vadd.f32 %v1112_v38, %v1096_v13 }
 0x175   :  { %v1354_v55 = vmul.f32 %v4271_v36, %v1353_v8  ;;  %v1360_v34 = vmul.f32 %v4273_v23, %v1280_v16  ;;  %vm1366_vm11 = vweird.f32 %v4273_v23 }
 0x176   :  { %4274 = vrsqrt.f32 %v5407_v60  ;;  %v1151_v6 = vmul.f32 %v1128_v11, %v4895_v49  ;;  %vm1367_vm13 = vmor %vm1365_vm12, %vm1366_vm11  ;;  %vm1375_vm15 = vweird.f32 %v5407_v60 }
 0x177   :  { %v1358_v32 = vsel %vm1357_vm10, %v4271_v36, %v1354_v55  ;;  %v1361_v18 = vmul.f32 %v4273_v23, %v1360_v34 }
 0x178   :  { %v1471_v30 = vmul.f32 %v5418_v42, %v1358_v32  ;;  %v1250_v20 = vsub.f32 %v1151_v6, %v1234_v61  ;;  %v1235_v32 = vmul.f32 %v5400_v28, %v5400_v28 }
 0x179   :  { %v1362_v13 = vmul.f32 0.5, %v1361_v18  ;;  %v1026_v50 = vpop.xlane.xlu2 %1025  ;;  %v1071_v38 = vpop.xlane.xlu1 %1070  ;;  %v1486_v18 = vmul.f32 %v1470_v29, %v5312_v5 }
 0x17a   :  { %v1487_v8 = vmul.f32 %v1471_v30, %v5324_v24  ;;  %v1266_v11 = vmax.f32 %v1250_v20, 0.0  ;;  %v1113_v56 = vmul.f32 %v1071_v38, %v4882_v39  ;;  %1604 = vperm.xlu2 %4249, %v1470_v29   ;;  %1609 = vperm.xlu0 %4248, %v1471_v30   ;;  %v5437_v24 = vld [vmem:[%s8080_s3 + $0x38] sm:$0xff] }
 0x17b   :  { %v1363_v36 = vsub.f32 1.5, %v1362_v13 }
 0x17c   :  { %v4275_v45 = vpop.eup %4274  ;;  %v5431_v55 = vadd.f32 1e-05, %v1266_v11  ;;  %v1129_v34 = vadd.f32 %v1113_v56, %v1097_v62  ;;  %1525 = vrot.lane.b32.xlu1 %v1487_v8, %s4635_s10  ;;  %v1098_v8 = vmul.f32 %v1026_v50, %v4882_v39 }
 0x17d   :  { %v1364_v6 = vmul.f32 %v4273_v23, %v1363_v36  ;;  %v1370_v14 = vmul.f32 %v4275_v45, %v5407_v60  ;;  %vm1376_vm14 = vweird.f32 %v4275_v45 }
 0x17e   :  { %4276 = vrsqrt.f32 %v5431_v55  ;;  %v1152_v61 = vmul.f32 %v1129_v34, %v4895_v49  ;;  %vm1377_vm0 = vmor %vm1375_vm15, %vm1376_vm14  ;;  %vm1385_vm3 = vweird.f32 %v5431_v55 }
 0x17f   :  { %v1368_v62 = vsel %vm1367_vm13, %v4273_v23, %v1364_v6  ;;  %v1371_v56 = vmul.f32 %v4275_v45, %v1370_v14  ;;  %v5450_v23 = vpop.f32.mrf.mxu0 }
 0x180   :  { %v1472_v16 = vmul.f32 %v5437_v24, %v1368_v62  ;;  %v1251_v30 = vsub.f32 %v1152_v61, %v1235_v32  ;;  %v1236_v62 = vmul.f32 %v5426_v53, %v5426_v53 }
 0x181   :  { %v1372_v20 = vmul.f32 0.5, %v1371_v56  ;;  %v1074_v13 = vpop.xlane.xlu2 %1073  ;;  %v1029_v32 = vpop.xlane.xlu0 %1028 }
 0x182   :  { %v1488_v38 = vmul.f32 %v1472_v16, %v5340_v19  ;;  %v1267_v11 = vmax.f32 %v1251_v30, 0.0  ;;  %v1114_v36 = vmul.f32 %v1074_v13, %v4882_v39  ;;  %1523 = vrot.lane.b32.xlu2 %v1486_v18, %s4635_s10  ;;  %v5459_v19 = vld [vmem:[%s8080_s3 + $0x40] sm:$0xff]  ;;  %v1099_v13 = vmul.f32 %v1029_v32, %v4882_v39 }
 0x183   :  { %v1373_v34 = vsub.f32 1.5, %v1372_v20 }
 0x184   :  { %v4277_v6 = vpop.eup %4276  ;;  %v5452_v5 = vadd.f32 1e-05, %v1267_v11  ;;  %v1130_v29 = vadd.f32 %v1114_v36, %v1098_v8  ;;  %1614 = vperm.xlu1 %4250, %v1472_v16   ;;  %1527 = vrot.lane.b32.xlu0 %v1488_v38, %s4635_s10 }
 0x185   :  { %v1374_v14 = vmul.f32 %v4275_v45, %v1373_v34  ;;  %v1380_v50 = vmul.f32 %v4277_v6, %v5431_v55  ;;  %vm1386_vm2 = vweird.f32 %v4277_v6 }
 0x186   :  { %4278 = vrsqrt.f32 %v5452_v5  ;;  %v1153_v61 = vmul.f32 %v1130_v29, %v4895_v49  ;;  %v1237_v29 = vmul.f32 %v5450_v23, %v5450_v23  ;;  %vm1387_vm4 = vmor %vm1385_vm3, %vm1386_vm2  ;;  %vm1395_vm6 = vweird.f32 %v5452_v5 }
 0x187   :  { %v1378_v56 = vsel %vm1377_vm0, %v4275_v45, %v1374_v14  ;;  %v1381_v18 = vmul.f32 %v4277_v6, %v1380_v50 }
 0x188   :  { %v1473_v60 = vmul.f32 %v5459_v19, %v1378_v56  ;;  %v1252_v16 = vsub.f32 %v1153_v61, %v1236_v62  ;;  %v1077_v30 = vpop.xlane.xlu1 %1076  ;;  %v5477_v61 = vld [vmem:[%s8080_s3 + $0x48] sm:$0xff]  ;;  %v5481_v62 = vpop.f32.mrf.mxu0 }
 0x189   :  { %v1382_v20 = vmul.f32 0.5, %v1381_v18  ;;  %v1115_v38 = vmul.f32 %v1077_v30, %v4882_v39  ;;  %v1032_v56 = vpop.xlane.xlu2 %1031 }
 0x18a   :  { %v1489_v8 = vmul.f32 %v1473_v60, %v5357_v25  ;;  %v1268_v11 = vmax.f32 %v1252_v16, 0.0 }
 0x18b   :  { %v1383_v36 = vsub.f32 1.5, %v1382_v20  ;;  %v1131_v34 = vadd.f32 %v1115_v38, %v1099_v13  ;;  %v1100_v13 = vmul.f32 %v1032_v56, %v4882_v39 }
 0x18c   :  { %v4279_v45 = vpop.eup %4278  ;;  %v1284_v14 = vadd.f32 1e-05, %v1268_v11  ;;  %1529 = vrot.lane.b32.xlu2 %v1489_v8, %s4635_s10  ;;  %1619 = vperm.xlu1 %4250, %v1473_v60  }
 0x18d   :  { %v1384_v50 = vmul.f32 %v4277_v6, %v1383_v36  ;;  %v1390_v25 = vmul.f32 %v4279_v45, %v5452_v5  ;;  %v1154_v32 = vmul.f32 %v1131_v34, %v4895_v49  ;;  %vm1396_vm5 = vweird.f32 %v4279_v45 }
 0x18e   :  { %4280 = vrsqrt.f32 %v1284_v14  ;;  %vm1397_vm7 = vmor %vm1395_vm6, %vm1396_vm5  ;;  %vm1405_vm9 = vweird.f32 %v1284_v14 }
 0x18f   :  { %v1388_v18 = vsel %vm1387_vm4, %v4277_v6, %v1384_v50  ;;  %v1391_v16 = vmul.f32 %v4279_v45, %v1390_v25  ;;  %v1253_v60 = vsub.f32 %v1154_v32, %v1237_v29  ;;  %v1238_v6 = vmul.f32 %v5481_v62, %v5481_v62  ;;  %v5496_v50 = vld [vmem:[%s8080_s3 + $0x50] sm:$0xff] }
 0x190   :  { %v1474_v30 = vmul.f32 %v5477_v61, %v1388_v18  ;;  %v1080_v55 = vpop.xlane.xlu0 %1079 }
 0x191   :  { %v1392_v20 = vmul.f32 0.5, %v1391_v16  ;;  %v1269_v38 = vmax.f32 %v1253_v60, 0.0  ;;  %v1116_v8 = vmul.f32 %v1080_v55, %v4882_v39  ;;  %v1035_v32 = vpop.xlane.xlu1 %1034  ;;  %v5500_v16 = vpop.f32.mrf.mxu0 }
 0x192   :  { %v1490_v11 = vmul.f32 %v1474_v30, %v5377_v26 }
 0x193   :  { %v1393_v36 = vsub.f32 1.5, %v1392_v20  ;;  %v5487_v34 = vadd.f32 1e-05, %v1269_v38  ;;  %v1132_v44 = vadd.f32 %v1116_v8, %v1100_v13  ;;  %v1101_v20 = vmul.f32 %v1035_v32, %v4882_v39 }
 0x194   :  { %v4281_v15 = vpop.eup %4280  ;;  %1624 = vperm.xlu2 %4249, %v1474_v30   ;;  %1531 = vrot.lane.b32.xlu1 %v1490_v11, %s4635_s10 }
 0x195   :  { %v1394_v29 = vmul.f32 %v4279_v45, %v1393_v36  ;;  %v1400_v26 = vmul.f32 %v4281_v15, %v1284_v14  ;;  %4282 = vrsqrt.f32 %v5487_v34  ;;  %v1155_v25 = vmul.f32 %v1132_v44, %v4895_v49 }
 0x196   :  { %vm1406_vm8 = vweird.f32 %v4281_v15  ;;  %vm1415_vm12 = vweird.f32 %v5487_v34 }
 0x197   :  { %v1398_v56 = vsel %vm1397_vm7, %v4279_v45, %v1394_v29  ;;  %v1401_v18 = vmul.f32 %v4281_v15, %v1400_v26  ;;  %v1254_v30 = vsub.f32 %v1155_v25, %v1238_v6  ;;  %v1239_v45 = vmul.f32 %v5500_v16, %v5500_v16  ;;  %vm1407_vm10 = vmor %vm1405_vm9, %vm1406_vm8 }
 0x198   :  { %v1475_v60 = vmul.f32 %v5496_v50, %v1398_v56  ;;  %v1083_v5 = vpop.xlane.xlu2 %1082  ;;  %vm8309_vm8 = vcmask 130112   ;;  %vm8307_vm9 = vcmask 195712  }
 0x199   :  { %v1402_v55 = vmul.f32 0.5, %v1401_v18  ;;  %v1117_v13 = vmul.f32 %v1083_v5, %v4882_v39  ;;  %v1270_v8 = vmax.f32 %v1254_v30, 0.0  ;;  %v1038_v56 = vpop.xlane.xlu0 %1037 }
 0x19a   :  { %v1491_v38 = vmul.f32 %v1475_v60, %v5400_v28  ;;  %v5513_v28 = vld [vmem:[%s8080_s3 + $0x58] sm:$0xff] }
 0x19b   :  { %v4283_v11 = vpop.eup %4282  ;;  %v1403_v36 = vsub.f32 1.5, %v1402_v55  ;;  %v1133_v44 = vadd.f32 %v1117_v13, %v1101_v20  ;;  %v1286_v26 = vadd.f32 1e-05, %v1270_v8  ;;  %v1102_v20 = vmul.f32 %v1038_v56, %v4882_v39 }
 0x19c   :  { %v1410_v29 = vmul.f32 %v4283_v11, %v5487_v34  ;;  %1629 = vperm.xlu2 %4249, %v1475_v60   ;;  %1533 = vrot.lane.b32.xlu0 %v1491_v38, %s4635_s10  ;;  %v5519_v38 = vpop.f32.mrf.mxu0  ;;  %vm1416_vm11 = vweird.f32 %v4283_v11 }
 0x19d   :  { %v1404_v6 = vmul.f32 %v4281_v15, %v1403_v36  ;;  %v1156_v25 = vmul.f32 %v1133_v44, %v4895_v49  ;;  %4284 = vrsqrt.f32 %v1286_v26  ;;  %vm1417_vm13 = vmor %vm1415_vm12, %vm1416_vm11  ;;  %vm1425_vm15 = vweird.f32 %v1286_v26 }
 0x19e   :  { %v1411_v32 = vmul.f32 %v4283_v11, %v1410_v29  ;;  %vm8301_vm11 = vcmask 326912   ;;  %vm8300_vm12 = vcmask 392512  }
 0x19f   :  { %v1408_v18 = vsel %vm1407_vm10, %v4281_v15, %v1404_v6  ;;  %v1255_v30 = vsub.f32 %v1156_v25, %v1239_v45  ;;  %v5526_v45 = vld [vmem:[%s8080_s3 + $0x60] sm:$0xff]  ;;  %v1240_v6 = vmul.f32 %v5519_v38, %v5519_v38  ;;  %vm8306_vm10 = vcmask 261312  }
 0x1a0   :  { %v1476_v5 = vmul.f32 %v5513_v28, %v1408_v18  ;;  %v1412_v60 = vmul.f32 0.5, %v1411_v32  ;;  %v1086_v55 = vpop.xlane.xlu1 %1085 }
 0x1a1   :  { %v1271_v14 = vmax.f32 %v1255_v30, 0.0  ;;  %v1118_v13 = vmul.f32 %v1086_v55, %v4882_v39 }
 0x1a2   :  { %v1492_v8 = vmul.f32 %v1476_v5, %v5426_v53  ;;  %v1413_v36 = vsub.f32 1.5, %v1412_v60 }
 0x1a3   :  { %v1287_v44 = vadd.f32 1e-05, %v1271_v14  ;;  %v1134_v29 = vadd.f32 %v1118_v13, %v1102_v20  ;;  %v4285_v17 = vpop.eup %4284 }
 0x1a4   :  { %v1414_v15 = vmul.f32 %v4283_v11, %v1413_v36  ;;  %1535 = vrot.lane.b32.xlu2 %v1492_v8, %s4635_s10  ;;  %1634 = vperm.xlu0 %4248, %v1476_v5   ;;  %v1420_v53 = vmul.f32 %v4285_v17, %v1286_v26  ;;  %vm1426_vm14 = vweird.f32 %v4285_v17  ;;  %v4636_v5 = vmov 1  }
 0x1a5   :  { %4286 = vrsqrt.f32 %v1287_v44  ;;  %v1157_v32 = vmul.f32 %v1134_v29, %v4895_v49  ;;  %v5536_v49 = vld [vmem:[%s8080_s3 + $0x68] sm:$0xff]  ;;  %vm1427_vm0 = vmor %vm1425_vm15, %vm1426_vm14  ;;  %vm1435_vm3 = vweird.f32 %v1287_v44  ;;  %vm8241_vm14 = vcmask 523712  }
 0x1a6   :  { %v1418_v25 = vsel %vm1417_vm13, %v4283_v11, %v1414_v15  ;;  %v1421_v34 = vmul.f32 %v4285_v17, %v1420_v53  ;;  %v1514_v55 = vpop.permute.xlu2 %1513  ;;  %vm8242_vm13 = vcmask 458112   ;;  %vm8233_vm15 = vcmask 589312  }
 0x1a7   :  { %v1477_v56 = vmul.f32 %v5526_v45, %v1418_v25  ;;  %v1256_v18 = vsub.f32 %v1157_v32, %v1240_v6 }
 0x1a8   :  { %v1422_v30 = vmul.f32 0.5, %v1421_v34 }
 0x1a9   :  { %1639 = vperm.xlu1 %4250, %v1477_v56   ;;  %v1272_v60 = vmax.f32 %v1256_v18, 0.0  ;;  %v1493_v29 = vmul.f32 %v1477_v56, %v5450_v23  ;;  %v5545_v18 = vld [vmem:[%s8080_s3 + $0x70] sm:$0xff] }
 0x1aa   :  { %v1423_v14 = vsub.f32 1.5, %v1422_v30 }
 0x1ab   :  { %v4287_v20 = vpop.eup %4286  ;;  %v1288_v8 = vadd.f32 1e-05, %v1272_v60 }
 0x1ac   :  { %v1430_v13 = vmul.f32 %v4287_v20, %v1287_v44  ;;  %4252 = vset.pattern.permute.xlu0 %v4636_v5  ;;  %v1424_v36 = vmul.f32 %v4285_v17, %v1423_v14  ;;  %vm1436_vm2 = vweird.f32 %v4287_v20 }
 0x1ad   :  { %4288 = vrsqrt.f32 %v1288_v8  ;;  %vm1437_vm4 = vmor %vm1435_vm3, %vm1436_vm2  ;;  %vm1445_vm6 = vweird.f32 %v1288_v8  ;;  %vm8231_vm2 = vcmask 720512   ;;  %vm8230_vm3 = vcmask 786112  }
 0x1ae   :  { %v1431_v11 = vmul.f32 %v4287_v20, %v1430_v13  ;;  %v1428_v15 = vsel %vm1427_vm0, %v4285_v17, %v1424_v36  ;;  %v5547_v30 = vpop.permute.xlu2 %1584  ;;  %vm8232_vm0 = vcmask 654912  }
 0x1af   :  { %v1478_v6 = vmul.f32 %v5536_v49, %v1428_v15  ;;  %v5560_v15 = vld [vmem:[%s8080_s3 + $0x78] sm:$0xff] }
 0x1b0   :  { %v1432_v53 = vmul.f32 0.5, %v1431_v11 }
 0x1b1   :  { %1537 = vrot.lane.b32.xlu1 %v1493_v29, %s4635_s10  ;;  %v1494_v25 = vmul.f32 %v1478_v6, %v5481_v62  ;;  %v1561_v29 = vsub.f32 %v5319_v1, %v1514_v55 }
 0x1b2   :  { %v1433_v32 = vsub.f32 1.5, %v1432_v53 }
 0x1b3   :  { %v4289_v26 = vpop.eup %4288  ;;  %1539 = vrot.lane.b32.xlu0 %v1494_v25, %s4635_s10 }
 0x1b4   :  { %v1434_v34 = vmul.f32 %v4287_v20, %v1433_v32  ;;  %v1440_v17 = vmul.f32 %v4289_v26, %v1288_v8  ;;  %vm1446_vm5 = vweird.f32 %v4289_v26 }
 0x1b5   :  { %vm1447_vm7 = vmor %vm1445_vm6, %vm1446_vm5  ;;  %vm8227_vm5 = vcmask 917312  }
 0x1b6   :  { %v1438_v23 = vsel %vm1437_vm4, %v4287_v20, %v1434_v34  ;;  %v1441_v62 = vmul.f32 %v4289_v26, %v1440_v17  ;;  %vm8228_vm4 = vcmask 851712  }
 0x1b7   :  { %v1479_v56 = vmul.f32 %v5545_v18, %v1438_v23 }
 0x1b8   :  { %v1442_v60 = vmul.f32 0.5, %v1441_v62 }
 0x1b9   :  { %1644 = vperm.xlu1 %4250, %v1478_v6   ;;  %1649 = vperm.xlu2 %4249, %v1479_v56   ;;  %v1495_v11 = vmul.f32 %v1479_v56, %v5500_v16 }
 0x1ba   :  { %v1443_v14 = vsub.f32 1.5, %v1442_v60 }
 0x1bc   :  { %v5551_v44 = vpop.permute.xlu2 %1594  ;;  %v1444_v13 = vmul.f32 %v4289_v26, %v1443_v14  ;;  %v5553_v36 = vpop.permute.xlu0 %1579 }
 0x1be   :  { %v1448_v20 = vsel %vm1447_vm7, %v4289_v26, %v1444_v13 }
 0x1bf   :  { %v1480_v6 = vmul.f32 %v5560_v15, %v1448_v20 }
 0x1c1   :  { %4251 = vset.pattern.permute.xlu1 %v4636_v5  ;;  %1541 = vrot.lane.b32.xlu2 %v1495_v11, %s4635_s10  ;;  %v1496_v8 = vmul.f32 %v1480_v6, %v5519_v38 }
 0x1c2   :  { %1723 = vperm.xlu1 %4251, %v1561_v29   ;;  %v3466_v29 = vlaneseq }
 0x1c4   :  { %v1520_v53 = vpop.permute.xlu2 %1519  ;;  %v5587_v20 = vand.u32 127, %v3466_v29 }
 0x1c5   :  { %v1564_v17 = vsub.f32 %v5364_v46, %v1520_v53 }
 0x1c6   :  { %v1516_v25 = vpop.permute.xlu0 %1515  ;;  %8391 = vst [vmem:[#allocation92_spill] sm:$0xff] %v5587_v20 }
 0x1c7   :  { %v1562_v16 = vsub.f32 %v5334_v0, %v1516_v25 }
 0x1c9   :  { %1654 = vperm.xlu2 %4249, %v1480_v6   ;;  %1728 = vperm.xlu0 %4252, %v1562_v16   ;;  %v5595_v6 = vmul.f32 %v5021_v54, %v4882_v39 }
 0x1ca   :  { %1543 = vrot.lane.b32.xlu1 %v1496_v8, %s4635_s10 }
 0x1cb   :  { %8393 = vst [vmem:[#allocation94_spill] sm:$0xff] %v5595_v6 }
 0x1cc   :  { %v5567_v1 = vpop.permute.xlu2 %1599  ;;  %v5569_v55 = vpop.permute.xlu1 %1589 }
 0x1d1   :  { %4253 = vset.pattern.permute.xlu2 %v4636_v5 }
 0x1d4   :  { %v5571_v32 = vpop.permute.xlu2 %1604  ;;  %v1518_v26 = vpop.permute.xlu1 %1517 }
 0x1d5   :  { %v1563_v34 = vsub.f32 %v5349_v9, %v1518_v26  ;;  %v5630_v26 = vmul.f32 %v5023_v57, %v4882_v39  ;;  %v5647_v57 = vmul.f32 %v5043_v58, %v4882_v39 }
 0x1d7   :  { %1733 = vperm.xlu1 %4251, %v1563_v34   ;;  %8399 = vst [vmem:[#allocation100_spill] sm:$0xff] %v5630_v26  ;;  %v5633_v34 = vadd.s32 4294967280, %v5587_v20 }
 0x1d8   :  { %8402 = vst [vmem:[#allocation103_spill] sm:$0xff] %v5647_v57 }
 0x1d9   :  { %8400 = vst [vmem:[#allocation101_spill] sm:$0xff] %v5633_v34 }
 0x1dc   :  { %v1524_v0 = vpop.permute.xlu2 %1523 }
 0x1dd   :  { %v1566_v62 = vsub.f32 %v5413_v10, %v1524_v0  ;;  %v5591_v10 = vmul.f32 %v4995_v33, %v4882_v39  ;;  %v5611_v33 = vmul.f32 %v5003_v40, %v4882_v39 }
 0x1de   :  { %v1522_v23 = vpop.permute.xlu0 %1521 }
 0x1df   :  { %v1565_v38 = vsub.f32 %v5382_v63, %v1522_v23  ;;  %1738 = vperm.xlu1 %4251, %v1564_v17   ;;  %8392 = vst [vmem:[#allocation93_spill] sm:$0xff] %v5591_v10  ;;  %v3402_v54 = vmul.f32 %v5591_v10, %v5591_v10  ;;  %v3404_v17 = vmul.f32 %v5611_v33, %v5611_v33 }
 0x1e0   :  { %8396 = vst [vmem:[#allocation97_spill] sm:$0xff] %v5611_v33 }
 0x1e1   :  { %1743 = vperm.xlu2 %4253, %v1565_v38   ;;  %v3468_v0 = vperm.slane %v3402_v54, %v5587_v20  ;;  %v3406_v54 = vmul.f32 %v5647_v57, %v5647_v57 }
 0x1e6   :  { %v1530_v56 = vpop.permute.xlu2 %1529 }
 0x1e7   :  { %v1569_v25 = vsub.f32 %v5459_v19, %v1530_v56  ;;  %v5622_v19 = vmul.f32 %v5153_v31, %v4882_v39  ;;  %v5639_v31 = vmul.f32 %v5175_v35, %v4882_v39  ;;  %v3405_v35 = vmul.f32 %v5630_v26, %v5630_v26  ;;  %v8484_v26 = vld [vmem:[#allocation54_spill] sm:$0xff] }
 0x1e9   :  { %1748 = vperm.xlu2 %4253, %v1566_v62   ;;  %8398 = vst [vmem:[#allocation99_spill] sm:$0xff] %v5622_v19  ;;  %v3420_v38 = vmul.f32 %v5622_v19, %v5622_v19  ;;  %v3421_v58 = vmul.f32 %v5639_v31, %v5639_v31 }
 0x1ea   :  { %8401 = vst [vmem:[#allocation102_spill] sm:$0xff] %v5639_v31 }
 0x1ec   :  { %v5577_v60 = vpop.permute.xlu0 %1609 }
 0x1ee   :  { %v5579_v5 = vpop.permute.xlu2 %1624  ;;  %v1526_v14 = vpop.permute.xlu1 %1525 }
 0x1ef   :  { %v1567_v9 = vsub.f32 %v5418_v42, %v1526_v14  ;;  %v5599_v42 = vmul.f32 %v5149_v2, %v4882_v39  ;;  %v5616_v2 = vadd.s32 4294967288, %v5587_v20  ;;  %v5652_v14 = vadd.s32 4294967272, %v5587_v20 }
 0x1f1   :  { %1753 = vperm.xlu0 %4252, %v1567_v9   ;;  %8394 = vst [vmem:[#allocation95_spill] sm:$0xff] %v5599_v42  ;;  %v5658_v9 = vmul.f32 %v5171_v22, %v4882_v39  ;;  %v5671_v22 = vadd.s32 4294967264, %v5587_v20 }
 0x1f2   :  { %8397 = vst [vmem:[#allocation98_spill] sm:$0xff] %v5616_v2 }
 0x1f3   :  { %8403 = vst [vmem:[#allocation104_spill] sm:$0xff] %v5652_v14 }
 0x1f4   :  { %8404 = vst [vmem:[#allocation105_spill] sm:$0xff] %v5658_v9 }
 0x1f5   :  { %8406 = vst [vmem:[#allocation107_spill] sm:$0xff] %v5671_v22 }
 0x1f6   :  { %v1528_v13 = vpop.permute.xlu0 %1527  ;;  %v5582_v46 = vpop.permute.xlu2 %1629 }
 0x1f7   :  { %v1568_v11 = vsub.f32 %v5437_v24, %v1528_v13  ;;  %v5585_v63 = vpop.permute.xlu1 %1614  ;;  %v5603_v24 = vmul.f32 %v5137_v48, %v4882_v39  ;;  %v3403_v48 = vmul.f32 %v5595_v6, %v5595_v6  ;;  %v8492_v6 = vld [vmem:[#allocation70_spill] sm:$0xff] }
 0x1f9   :  { %1758 = vperm.xlu1 %4251, %v1568_v11   ;;  %8395 = vst [vmem:[#allocation96_spill] sm:$0xff] %v5603_v24  ;;  %v3419_v40 = vmul.f32 %v5603_v24, %v5603_v24  ;;  %v3470_v23 = vperm.slane %v3403_v48, %v5616_v2  ;;  %v3474_v11 = vperm.slane %v3404_v17, %v5633_v34  ;;  %v8491_v24 = vld [vmem:[#allocation69_spill] sm:$0xff] }
 0x1fa   :  { %v5686_v17 = vmul.f32 %v5047_v27, %v4882_v39 }
 0x1fb   :  { %v3530_v62 = vperm.slane %v3419_v40, %v5616_v2  ;;  %v6049_v2 = vmul.f32 %v5582_v46, %v8491_v24 }
 0x1fc   :  { %8408 = vst [vmem:[#allocation109_spill] sm:$0xff] %v5686_v17 }
 0x1fe   :  { %v1536_v53 = vpop.permute.xlu2 %1535 }
 0x1ff   :  { %v1572_v16 = vsub.f32 %v5513_v28, %v1536_v53  ;;  %v5607_v8 = vpop.permute.xlu1 %1619  ;;  %v3418_v28 = vmul.f32 %v5599_v42, %v5599_v42  ;;  %v3472_v53 = vsel %vm8309_vm8, %v3470_v23, %v3468_v0  ;;  %v3534_v0 = vperm.slane %v3421_v58, %v5652_v14 }
 0x200   :  { %v3476_v40 = vsel %vm8307_vm9, %v3474_v11, %v3472_v53  ;;  %v5690_v23 = vadd.s32 4294967256, %v5587_v20  ;;  %v5705_v11 = vmul.f32 %v5067_v52, %v4882_v39  ;;  %v3408_v53 = vmul.f32 %v5686_v17, %v5686_v17 }
 0x201   :  { %1763 = vperm.xlu1 %4251, %v1569_v25   ;;  %1778 = vperm.xlu0 %4252, %v1572_v16   ;;  %v3529_v56 = vperm.slane %v3418_v28, %v5587_v20  ;;  %v5667_v25 = vmul.f32 %v5031_v12, %v4882_v39  ;;  %v3532_v16 = vperm.slane %v3420_v38, %v5633_v34  ;;  %v8483_v34 = vld [vmem:[#allocation53_spill] sm:$0xff] }
 0x202   :  { %v3478_v28 = vperm.slane %v3405_v35, %v5652_v14  ;;  %v3422_v12 = vmul.f32 %v5658_v9, %v5658_v9  ;;  %8409 = vst [vmem:[#allocation110_spill] sm:$0xff] %v5690_v23 }
 0x203   :  { %8405 = vst [vmem:[#allocation106_spill] sm:$0xff] %v5667_v25  ;;  %v3531_v48 = vsel %vm8309_vm8, %v3530_v62, %v3529_v56  ;;  %v5697_v56 = vmul.f32 %v5207_v4, %v4882_v39  ;;  %v3482_v62 = vperm.slane %v3406_v54, %v5671_v22  ;;  %v5710_v4 = vadd.s32 4294967248, %v5587_v20 }
 0x204   :  { %v3533_v38 = vsel %vm8307_vm9, %v3532_v16, %v3531_v48  ;;  %8411 = vst [vmem:[#allocation112_spill] sm:$0xff] %v5705_v11  ;;  %v3536_v58 = vperm.slane %v3422_v12, %v5671_v22  ;;  %v5717_v54 = vmul.f32 %v5195_v47, %v4882_v39  ;;  %v3409_v47 = vmul.f32 %v5705_v11, %v5705_v11 }
 0x205   :  { %8410 = vst [vmem:[#allocation111_spill] sm:$0xff] %v5697_v56  ;;  %v3535_v16 = vsel %vm8306_vm10, %v3534_v0, %v3533_v38  ;;  %v3424_v52 = vmul.f32 %v5697_v56, %v5697_v56 }
 0x206   :  { %8412 = vst [vmem:[#allocation113_spill] sm:$0xff] %v5710_v4  ;;  %v3537_v0 = vsel %vm8301_vm11, %v3536_v58, %v3535_v16  ;;  %v5750_v58 = vadd.s32 4294967232, %v5587_v20 }
 0x207   :  { %v1532_v13 = vpop.permute.xlu1 %1531  ;;  %8413 = vst [vmem:[#allocation114_spill] sm:$0xff] %v5717_v54 }
 0x208   :  { %v1570_v29 = vsub.f32 %v5477_v61, %v1532_v13  ;;  %v5678_v61 = vmul.f32 %v5185_v7, %v4882_v39  ;;  %v3407_v7 = vmul.f32 %v5667_v25, %v5667_v25  ;;  %v3480_v13 = vsel %vm8306_vm10, %v3478_v28, %v3476_v40  ;;  %8418 = vst [vmem:[#allocation119_spill] sm:$0xff] %v5750_v58 }
 0x209   :  { %v3484_v28 = vsel %vm8301_vm11, %v3482_v62, %v3480_v13  ;;  %v5729_v40 = vadd.s32 4294967240, %v5587_v20  ;;  %v3425_v62 = vmul.f32 %v5717_v54, %v5717_v54  ;;  %v3540_v13 = vperm.slane %v3424_v52, %v5710_v4 }
 0x20a   :  { %8407 = vst [vmem:[#allocation108_spill] sm:$0xff] %v5678_v61  ;;  %1768 = vperm.xlu2 %4253, %v1570_v29   ;;  %v3423_v27 = vmul.f32 %v5678_v61, %v5678_v61  ;;  %v3486_v48 = vperm.slane %v3407_v7, %v5690_v23  ;;  %v5736_v7 = vmul.f32 %v5217_v3, %v4882_v39  ;;  %v8476_v61 = vld [vmem:[#allocation22_spill] sm:$0xff] }
 0x20b   :  { %8415 = vst [vmem:[#allocation116_spill] sm:$0xff] %v5729_v40  ;;  %v3494_v16 = vperm.slane %v3409_v47, %v5729_v40  ;;  %v5765_v52 = vmul.f32 %v5099_v41, %v4882_v39 }
 0x20c   :  { %v3538_v12 = vperm.slane %v3423_v27, %v5690_v23  ;;  %8416 = vst [vmem:[#allocation117_spill] sm:$0xff] %v5736_v7  ;;  %v3488_v27 = vsel %vm8300_vm12, %v3486_v48, %v3484_v28  ;;  %v3542_v28 = vperm.slane %v3425_v62, %v5729_v40  ;;  %v8475_v23 = vld [vmem:[#allocation43_spill] sm:$0xff] }
 0x20d   :  { %8420 = vst [vmem:[#allocation121_spill] sm:$0xff] %v5765_v52 }
 0x20e   :  { %v1534_v35 = vpop.permute.xlu0 %1533 }
 0x20f   :  { %v1571_v29 = vsub.f32 %v5496_v50, %v1534_v35  ;;  %v5725_v50 = vmul.f32 %v5063_v37, %v4882_v39  ;;  %v3490_v37 = vperm.slane %v3408_v53, %v5710_v4  ;;  %v5746_v35 = vmul.f32 %v5077_v21, %v4882_v39  ;;  %v8465_v4 = vld [vmem:[#allocation44_spill] sm:$0xff] }
 0x210   :  { %v5757_v53 = vmul.f32 %v5239_v59, %v4882_v39  ;;  %v3426_v21 = vmul.f32 %v5736_v7, %v5736_v7 }
 0x211   :  { %8414 = vst [vmem:[#allocation115_spill] sm:$0xff] %v5725_v50  ;;  %v3410_v3 = vmul.f32 %v5725_v50, %v5725_v50  ;;  %v3492_v48 = vsel %vm8242_vm13, %v3490_v37, %v3488_v27  ;;  %v3411_v59 = vmul.f32 %v5746_v35, %v5746_v35  ;;  %v5783_v27 = vadd.s32 4294967216, %v5587_v20 }
 0x212   :  { %1773 = vperm.xlu2 %4253, %v1571_v29   ;;  %8417 = vst [vmem:[#allocation118_spill] sm:$0xff] %v5746_v35  ;;  %v3539_v29 = vsel %vm8300_vm12, %v3538_v12, %v3537_v0  ;;  %v5769_v12 = vadd.s32 4294967224, %v5587_v20  ;;  %v5776_v0 = vmul.f32 %v5219_v51, %v4882_v39  ;;  %v3427_v41 = vmul.f32 %v5757_v53, %v5757_v53 }
 0x213   :  { %v5738_v38 = vpop.permute.xlu2 %1649  ;;  %8419 = vst [vmem:[#allocation120_spill] sm:$0xff] %v5757_v53  ;;  %v3541_v47 = vsel %vm8242_vm13, %v3540_v13, %v3539_v29  ;;  %v3498_v37 = vperm.slane %v3410_v3, %v5750_v58  ;;  %v3496_v62 = vsel %vm8241_vm14, %v3494_v16, %v3492_v48  ;;  %v5787_v35 = vmul.f32 %v5087_v43, %v4882_v39  ;;  %v8426_v53 = vld [vmem:[#allocation79_spill] sm:$0xff] }
 0x214   :  { %8421 = vst [vmem:[#allocation122_spill] sm:$0xff] %v5769_v12  ;;  %v3544_v13 = vperm.slane %v3426_v21, %v5750_v58  ;;  %v3412_v3 = vmul.f32 %v5765_v52, %v5765_v52  ;;  %v3543_v7 = vsel %vm8241_vm14, %v3542_v28, %v3541_v47  ;;  %v5797_v16 = vmul.f32 %v8426_v53, %v4882_v39  ;;  %v8428_v58 = vld [vmem:[#allocation57_spill] sm:$0xff]  ;;  %v8431_v47 = vld [vmem:[#allocation84_spill] sm:$0xff] }
 0x215   :  { %8422 = vst [vmem:[#allocation123_spill] sm:$0xff] %v5776_v0  ;;  %v3502_v40 = vperm.slane %v3411_v59, %v5769_v12  ;;  %v3428_v43 = vmul.f32 %v5776_v0, %v5776_v0  ;;  %v3500_v21 = vsel %vm8233_vm15, %v3498_v37, %v3496_v62  ;;  %v5806_v54 = vmul.f32 %v8428_v58, %v4882_v39  ;;  %v8433_v58 = vld [vmem:[#allocation62_spill] sm:$0xff] }
 0x216   :  { %8423 = vst [vmem:[#allocation124_spill] sm:$0xff] %v5783_v27  ;;  %v3546_v28 = vperm.slane %v3427_v41, %v5769_v12  ;;  %v5810_v53 = vadd.s32 4294967208, %v5587_v20  ;;  %v3545_v59 = vsel %vm8233_vm15, %v3544_v13, %v3543_v7  ;;  %v3506_v37 = vperm.slane %v3412_v3, %v5783_v27  ;;  %v5838_v52 = vpop.permute.xlu0 %1634 }
 0x217   :  { %8424 = vst [vmem:[#allocation125_spill] sm:$0xff] %v5787_v35  ;;  %v5822_v62 = vmul.f32 %v8433_v58, %v4882_v39  ;;  %v3429_v41 = vmul.f32 %v5797_v16, %v5797_v16  ;;  %v5829_v7 = vadd.s32 4294967200, %v5587_v20  ;;  %v3414_v13 = vmul.f32 %v5806_v54, %v5806_v54 }
 0x218   :  { %8427 = vst [vmem:[#allocation79_spill] sm:$0xff] %v5797_v16  ;;  %v3547_v3 = vsel %vm8232_vm0, %v3546_v28, %v3545_v59 }
 0x219   :  { %8429 = vst [vmem:[#allocation57_spill] sm:$0xff] %v5806_v54  ;;  %v3415_v28 = vmul.f32 %v5822_v62, %v5822_v62  ;;  %v3550_v59 = vperm.slane %v3429_v41, %v5810_v53 }
 0x21a   :  { %8430 = vst [vmem:[#allocation127_spill] sm:$0xff] %v5810_v53 }
 0x21b   :  { %v1542_v29 = vpop.permute.xlu2 %1541  ;;  %v5790_v51 = vpop.permute.xlu1 %1639  ;;  %8434 = vst [vmem:[#allocation62_spill] sm:$0xff] %v5822_v62  ;;  %v8443_v62 = vld [vmem:[#allocation86_spill] sm:$0xff] }
 0x21c   :  { %8425 = vst [vmem:[#allocation126_spill] sm:$0xff] %v5790_v51  ;;  %v1575_v48 = vsub.f32 %v5545_v18, %v1542_v29  ;;  %v3413_v18 = vmul.f32 %v5787_v35, %v5787_v35  ;;  %v5817_v29 = vmul.f32 %v8431_v47, %v4882_v39  ;;  %v3548_v35 = vperm.slane %v3428_v43, %v5783_v27  ;;  %v8436_v47 = vld [vmem:[#allocation82_spill] sm:$0xff] }
 0x21d   :  { %8435 = vst [vmem:[#allocation128_spill] sm:$0xff] %v5829_v7  ;;  %v5836_v58 = vmul.f32 %v8436_v47, %v4882_v39  ;;  %v5845_v27 = vadd.s32 4294967192, %v5587_v20  ;;  %v8439_v47 = vld [vmem:[#allocation58_spill] sm:$0xff]  ;;  %v5865_v41 = vmul.f32 %v8443_v62, %v4882_v39  ;;  %v5879_v62 = vadd.s32 4294967176, %v5587_v20 }
 0x21e   :  { %1793 = vperm.xlu0 %4252, %v1575_v48   ;;  %8432 = vst [vmem:[#allocation84_spill] sm:$0xff] %v5817_v29  ;;  %v3504_v48 = vsel %vm8232_vm0, %v3502_v40, %v3500_v21  ;;  %v3510_v40 = vperm.slane %v3413_v18, %v5810_v53  ;;  %v3430_v43 = vmul.f32 %v5817_v29, %v5817_v29  ;;  %v8441_v18 = vld [vmem:[#allocation63_spill] sm:$0xff] }
 0x21f   :  { %8437 = vst [vmem:[#allocation82_spill] sm:$0xff] %v5836_v58  ;;  %v3508_v16 = vsel %vm8231_vm2, %v3506_v37, %v3504_v48  ;;  %v5852_v54 = vmul.f32 %v8439_v47, %v4882_v39  ;;  %v5856_v0 = vmul.f32 %v8441_v18, %v4882_v39  ;;  %v3549_v29 = vsel %vm8231_vm2, %v3548_v35, %v3547_v3 }
 0x220   :  { %8438 = vst [vmem:[#allocation129_spill] sm:$0xff] %v5845_v27  ;;  %v3514_v48 = vperm.slane %v3414_v13, %v5829_v7  ;;  %v3431_v12 = vmul.f32 %v5836_v58, %v5836_v58  ;;  %v3512_v47 = vsel %vm8230_vm3, %v3510_v40, %v3508_v16  ;;  %v3552_v53 = vperm.slane %v3430_v43, %v5829_v7  ;;  %v8462_v58 = vld [vmem:[#allocation34_spill] sm:$0xff]  ;;  %v8464_v7 = vld [vmem:[#allocation41_spill] sm:$0xff] }
 0x221   :  { %8440 = vst [vmem:[#allocation58_spill] sm:$0xff] %v5852_v54  ;;  %v5870_v35 = vadd.s32 4294967184, %v5587_v20  ;;  %v3518_v13 = vperm.slane %v3415_v28, %v5845_v27  ;;  %v5876_v3 = vmul.f32 %v5852_v54, %v5852_v54  ;;  %v5883_v16 = vmul.f32 %v5856_v0, %v5856_v0  ;;  %v8458_v54 = vld [vmem:[#allocation38_spill] sm:$0xff] }
 0x222   :  { %8442 = vst [vmem:[#allocation63_spill] sm:$0xff] %v5856_v0  ;;  %v3516_v40 = vsel %vm8228_vm4, %v3514_v48, %v3512_v47  ;;  %v3554_v43 = vperm.slane %v3431_v12, %v5845_v27  ;;  %v5921_v12 = vmul.f32 %v5547_v30, %v8458_v54  ;;  %v8463_v27 = vld [vmem:[#allocation35_spill] sm:$0xff]  ;;  %v5937_v54 = vmul.f32 %v5551_v44, %v8464_v7  ;;  %v8470_v7 = vld [vmem:[#allocation48_spill] sm:$0xff] }
 0x223   :  { %v1538_v21 = vpop.permute.xlu1 %1537  ;;  %8444 = vst [vmem:[#allocation86_spill] sm:$0xff] %v5865_v41  ;;  %v5899_v0 = vsel %vm8227_vm5, %v3518_v13, %v3516_v40  ;;  %v8457_v40 = vld [vmem:[#allocation36_spill] sm:$0xff]  ;;  %v5959_v11 = vmul.f32 %v5567_v1, %v8470_v7  ;;  %v5979_v7 = vmul.f32 %v5569_v55, %v8475_v23  ;;  %v6053_v20 = vmul.f32 %v5582_v46, %v8492_v6 }
 0x224   :  { %v1573_v37 = vsub.f32 %v5526_v45, %v1538_v21  ;;  %8445 = vst [vmem:[#allocation130_spill] sm:$0xff] %v5870_v35  ;;  %v3551_v45 = vsel %vm8230_vm3, %v3550_v59, %v3549_v29  ;;  %v5889_v29 = vmul.f32 %v5865_v41, %v5865_v41  ;;  %v8450_v21 = vld [vmem:[#allocation90_spill] sm:$0xff]  ;;  %v1660_v48 = vmul.f32 %v5547_v30, %v8457_v40  ;;  %v8501_v6 = vld [vmem:[#allocation60_spill] sm:$0xff] }
 0x225   :  { %8446 = vst [vmem:[#allocation131_spill] sm:$0xff] %v5876_v3  ;;  %v5893_v28 = vmul.f32 %v8450_v21, %v4882_v39  ;;  %v1540_v59 = vpop.permute.xlu0 %1539  ;;  %v3553_v18 = vsel %vm8228_vm4, %v3552_v53, %v3551_v45  ;;  %v8456_v45 = vld [vmem:[#allocation33_spill] sm:$0xff]  ;;  %v8461_v21 = vld [vmem:[#allocation32_spill] sm:$0xff]  ;;  %v1690_v40 = vmul.f32 %v5553_v36, %v8463_v27 }
 0x226   :  { %1783 = vperm.xlu1 %4251, %v1573_v37   ;;  %8447 = vst [vmem:[#allocation132_spill] sm:$0xff] %v5879_v62  ;;  %v1574_v47 = vsub.f32 %v5536_v49, %v1540_v59  ;;  %v5907_v41 = vsel %vm8227_vm5, %v3554_v43, %v3553_v18  ;;  %v1659_v13 = vmul.f32 %v5547_v30, %v8456_v45  ;;  %v8459_v49 = vld [vmem:[#allocation39_spill] sm:$0xff]  ;;  %v8507_v35 = vld [vmem:[#allocation64_spill] sm:$0xff]  ;;  %v8509_v3 = vld [vmem:[#allocation65_spill] sm:$0xff] }
 0x227   :  { %8448 = vst [vmem:[#allocation133_spill] sm:$0xff] %v5883_v16  ;;  %v5913_v53 = vmul.f32 %v5893_v28, %v5893_v28  ;;  %v5925_v43 = vmul.f32 %v5547_v30, %v8459_v49  ;;  %v8460_v59 = vld [vmem:[#allocation27_spill] sm:$0xff]  ;;  %v1689_v45 = vmul.f32 %v5553_v36, %v8462_v58  ;;  %v5941_v30 = vmul.f32 %v5551_v44, %v8465_v4  ;;  %v8466_v49 = vld [vmem:[#allocation45_spill] sm:$0xff] }
 0x228   :  { %8449 = vst [vmem:[#allocation134_spill] sm:$0xff] %v5889_v29  ;;  %v1657_v18 = vmul.f32 %v5553_v36, %v8460_v59  ;;  %v8467_v59 = vld [vmem:[#allocation46_spill] sm:$0xff]  ;;  %v8468_v58 = vld [vmem:[#allocation19_spill] sm:$0xff]  ;;  %v8471_v4 = vld [vmem:[#allocation49_spill] sm:$0xff] }
 0x229   :  { %8451 = vst [vmem:[#allocation90_spill] sm:$0xff] %v5893_v28  ;;  %v1658_v28 = vmul.f32 %v5553_v36, %v8461_v21  ;;  %v5949_v21 = vmul.f32 %v5551_v44, %v8467_v59  ;;  %v1665_v50 = vmul.f32 %v5567_v1, %v8468_v58  ;;  %v8469_v36 = vld [vmem:[#allocation47_spill] sm:$0xff]  ;;  %v5963_v17 = vmul.f32 %v5567_v1, %v8471_v4  ;;  %v8474_v58 = vld [vmem:[#allocation42_spill] sm:$0xff]  ;;  %v5985_v4 = vpop.permute.xlu2 %1654 }
 0x22a   :  { %8453 = vst [vmem:[#allocation136_spill] sm:$0xff] %v5899_v0  ;;  %v5955_v27 = vmul.f32 %v5567_v1, %v8469_v36  ;;  %v5975_v36 = vmul.f32 %v5569_v55, %v8474_v58  ;;  %v5983_v1 = vmul.f32 %v5571_v32, %v8476_v61  ;;  %v8480_v58 = vld [vmem:[#allocation52_spill] sm:$0xff]  ;;  %v8499_v29 = vld [vmem:[#allocation59_spill] sm:$0xff] }
 0x22b   :  { %v5896_v37 = vpop.permute.xlu1 %1644  ;;  %8454 = vst [vmem:[#allocation137_spill] sm:$0xff] %v5907_v41  ;;  %v5997_v9 = vmul.f32 %v5571_v32, %v8480_v58  ;;  %v8485_v58 = vld [vmem:[#allocation55_spill] sm:$0xff]  ;;  %v6069_v24 = vmul.f32 %v5585_v63, %v8499_v29  ;;  %v6073_v41 = vmul.f32 %v5585_v63, %v8501_v6  ;;  %v6085_v29 = vmul.f32 %v5607_v8, %v8507_v35  ;;  %v8511_v0 = vld [vmem:[#allocation28_spill] sm:$0xff] }
 0x22c   :  { %8452 = vst [vmem:[#allocation135_spill] sm:$0xff] %v5896_v37  ;;  %v8517_v62 = vld [vmem:[#allocation87_spill] sm:$0xff] }
 0x22d   :  { %8455 = vst [vmem:[#allocation138_spill] sm:$0xff] %v5913_v53 }
 0x22e   :  { %1788 = vperm.xlu1 %4251, %v1574_v47   ;;  %v5945_v47 = vmul.f32 %v5551_v44, %v8466_v49  ;;  %v8472_v49 = vld [vmem:[#allocation37_spill] sm:$0xff]  ;;  %v8473_v44 = vld [vmem:[#allocation40_spill] sm:$0xff]  ;;  %8477 = vst [vmem:[#allocation33_spill] sm:$0xff] %v5985_v4 }
 0x22f   :  { %v5967_v56 = vmul.f32 %v5569_v55, %v8472_v49  ;;  %v5971_v59 = vmul.f32 %v5569_v55, %v8473_v44  ;;  %v8478_v49 = vld [vmem:[#allocation50_spill] sm:$0xff]  ;;  %v8479_v44 = vld [vmem:[#allocation51_spill] sm:$0xff]  ;;  %v8481_v55 = vld [vmem:[#allocation25_spill] sm:$0xff]  ;;  %8500 = vst [vmem:[#allocation32_spill] sm:$0xff] %v6069_v24 }
 0x230   :  { %v5989_v22 = vmul.f32 %v5571_v32, %v8478_v49  ;;  %v5993_v25 = vmul.f32 %v5571_v32, %v8479_v44  ;;  %v6001_v23 = vmul.f32 %v5577_v60, %v8481_v55  ;;  %v6013_v44 = vmul.f32 %v5577_v60, %v8483_v34  ;;  %8502 = vst [vmem:[#allocation34_spill] sm:$0xff] %v6073_v41 }
 0x231   :  { %v6017_v32 = vmul.f32 %v5577_v60, %v8484_v26  ;;  %v6021_v55 = vmul.f32 %v5577_v60, %v8485_v58  ;;  %v8488_v26 = vld [vmem:[#allocation67_spill] sm:$0xff]  ;;  %v8489_v60 = vld [vmem:[#allocation68_spill] sm:$0xff]  ;;  %8508 = vst [vmem:[#allocation44_spill] sm:$0xff] %v6085_v29 }
 0x232   :  { %v6036_v33 = vmul.f32 %v5579_v5, %v8488_v26  ;;  %v6040_v58 = vmul.f32 %v5579_v5, %v8489_v60  ;;  %v8493_v26 = vld [vmem:[#allocation71_spill] sm:$0xff] }
 0x233   :  { %v6057_v16 = vmul.f32 %v5582_v46, %v8493_v26  ;;  %v8505_v26 = vld [vmem:[#allocation61_spill] sm:$0xff] }
 0x234   :  { %v1724_v61 = vpop.permute.xlu1 %1723 }
 0x235   :  { %v6003_v14 = vadd.f32 %v1724_v61, %v1657_v18  ;;  %v6005_v57 = vadd.f32 %v1724_v61, %v1658_v28  ;;  %v6007_v31 = vadd.f32 %v1724_v61, %v1689_v45  ;;  %v6009_v49 = vadd.f32 %v1724_v61, %v1690_v40  ;;  %v8486_v18 = vld [vmem:[#allocation23_spill] sm:$0xff]  ;;  %v8487_v45 = vld [vmem:[#allocation66_spill] sm:$0xff]  ;;  %8494 = vst [vmem:[#allocation38_spill] sm:$0xff] %v6057_v16 }
 0x236   :  { %v6025_v28 = vmul.f32 %v5579_v5, %v8486_v18  ;;  %v6029_v40 = vmul.f32 %v5579_v5, %v8487_v45  ;;  %v8490_v18 = vld [vmem:[#allocation26_spill] sm:$0xff]  ;;  %v8495_v5 = vld [vmem:[#allocation29_spill] sm:$0xff] }
 0x237   :  { %8482 = vst [vmem:[#allocation36_spill] sm:$0xff] %v6009_v49  ;;  %v4162_v61 = vmul.f32 -1.442695, %v6003_v14  ;;  %v4163_v34 = vmul.f32 -1.442695, %v6005_v57  ;;  %v6044_v42 = vmul.f32 %v5582_v46, %v8490_v18  ;;  %v6061_v60 = vmul.f32 %v5585_v63, %v8495_v5  ;;  %v8497_v18 = vld [vmem:[#allocation56_spill] sm:$0xff] }
 0x238   :  { %v4194_v19 = vmul.f32 -1.442695, %v6007_v31  ;;  %v4195_v45 = vmul.f32 -1.442695, %v6009_v49  ;;  %v6065_v10 = vmul.f32 %v5585_v63, %v8497_v18  ;;  %v8503_v46 = vld [vmem:[#allocation20_spill] sm:$0xff]  ;;  %v6081_v5 = vmul.f32 %v5607_v8, %v8505_v26 }
 0x239   :  { %4290 = vpow2.f32 %v4162_v61  ;;  %8496 = vst [vmem:[#allocation39_spill] sm:$0xff] %v6061_v60  ;;  %v6077_v61 = vmul.f32 %v5607_v8, %v8503_v46  ;;  %v6093_v46 = vmul.f32 %v5607_v8, %v8509_v3  ;;  %v6097_v26 = vmul.f32 %v5738_v38, %v8511_v0 }
 0x23a   :  { %8498 = vst [vmem:[#allocation27_spill] sm:$0xff] %v6065_v10  ;;  %4292 = vpow2.f32 %v4163_v34 }
 0x23b   :  { %8504 = vst [vmem:[#allocation35_spill] sm:$0xff] %v6077_v61  ;;  %4294 = vpow2.f32 %v4194_v19  ;;  %v1729_v18 = vpop.permute.xlu0 %1728  ;;  %v1744_v39 = vpop.permute.xlu2 %1743  ;;  %v8513_v19 = vld [vmem:[#allocation83_spill] sm:$0xff] }
 0x23c   :  { %8506 = vst [vmem:[#allocation41_spill] sm:$0xff] %v6081_v5  ;;  %4296 = vpow2.f32 %v4195_v45  ;;  %v6087_v34 = vadd.f32 %v1729_v18, %v1659_v13  ;;  %v6089_v63 = vadd.f32 %v1729_v18, %v1660_v48  ;;  %v1544_v6 = vpop.permute.xlu1 %1543  ;;  %v6101_v53 = vmul.f32 %v5738_v38, %v8513_v19  ;;  %v8515_v13 = vld [vmem:[#allocation85_spill] sm:$0xff]  ;;  %v8519_v19 = vld [vmem:[#allocation30_spill] sm:$0xff] }
 0x23d   :  { %8510 = vst [vmem:[#allocation45_spill] sm:$0xff] %v6093_v46  ;;  %v6104_v35 = vadd.f32 %v1729_v18, %v5921_v12  ;;  %v6108_v48 = vmul.f32 %v5738_v38, %v8515_v13  ;;  %v6111_v45 = vadd.f32 %v1729_v18, %v5925_v43  ;;  %v6121_v12 = vmul.f32 %v5838_v52, %v8519_v19  ;;  %v8522_v43 = vld [vmem:[#allocation72_spill] sm:$0xff] }
 0x23e   :  { %8512 = vst [vmem:[#allocation46_spill] sm:$0xff] %v6097_v26  ;;  %v4164_v8 = vmul.f32 -1.442695, %v6087_v34  ;;  %v4165_v3 = vmul.f32 -1.442695, %v6089_v63  ;;  %v6117_v26 = vmul.f32 %v5738_v38, %v8517_v62  ;;  %v1576_v13 = vsub.f32 %v5560_v15, %v1544_v6 }
 0x23f   :  { %8514 = vst [vmem:[#allocation19_spill] sm:$0xff] %v6101_v53  ;;  %v4291_v0 = vpop.eup %4290  ;;  %v6123_v53 = vadd.f32 %v1744_v39, %v1665_v50  ;;  %v6128_v18 = vmul.f32 %v5838_v52, %v8522_v43  ;;  %v6133_v46 = vadd.f32 %v1744_v39, %v5955_v27  ;;  %v4196_v50 = vmul.f32 -1.442695, %v6104_v35 }
 0x240   :  { %8516 = vst [vmem:[#allocation47_spill] sm:$0xff] %v6108_v48  ;;  %v4293_v48 = vpop.eup %4292  ;;  %v6130_v37 = vadd.f32 1.0, %v4291_v0  ;;  %4298 = vpow2.f32 %v4164_v8  ;;  %v6139_v19 = vadd.f32 %v1744_v39, %v5959_v11  ;;  %1798 = vperm.xlu2 %4253, %v1576_v13   ;;  %v4197_v8 = vmul.f32 -1.442695, %v6111_v45 }
 0x241   :  { %8518 = vst [vmem:[#allocation48_spill] sm:$0xff] %v6117_v26  ;;  %v4295_v38 = vpop.eup %4294  ;;  %v6135_v62 = vadd.f32 1.0, %v4293_v48  ;;  %4300 = vpow2.f32 %v4165_v3  ;;  %v6146_v27 = vadd.f32 %v1744_v39, %v5963_v17  ;;  %v4170_v48 = vmul.f32 -1.442695, %v6123_v53  ;;  %v8530_v17 = vld [vmem:[#allocation73_spill] sm:$0xff] }
 0x242   :  { %8520 = vst [vmem:[#allocation49_spill] sm:$0xff] %v6121_v12  ;;  %v4297_v15 = vpop.eup %4296  ;;  %v6141_v6 = vadd.f32 1.0, %v4295_v38  ;;  %4302 = vrcp.f32 %v6130_v37  ;;  %v2132_v11 = vand.u32 2147483648, %v6130_v37  ;;  %v6165_v38 = vmul.f32 %v5838_v52, %v8530_v17 }
 0x243   :  { %8521 = vst [vmem:[#allocation37_spill] sm:$0xff] %v6123_v53  ;;  %v6148_v0 = vadd.f32 1.0, %v4297_v15  ;;  %4304 = vrcp.f32 %v6135_v62  ;;  %v1749_v3 = vpop.permute.xlu2 %1748  ;;  %v4171_v15 = vmul.f32 -1.442695, %v6133_v46  ;;  %vm2126_vm5 = vweird.f32 %v6130_v37 }
 0x244   :  { %8523 = vst [vmem:[#allocation40_spill] sm:$0xff] %v6128_v18  ;;  %4306 = vrcp.f32 %v6141_v6  ;;  %v6155_v13 = vadd.f32 %v1749_v3, %v5983_v1  ;;  %v6158_v43 = vadd.f32 %v1749_v3, %v5989_v22  ;;  %v6161_v39 = vadd.f32 %v1749_v3, %v5993_v25 }
 0x245   :  { %8524 = vst [vmem:[#allocation42_spill] sm:$0xff] %v6133_v46  ;;  %4308 = vrcp.f32 %v6148_v0  ;;  %v6170_v26 = vadd.f32 %v1749_v3, %v5997_v9  ;;  %v4202_v1 = vmul.f32 -1.442695, %v6139_v19  ;;  %v4203_v22 = vmul.f32 -1.442695, %v6146_v27 }
 0x246   :  { %8525 = vst [vmem:[#allocation43_spill] sm:$0xff] %v6139_v19  ;;  %v4299_v53 = vpop.eup %4298  ;;  %4310 = vpow2.f32 %v4196_v50  ;;  %v2130_v25 = vand.u32 2147483647, %v6130_v37  ;;  %v4172_v17 = vmul.f32 -1.442695, %v6155_v13  ;;  %v6178_v61 = vor.u32 1.1754944e-38, %v2132_v11 }
 0x247   :  { %8526 = vst [vmem:[#allocation22_spill] sm:$0xff] %v6146_v27  ;;  %v4301_v29 = vpop.eup %4300  ;;  %4312 = vpow2.f32 %v4197_v8  ;;  %v6175_v5 = vadd.f32 1.0, %v4299_v53  ;;  %v4173_v50 = vmul.f32 -1.442695, %v6158_v43  ;;  %v4204_v3 = vmul.f32 -1.442695, %v6161_v39 }
 0x248   :  { %8527 = vst [vmem:[#allocation50_spill] sm:$0xff] %v6155_v13  ;;  %v6180_v46 = vpop.eup %4302  ;;  %v6182_v9 = vadd.f32 1.0, %v4301_v29  ;;  %4314 = vpow2.f32 %v4170_v48  ;;  %v6190_v53 = vmul.f32 -1.442695, %v6170_v26  ;;  %v2147_v11 = vand.u32 2147483648, %v6135_v62 }
 0x249   :  { %8528 = vst [vmem:[#allocation51_spill] sm:$0xff] %v6158_v43  ;;  %v6186_v27 = vpop.eup %4304  ;;  %4316 = vrcp.f32 %v6175_v5  ;;  %v2122_v8 = vmul.f32 %v6180_v46, %v6130_v37  ;;  %v1734_v29 = vpop.permute.xlu1 %1733  ;;  %vm2127_vm6 = vweird.f32 %v6180_v46  ;;  %vm2141_vm4 = vweird.f32 %v6135_v62 }
 0x24a   :  { %8529 = vst [vmem:[#allocation52_spill] sm:$0xff] %v6161_v39  ;;  %v6195_v19 = vpop.eup %4306  ;;  %4318 = vrcp.f32 %v6182_v9  ;;  %v2137_v48 = vmul.f32 %v6186_v27, %v6135_v62  ;;  %v2145_v39 = vand.u32 2147483647, %v6135_v62  ;;  %v6208_v13 = vadd.f32 %v1734_v29, %v5971_v59  ;;  %vm2128_vm14 = vmor %vm2126_vm5, %vm2127_vm6 }
 0x24b   :  { %8531 = vst [vmem:[#allocation25_spill] sm:$0xff] %v6165_v38  ;;  %v6202_v43 = vpop.eup %4308  ;;  %4320 = vpow2.f32 %v4171_v15  ;;  %v6211_v38 = vadd.f32 %v1734_v29, %v5975_v36  ;;  %vm2142_vm7 = vweird.f32 %v6186_v27  ;;  %v6215_v12 = vadd.f32 %v1734_v29, %v5979_v7 }
 0x24c   :  { %8532 = vst [vmem:[#allocation53_spill] sm:$0xff] %v6170_v26  ;;  %v6205_v26 = vadd.f32 %v1734_v29, %v5967_v56  ;;  %v4311_v18 = vpop.eup %4310  ;;  %4322 = vpow2.f32 %v4202_v1  ;;  %v2123_v4 = vsub.f32 1.0, %v2122_v8  ;;  %v2138_v15 = vsub.f32 1.0, %v2137_v48  ;;  %vm2143_vm13 = vmor %vm2141_vm4, %vm2142_vm7 }
 0x24d   :  { %8534 = vst [vmem:[#allocation55_spill] sm:$0xff] %v6208_v13  ;;  %v4313_v41 = vpop.eup %4312  ;;  %v6218_v56 = vadd.f32 1.0, %v4311_v18  ;;  %4324 = vpow2.f32 %v4203_v22  ;;  %v2148_v36 = vor.u32 1.1754944e-38, %v2147_v11  ;;  %v6227_v7 = vmul.f32 -1.442695, %v6208_v13 }
 0x24e   :  { %8533 = vst [vmem:[#allocation54_spill] sm:$0xff] %v6205_v26  ;;  %v6221_v59 = vmul.f32 -1.442695, %v6205_v26  ;;  %v4315_v51 = vpop.eup %4314  ;;  %v6224_v24 = vadd.f32 1.0, %v4313_v41  ;;  %4326 = vpow2.f32 %v4172_v17  ;;  %v6230_v1 = vmul.f32 -1.442695, %v6211_v38 }
 0x24f   :  { %8535 = vst [vmem:[#allocation23_spill] sm:$0xff] %v6211_v38  ;;  %vm6232_vm3 = vcmp.eq.f32.partialorder %v2130_v25, 8.507059e+37  ;;  %v6236_v22 = vpop.eup %4316  ;;  %4328 = vrcp.f32 %v6218_v56  ;;  %v6239_v8 = vadd.f32 1.0, %v4315_v51  ;;  %v2124_v41 = vmul.f32 %v6180_v46, %v2123_v4 }
 0x250   :  { %8536 = vst [vmem:[#allocation66_spill] sm:$0xff] %v6215_v12  ;;  %v2139_v17 = vmul.f32 %v6186_v27, %v2138_v15  ;;  %vm6243_vm2 = vcmp.eq.f32.partialorder %v2145_v39, 8.507059e+37  ;;  %v6247_v29 = vpop.eup %4318  ;;  %4330 = vrcp.f32 %v6224_v24  ;;  %v6251_v25 = vmul.f32 -1.442695, %v6215_v12 }
 0x251   :  { %8539 = vst [vmem:[#allocation67_spill] sm:$0xff] %v6239_v8  ;;  %v2152_v48 = vmul.f32 %v6236_v22, %v6175_v5  ;;  %vm2157_vm0 = vweird.f32 %v6236_v22  ;;  %v4321_v51 = vpop.eup %4320  ;;  %4332 = vrcp.f32 %v6239_v8  ;;  %v2125_v4 = vadd.f32 %v6180_v46, %v2124_v41  ;;  %v1739_v12 = vpop.permute.xlu1 %1738 }
 0x252   :  { %v2140_v39 = vadd.f32 %v6186_v27, %v2139_v17  ;;  %vm2156_vm15 = vweird.f32 %v6175_v5  ;;  %v2160_v15 = vand.u32 2147483647, %v6175_v5  ;;  %v4323_v38 = vpop.eup %4322  ;;  %v6261_v13 = vadd.f32 1.0, %v4321_v51 }
 0x253   :  { %4334 = vpow2.f32 %v4173_v50  ;;  %v2153_v26 = vsub.f32 1.0, %v2152_v48  ;;  %v2162_v10 = vand.u32 2147483648, %v6175_v5  ;;  %v4325_v60 = vpop.eup %4324  ;;  %v6264_v16 = vadd.f32 1.0, %v4323_v38 }
 0x254   :  { %4336 = vpow2.f32 %v4204_v3  ;;  %v6267_v41 = vadd.f32 %v1739_v12, %v5937_v54  ;;  %v6270_v17 = vadd.f32 %v1739_v12, %v5941_v30  ;;  %v4327_v8 = vpop.eup %4326  ;;  %v6272_v49 = vadd.f32 1.0, %v4325_v60 }
 0x255   :  { %8542 = vst [vmem:[#allocation68_spill] sm:$0xff] %v6264_v16  ;;  %4338 = vrcp.f32 %v6261_v13  ;;  %v6276_v50 = vadd.f32 %v1739_v12, %v5945_v47  ;;  %v6279_v48 = vadd.f32 %v1739_v12, %v5949_v21  ;;  %v6281_v38 = vpop.eup %4328  ;;  %v6284_v54 = vadd.f32 1.0, %v4327_v8 }
 0x256   :  { %8543 = vst [vmem:[#allocation26_spill] sm:$0xff] %v6270_v17  ;;  %4340 = vrcp.f32 %v6264_v16  ;;  %v4168_v30 = vmul.f32 -1.442695, %v6267_v41  ;;  %v6288_v3 = vmul.f32 -1.442695, %v6270_v17  ;;  %v6294_v47 = vpop.eup %4330  ;;  %v2129_v12 = vsel %vm2128_vm14, %v6180_v46, %v2125_v4 }
 0x257   :  { %8544 = vst [vmem:[#allocation69_spill] sm:$0xff] %v6272_v49  ;;  %4342 = vrcp.f32 %v6272_v49  ;;  %v6298_v21 = vmul.f32 -1.442695, %v6276_v50  ;;  %v6301_v60 = vmul.f32 -1.442695, %v6279_v48  ;;  %v6308_v8 = vpop.eup %4332  ;;  %v2134_v37 = vsel %vm6232_vm3, %v6178_v61, %v2129_v12 }
 0x258   :  { %4344 = vpow2.f32 %v6190_v53  ;;  %v2144_v51 = vsel %vm2143_vm13, %v6186_v27, %v2140_v39  ;;  %v2154_v49 = vmul.f32 %v6236_v22, %v2153_v26  ;;  %v3081_v62 = vmul.f32 %v2134_v37, %v6003_v14  ;;  %vm2158_vm13 = vmor %vm2156_vm15, %vm2157_vm0 }
 0x259   :  { %v4335_v16 = vpop.eup %4334  ;;  %4346 = vrcp.f32 %v6284_v54  ;;  %v2149_v46 = vsel %vm6243_vm2, %v2148_v36, %v2144_v51  ;;  %vm6320_vm14 = vcmp.eq.f32.partialorder %v2160_v15, 8.507059e+37  ;;  %vm2171_vm15 = vweird.f32 %v6182_v9 }
 0x25a   :  { %v4337_v53 = vpop.eup %4336  ;;  %v6324_v17 = vadd.f32 1.0, %v4335_v16  ;;  %4348 = vpow2.f32 %v6221_v59  ;;  %v3082_v61 = vmul.f32 %v2149_v46, %v6005_v57  ;;  %v2155_v26 = vadd.f32 %v6236_v22, %v2154_v49  ;;  %3145 = vst [vmem:[#allocation12] sm:$0xff] %v3081_v62 }
 0x25b   :  { %v6329_v27 = vpop.eup %4338  ;;  %v6331_v18 = vadd.f32 1.0, %v4337_v53  ;;  %4350 = vpow2.f32 %v6227_v7  ;;  %v3209_v14 = vmul.f32 %v3081_v62, %v3081_v62  ;;  %v2163_v16 = vor.u32 1.1754944e-38, %v2162_v10 }
 0x25c   :  { %v6338_v36 = vpop.eup %4340  ;;  %4352 = vrcp.f32 %v6324_v17  ;;  %3146 = vst [vmem:[#allocation12 + $0x8] sm:$0xff] %v3082_v61  ;;  %v3210_v57 = vmul.f32 %v3082_v61, %v3082_v61  ;;  %v2159_v49 = vsel %vm2158_vm13, %v6236_v22, %v2155_v26  ;;  %v2167_v59 = vmul.f32 %v6247_v29, %v6182_v9 }
 0x25d   :  { %v6344_v7 = vpop.eup %4342  ;;  %4354 = vrcp.f32 %v6331_v18  ;;  %v2164_v5 = vsel %vm6320_vm14, %v2163_v16, %v2159_v49  ;;  %vm2172_vm0 = vweird.f32 %v6247_v29  ;;  %v2175_v22 = vand.u32 2147483647, %v6182_v9 }
 0x25e   :  { %v4345_v10 = vpop.eup %4344  ;;  %4356 = vpow2.f32 %v6230_v1  ;;  %v3273_v11 = vadd.f32 %v3210_v57, %v3209_v14  ;;  %v2168_v39 = vsub.f32 1.0, %v2167_v59  ;;  %v2177_v37 = vand.u32 2147483648, %v6182_v9  ;;  %vm2173_vm3 = vmor %vm2171_vm15, %vm2172_vm0 }
 0x25f   :  { %v6353_v15 = vpop.eup %4346  ;;  %v6355_v12 = vadd.f32 1.0, %v4345_v10  ;;  %4358 = vpow2.f32 %v6251_v25  ;;  %v3083_v51 = vmul.f32 %v2164_v5, %v6087_v34  ;;  %vm6361_vm2 = vcmp.eq.f32.partialorder %v2175_v22, 8.507059e+37 }
 0x260   :  { %v4349_v46 = vpop.eup %4348  ;;  %4360 = vpow2.f32 %v4168_v30  ;;  %3274 = vadd.xlane.f32.xlu1 %v3273_v11  ;;  %v2169_v62 = vmul.f32 %v6247_v29, %v2168_v39  ;;  %v2632_v4 = vmul.f32 %v6281_v38, %v6218_v56  ;;  %v2178_v61 = vor.u32 1.1754944e-38, %v2177_v37 }
 0x261   :  { %v4351_v53 = vpop.eup %4350  ;;  %4362 = vrcp.f32 %v6355_v12  ;;  %v6368_v25 = vadd.f32 1.0, %v4349_v46  ;;  %3147 = vst [vmem:[#allocation12 + $0x10] sm:$0xff] %v3083_v51  ;;  %v3211_v34 = vmul.f32 %v3083_v51, %v3083_v51  ;;  %vm2636_vm4 = vweird.f32 %v6218_v56 }
 0x262   :  { %v6370_v26 = vpop.eup %4352  ;;  %v6372_v30 = vadd.f32 1.0, %v4351_v53  ;;  %4364 = vpow2.f32 %v6288_v3  ;;  %v2170_v14 = vadd.f32 %v6247_v29, %v2169_v62  ;;  %v2633_v16 = vsub.f32 1.0, %v2632_v4 }
 0x263   :  { %v6376_v57 = vpop.eup %4354  ;;  %4366 = vrcp.f32 %v6368_v25  ;;  %vm2637_vm5 = vweird.f32 %v6281_v38  ;;  %v2640_v49 = vand.u32 2147483647, %v6218_v56  ;;  %v2642_v10 = vand.u32 2147483648, %v6218_v56 }
 0x264   :  { %v4357_v59 = vpop.eup %4356  ;;  %4368 = vrcp.f32 %v6372_v30  ;;  %v2174_v3 = vsel %vm2173_vm3, %v6247_v29, %v2170_v14  ;;  %v2634_v5 = vmul.f32 %v6281_v38, %v2633_v16  ;;  %vm2638_vm7 = vmor %vm2636_vm4, %vm2637_vm5  ;;  %v2647_v4 = vmul.f32 %v6294_v47, %v6224_v24 }
 0x265   :  { %v4359_v11 = vpop.eup %4358  ;;  %v6390_v39 = vadd.f32 1.0, %v4357_v59  ;;  %4370 = vpow2.f32 %v6298_v21  ;;  %v2179_v9 = vsel %vm6361_vm2, %v2178_v61, %v2174_v3  ;;  %vm6395_vm6 = vcmp.eq.f32.partialorder %v2640_v49, 8.507059e+37  ;;  %v1754_v61 = vpop.permute.xlu0 %1753 }
 0x266   :  { %v4361_v37 = vpop.eup %4360  ;;  %v6399_v51 = vadd.f32 1.0, %v4359_v11  ;;  %4372 = vpow2.f32 %v6301_v60  ;;  %v3084_v29 = vmul.f32 %v2179_v9, %v6089_v63  ;;  %v2635_v46 = vadd.f32 %v6281_v38, %v2634_v5 }
 0x267   :  { %v6404_v62 = vpop.eup %4362  ;;  %4374 = vrcp.f32 %v6390_v39  ;;  %v6407_v21 = vadd.f32 1.0, %v4361_v37  ;;  %v2643_v1 = vor.u32 1.1754944e-38, %v2642_v10  ;;  %vm2651_vm14 = vweird.f32 %v6224_v24 }
 0x268   :  { %v4365_v60 = vpop.eup %4364  ;;  %4376 = vrcp.f32 %v6399_v51  ;;  %3148 = vst [vmem:[#allocation12 + $0x18] sm:$0xff] %v3084_v29  ;;  %v3212_v63 = vmul.f32 %v3084_v29, %v3084_v29  ;;  %v2639_v53 = vsel %vm2638_vm7, %v6281_v38, %v2635_v46  ;;  %v2648_v49 = vsub.f32 1.0, %v2647_v4  ;;  %v1769_v4 = vpop.permute.xlu2 %1768 }
 0x269   :  { %v6418_v14 = vpop.eup %4366  ;;  %v6420_v16 = vadd.f32 1.0, %v4365_v60  ;;  %4378 = vrcp.f32 %v6407_v21  ;;  %v2644_v56 = vsel %vm6395_vm6, %v2643_v1, %v2639_v53  ;;  %vm2652_vm13 = vweird.f32 %v6294_v47 }
 0x26a   :  { %v6425_v59 = vpop.eup %4368  ;;  %v3276_v3 = vadd.f32 %v3212_v63, %v3211_v34  ;;  %v2655_v38 = vand.u32 2147483647, %v6224_v24  ;;  %v2657_v5 = vand.u32 2147483648, %v6224_v24  ;;  %v2649_v11 = vmul.f32 %v6294_v47, %v2648_v49  ;;  %vm2653_vm0 = vmor %vm2651_vm14, %vm2652_vm13 }
 0x26b   :  { %v4371_v10 = vpop.eup %4370  ;;  %4380 = vrcp.f32 %v6420_v16  ;;  %v3115_v9 = vmul.f32 %v2644_v56, %v6104_v35  ;;  %v6434_v22 = vadd.f32 %v1754_v61, %v6001_v23  ;;  %v6443_v1 = vadd.f32 %v1754_v61, %v6013_v44 }
 0x26c   :  { %v4373_v37 = vpop.eup %4372  ;;  %v6436_v29 = vadd.f32 1.0, %v4371_v10  ;;  %3277 = vadd.xlane.f32.xlu0 %v3276_v3  ;;  %vm6438_vm15 = vcmp.eq.f32.partialorder %v2655_v38, 8.507059e+37  ;;  %v2658_v46 = vor.u32 1.1754944e-38, %v2657_v5  ;;  %v2650_v23 = vadd.f32 %v6294_v47, %v2649_v11 }
 0x26d   :  { %8551 = vst [vmem:[#allocation70_spill] sm:$0xff] %v6434_v22  ;;  %v6445_v60 = vpop.eup %4374  ;;  %v6447_v63 = vadd.f32 1.0, %v4373_v37  ;;  %v3243_v35 = vmul.f32 %v3115_v9, %v3115_v9  ;;  %v6451_v53 = vadd.f32 %v1754_v61, %v6017_v32  ;;  %v6461_v44 = vadd.f32 %v1754_v61, %v6021_v55 }
 0x26e   :  { %8554 = vst [vmem:[#allocation71_spill] sm:$0xff] %v6443_v1  ;;  %v6453_v56 = vpop.eup %4376  ;;  %4382 = vrcp.f32 %v6436_v29  ;;  %v4174_v49 = vmul.f32 -1.442695, %v6434_v22  ;;  %v4175_v3 = vmul.f32 -1.442695, %v6443_v1  ;;  %v2654_v32 = vsel %vm2653_vm0, %v6294_v47, %v2650_v23 }
 0x26f   :  { %3179 = vst [vmem:[#allocation12 + $0x110] sm:$0xff] %v3115_v9  ;;  %v6465_v38 = vpop.eup %4378  ;;  %4384 = vrcp.f32 %v6447_v63  ;;  %v4206_v5 = vmul.f32 -1.442695, %v6451_v53  ;;  %v6471_v10 = vadd.f32 %v1769_v4, %v6025_v28  ;;  %v2659_v24 = vsel %vm6438_vm15, %v2658_v46, %v2654_v32 }
 0x270   :  { %8555 = vst [vmem:[#allocation29_spill] sm:$0xff] %v6461_v44  ;;  %4386 = vpow2.f32 %v4174_v49  ;;  %v4207_v55 = vmul.f32 -1.442695, %v6461_v44  ;;  %v6477_v61 = vadd.f32 %v1769_v4, %v6029_v40  ;;  %v3116_v9 = vmul.f32 %v2659_v24, %v6111_v45  ;;  %v8560_v49 = vld [vmem:[#allocation74_spill] sm:$0xff] }
 0x271   :  { %8556 = vst [vmem:[#allocation56_spill] sm:$0xff] %v6471_v10  ;;  %v6479_v11 = vpop.eup %4380  ;;  %4388 = vpow2.f32 %v4175_v3  ;;  %v6483_v47 = vadd.f32 %v1769_v4, %v6036_v33  ;;  %v6486_v28 = vadd.f32 %v1769_v4, %v6040_v58  ;;  %v4180_v37 = vmul.f32 -1.442695, %v6471_v10 }
 0x272   :  { %8557 = vst [vmem:[#allocation59_spill] sm:$0xff] %v6477_v61  ;;  %4390 = vpow2.f32 %v4206_v5  ;;  %v4181_v34 = vmul.f32 -1.442695, %v6477_v61  ;;  %v2602_v40 = vmul.f32 %v6195_v19, %v6141_v6  ;;  %v3244_v46 = vmul.f32 %v3116_v9, %v3116_v9 }
 0x273   :  { %8558 = vst [vmem:[#allocation60_spill] sm:$0xff] %v6483_v47  ;;  %4392 = vpow2.f32 %v4207_v55  ;;  %v4212_v45 = vmul.f32 -1.442695, %v6483_v47  ;;  %v4213_v23 = vmul.f32 -1.442695, %v6486_v28  ;;  %v6498_v58 = vmul.f32 %v5838_v52, %v8560_v49 }
 0x274   :  { %8559 = vst [vmem:[#allocation20_spill] sm:$0xff] %v6486_v28  ;;  %v6494_v33 = vpop.eup %4382  ;;  %4394 = vpow2.f32 %v4180_v37  ;;  %v2603_v4 = vsub.f32 1.0, %v2602_v40  ;;  %vm2606_vm2 = vweird.f32 %v6141_v6  ;;  %v3324_v32 = vadd.f32 %v3244_v46, %v3243_v35 }
 0x275   :  { %3180 = vst [vmem:[#allocation12 + $0x118] sm:$0xff] %v3116_v9  ;;  %v6501_v3 = vpop.eup %4384  ;;  %4396 = vpow2.f32 %v4181_v34  ;;  %v2610_v5 = vand.u32 2147483647, %v6141_v6  ;;  %v2612_v24 = vand.u32 2147483648, %v6141_v6  ;;  %vm2607_vm3 = vweird.f32 %v6195_v19 }
 0x276   :  { %v4387_v55 = vpop.eup %4386  ;;  %4398 = vpow2.f32 %v4212_v45  ;;  %v2604_v9 = vmul.f32 %v6195_v19, %v2603_v4  ;;  %v2617_v52 = vmul.f32 %v6202_v43, %v6148_v0  ;;  %3325 = vadd.xlane.f32.xlu1 %v3324_v32  ;;  %vm2622_vm5 = vweird.f32 %v6202_v43  ;;  %vm2608_vm6 = vmor %vm2606_vm2, %vm2607_vm3 }
 0x277   :  { %v4389_v37 = vpop.eup %4388  ;;  %v6509_v40 = vadd.f32 1.0, %v4387_v55  ;;  %4400 = vpow2.f32 %v4213_v23  ;;  %vm6511_vm4 = vcmp.eq.f32.partialorder %v2610_v5, 8.507059e+37  ;;  %v2613_v34 = vor.u32 1.1754944e-38, %v2612_v24 }
 0x278   :  { %v4391_v46 = vpop.eup %4390  ;;  %v6515_v49 = vadd.f32 1.0, %v4389_v37  ;;  %v2605_v45 = vadd.f32 %v6195_v19, %v2604_v9  ;;  %v2618_v4 = vsub.f32 1.0, %v2617_v52  ;;  %v2625_v23 = vand.u32 2147483647, %v6148_v0  ;;  %v1774_v52 = vpop.permute.xlu2 %1773 }
 0x279   :  { %v4393_v28 = vpop.eup %4392  ;;  %v6519_v47 = vadd.f32 1.0, %v4391_v46  ;;  %4402 = vrcp.f32 %v6509_v40  ;;  %v2627_v32 = vand.u32 2147483648, %v6148_v0  ;;  %vm2621_vm7 = vweird.f32 %v6148_v0 }
 0x27a   :  { %v4395_v5 = vpop.eup %4394  ;;  %v6528_v24 = vadd.f32 1.0, %v4393_v28  ;;  %4404 = vrcp.f32 %v6515_v49  ;;  %v2609_v55 = vsel %vm2608_vm6, %v6195_v19, %v2605_v45  ;;  %v2619_v9 = vmul.f32 %v6202_v43, %v2618_v4  ;;  %vm2623_vm14 = vmor %vm2621_vm7, %vm2622_vm5 }
 0x27b   :  { %v4397_v37 = vpop.eup %4396  ;;  %4406 = vrcp.f32 %v6519_v47  ;;  %v6534_v46 = vadd.f32 1.0, %v4395_v5  ;;  %v2614_v6 = vsel %vm6511_vm4, %v2613_v34, %v2609_v55  ;;  %v2628_v45 = vor.u32 1.1754944e-38, %v2627_v32 }
 0x27c   :  { %v4399_v61 = vpop.eup %4398  ;;  %4408 = vrcp.f32 %v6528_v24  ;;  %v6540_v28 = vadd.f32 1.0, %v4397_v37  ;;  %v2620_v19 = vadd.f32 %v6202_v43, %v2619_v9  ;;  %v3113_v35 = vmul.f32 %v2614_v6, %v6007_v31  ;;  %v8570_v37 = vld [vmem:[#allocation36_spill] sm:$0xff]  ;;  %v8571_v6 = vld [vmem:[#allocation38_spill] sm:$0xff] }
 0x27d   :  { %8563 = vst [vmem:[#allocation61_spill] sm:$0xff] %v6534_v46  ;;  %v4401_v4 = vpop.eup %4400  ;;  %v6543_v10 = vadd.f32 1.0, %v4399_v61  ;;  %4410 = vrcp.f32 %v6534_v46  ;;  %v6550_v0 = vadd.f32 %v1774_v52, %v6044_v42  ;;  %vm2626_vm13 = vcmp.eq.f32.partialorder %v2625_v23, 8.507059e+37  ;;  %v1759_v61 = vpop.permute.xlu1 %1758 }
 0x27e   :  { %8564 = vst [vmem:[#allocation64_spill] sm:$0xff] %v6540_v28  ;;  %4412 = vrcp.f32 %v6540_v28  ;;  %v2624_v34 = vsel %vm2623_vm14, %v6202_v43, %v2620_v19  ;;  %v6555_v32 = vadd.f32 %v1774_v52, %v6049_v2  ;;  %v6559_v55 = vadd.f32 1.0, %v4401_v4 }
 0x27f   :  { %8565 = vst [vmem:[#allocation65_spill] sm:$0xff] %v6543_v10  ;;  %v6557_v5 = vpop.eup %4402  ;;  %4414 = vrcp.f32 %v6543_v10  ;;  %v2629_v9 = vsel %vm2626_vm13, %v2628_v45, %v2624_v34  ;;  %v6563_v42 = vadd.f32 %v1774_v52, %v6053_v20  ;;  %v3241_v23 = vmul.f32 %v3113_v35, %v3113_v35  ;;  %v8573_v34 = vld [vmem:[#allocation39_spill] sm:$0xff] }
 0x280   :  { %8566 = vst [vmem:[#allocation28_spill] sm:$0xff] %v6550_v0  ;;  %v6565_v31 = vpop.eup %4404  ;;  %v3114_v43 = vmul.f32 %v2629_v9, %v8570_v37  ;;  %v6569_v2 = vadd.f32 %v1774_v52, %v8571_v6  ;;  %v4182_v19 = vmul.f32 -1.442695, %v6550_v0  ;;  %v4183_v4 = vmul.f32 -1.442695, %v6555_v32  ;;  %v8575_v20 = vld [vmem:[#allocation27_spill] sm:$0xff] }
 0x281   :  { %8567 = vst [vmem:[#allocation83_spill] sm:$0xff] %v6555_v32  ;;  %v6572_v28 = vpop.eup %4406  ;;  %v4214_v45 = vmul.f32 -1.442695, %v6563_v42  ;;  %v6577_v10 = vadd.f32 %v1759_v61, %v8573_v34  ;;  %v6580_v46 = vadd.f32 %v1759_v61, %v8575_v20  ;;  %v8577_v9 = vld [vmem:[#allocation32_spill] sm:$0xff]  ;;  %v8579_v32 = vld [vmem:[#allocation21_spill] sm:$0xff]  ;;  %v8580_v0 = vld [vmem:[#allocation126_spill] sm:$0xff]  ;;  %vm2186_vm15 = vweird.f32 %v6368_v25 }
 0x282   :  { %8568 = vst [vmem:[#allocation85_spill] sm:$0xff] %v6559_v55  ;;  %v6582_v1 = vpop.eup %4408  ;;  %4416 = vpow2.f32 %v4182_v19  ;;  %v4215_v52 = vmul.f32 -1.442695, %v6569_v2  ;;  %v6586_v37 = vadd.f32 %v1759_v61, %v8577_v9  ;;  %v8582_v34 = vld [vmem:[#allocation34_spill] sm:$0xff]  ;;  %vm2187_vm0 = vweird.f32 %v6418_v14 }
 0x283   :  { %3177 = vst [vmem:[#allocation12 + $0x100] sm:$0xff] %v3113_v35  ;;  %v3242_v35 = vmul.f32 %v3114_v43, %v3114_v43  ;;  %v6588_v6 = vpop.eup %4410  ;;  %4418 = vpow2.f32 %v4183_v4  ;;  %v6595_v20 = vadd.f32 %v1759_v61, %v8582_v34  ;;  %v4176_v22 = vmul.f32 -1.442695, %v6577_v10  ;;  %v8590_v61 = vld [vmem:[#allocation77_spill] sm:$0xff]  ;;  %vm2188_vm3 = vmor %vm2186_vm15, %vm2187_vm0 }
 0x284   :  { %8569 = vst [vmem:[#allocation87_spill] sm:$0xff] %v6563_v42  ;;  %v6592_v42 = vmul.f32 %v8580_v0, %v8579_v32  ;;  %v6598_v44 = vpop.eup %4412  ;;  %4420 = vpow2.f32 %v4214_v45  ;;  %v8588_v32 = vld [vmem:[#allocation76_spill] sm:$0xff]  ;;  %v6614_v34 = vmul.f32 %v8580_v0, %v8590_v61  ;;  %v4208_v45 = vmul.f32 -1.442695, %v6586_v37 }
 0x285   :  { %8572 = vst [vmem:[#allocation30_spill] sm:$0xff] %v6569_v2  ;;  %v3321_v9 = vadd.f32 %v3242_v35, %v3241_v23  ;;  %v2182_v2 = vmul.f32 %v6418_v14, %v6368_v25  ;;  %v6610_v4 = vmul.f32 %v8580_v0, %v8588_v32  ;;  %4422 = vpow2.f32 %v4215_v52 }
 0x286   :  { %8574 = vst [vmem:[#allocation72_spill] sm:$0xff] %v6577_v10  ;;  %4424 = vrcp.f32 %v6559_v55  ;;  %v4209_v32 = vmul.f32 -1.442695, %v6595_v20  ;;  %vm2202_vm2 = vweird.f32 %v6425_v59  ;;  %vm2201_vm5 = vweird.f32 %v6372_v30 }
 0x287   :  { %8576 = vst [vmem:[#allocation73_spill] sm:$0xff] %v6580_v46  ;;  %3322 = vadd.xlane.f32.xlu2 %v3321_v9  ;;  %v2183_v35 = vsub.f32 1.0, %v2182_v2  ;;  %4426 = vpow2.f32 %v4176_v22  ;;  %v2190_v9 = vand.u32 2147483647, %v6368_v25  ;;  %vm2203_vm6 = vmor %vm2201_vm5, %vm2202_vm2  ;;  %vm2667_vm14 = vweird.f32 %v6445_v60 }
 0x288   :  { %3178 = vst [vmem:[#allocation12 + $0x108] sm:$0xff] %v3114_v43  ;;  %v8585_v43 = vld [vmem:[#allocation75_spill] sm:$0xff]  ;;  %vm2666_vm13 = vweird.f32 %v6390_v39  ;;  %vm2682_vm2 = vweird.f32 %v6453_v56 }
 0x289   :  { %8578 = vst [vmem:[#allocation74_spill] sm:$0xff] %v6588_v6  ;;  %v6602_v19 = vmul.f32 %v8580_v0, %v8585_v43  ;;  %v6606_v6 = vpop.eup %4414  ;;  %v8592_v43 = vld [vmem:[#allocation31_spill] sm:$0xff]  ;;  %v2197_v0 = vmul.f32 %v6425_v59, %v6372_v30  ;;  %v2184_v61 = vmul.f32 %v6418_v14, %v2183_v35  ;;  %v2662_v35 = vmul.f32 %v6445_v60, %v6390_v39  ;;  %vm2668_vm15 = vmor %vm2666_vm13, %vm2667_vm14 }
 0x28a   :  { %8581 = vst [vmem:[#allocation36_spill] sm:$0xff] %v6592_v42  ;;  %v4417_v52 = vpop.eup %4416  ;;  %vm2191_vm4 = vcmp.eq.f32.partialorder %v2190_v9, 8.507059e+37  ;;  %vm2712_vm14 = vweird.f32 %v6501_v3 }
 0x28b   :  { %8583 = vst [vmem:[#allocation38_spill] sm:$0xff] %v6595_v20  ;;  %v6631_v55 = vadd.f32 1.0, %v4417_v52  ;;  %v2198_v22 = vsub.f32 1.0, %v2197_v0  ;;  %v2205_v0 = vand.u32 2147483647, %v6372_v30 }
 0x28c   :  { %8584 = vst [vmem:[#allocation39_spill] sm:$0xff] %v6598_v44  ;;  %v4177_v44 = vmul.f32 -1.442695, %v6580_v46  ;;  %v2185_v46 = vadd.f32 %v6418_v14, %v2184_v61 }
 0x28d   :  { %8586 = vst [vmem:[#allocation27_spill] sm:$0xff] %v6602_v19  ;;  %v8593_v19 = vld [vmem:[#allocation33_spill] sm:$0xff]  ;;  %vm2206_vm7 = vcmp.eq.f32.partialorder %v2205_v0, 8.507059e+37  ;;  %v2670_v0 = vand.u32 2147483647, %v6390_v39 }
 0x28e   :  { %8587 = vst [vmem:[#allocation32_spill] sm:$0xff] %v6606_v6  ;;  %v6619_v23 = vmul.f32 %v8593_v19, %v8592_v43  ;;  %v2192_v6 = vand.u32 2147483648, %v6368_v25  ;;  %v4419_v43 = vpop.eup %4418  ;;  %4428 = vpow2.f32 %v4177_v44  ;;  %v2199_v44 = vmul.f32 %v6425_v59, %v2198_v22 }
 0x28f   :  { %8589 = vst [vmem:[#allocation21_spill] sm:$0xff] %v6610_v4  ;;  %v4421_v2 = vpop.eup %4420  ;;  %4430 = vpow2.f32 %v4208_v45  ;;  %v6638_v4 = vadd.f32 1.0, %v4419_v43  ;;  %v2189_v61 = vsel %vm2188_vm3, %v6418_v14, %v2185_v46  ;;  %v8601_v14 = vld [vmem:[#allocation88_spill] sm:$0xff]  ;;  %vm2671_vm0 = vcmp.eq.f32.partialorder %v2670_v0, 8.507059e+37 }
 0x290   :  { %8591 = vst [vmem:[#allocation126_spill] sm:$0xff] %v6614_v34  ;;  %v4423_v34 = vpop.eup %4422  ;;  %v2193_v52 = vor.u32 1.1754944e-38, %v2192_v6  ;;  %v6646_v45 = vadd.f32 1.0, %v4421_v2  ;;  %4432 = vpow2.f32 %v4209_v32  ;;  %v2200_v25 = vadd.f32 %v6425_v59, %v2199_v44  ;;  %v8600_v2 = vld [vmem:[#allocation54_spill] sm:$0xff]  ;;  %v8603_v44 = vld [vmem:[#allocation55_spill] sm:$0xff] }
 0x291   :  { %8594 = vst [vmem:[#allocation34_spill] sm:$0xff] %v6619_v23  ;;  %v2207_v23 = vand.u32 2147483648, %v6372_v30  ;;  %v6644_v42 = vpop.eup %4424  ;;  %4434 = vrcp.f32 %v6631_v55  ;;  %v6652_v6 = vadd.f32 1.0, %v4423_v34  ;;  %v2663_v32 = vsub.f32 1.0, %v2662_v35  ;;  %v8602_v34 = vld [vmem:[#allocation89_spill] sm:$0xff] }
 0x292   :  { %8595 = vst [vmem:[#allocation75_spill] sm:$0xff] %v6631_v55  ;;  %v4427_v10 = vpop.eup %4426  ;;  %v2194_v43 = vsel %vm2191_vm4, %v2193_v52, %v2189_v61  ;;  %v6659_v46 = vmul.f32 %v8593_v19, %v8601_v14  ;;  %4436 = vrcp.f32 %v6638_v4  ;;  %v2204_v9 = vsel %vm2203_vm6, %v6425_v59, %v2200_v25  ;;  %v1779_v14 = vpop.permute.xlu0 %1778 }
 0x293   :  { %8596 = vst [vmem:[#allocation76_spill] sm:$0xff] %v6638_v4  ;;  %v2208_v22 = vor.u32 1.1754944e-38, %v2207_v23  ;;  %v6665_v52 = vmul.f32 %v8593_v19, %v8602_v34  ;;  %4438 = vrcp.f32 %v6646_v45  ;;  %v6668_v23 = vadd.f32 1.0, %v4427_v10 }
 0x294   :  { %8597 = vst [vmem:[#allocation77_spill] sm:$0xff] %v6644_v42  ;;  %v3085_v42 = vmul.f32 %v2194_v43, %v8600_v2  ;;  %v4429_v20 = vpop.eup %4428  ;;  %v2664_v2 = vmul.f32 %v6445_v60, %v2663_v32  ;;  %4440 = vrcp.f32 %v6652_v6  ;;  %v2672_v25 = vand.u32 2147483648, %v6390_v39 }
 0x295   :  { %8598 = vst [vmem:[#allocation31_spill] sm:$0xff] %v6646_v45  ;;  %v4431_v30 = vpop.eup %4430  ;;  %v2209_v35 = vsel %vm2206_vm7, %v2208_v22, %v2204_v9  ;;  %v2677_v10 = vmul.f32 %v6453_v56, %v6399_v51  ;;  %v6680_v9 = vadd.f32 1.0, %v4429_v20  ;;  %v2687_v20 = vand.u32 2147483648, %v6399_v51  ;;  %v1764_v45 = vpop.permute.xlu1 %1763 }
 0x296   :  { %8599 = vst [vmem:[#allocation33_spill] sm:$0xff] %v6652_v6  ;;  %v3086_v61 = vmul.f32 %v2209_v35, %v8603_v44  ;;  %v3213_v43 = vmul.f32 %v3085_v42, %v3085_v42  ;;  %v4433_v59 = vpop.eup %4432  ;;  %v2665_v32 = vadd.f32 %v6445_v60, %v2664_v2  ;;  %v2673_v34 = vor.u32 1.1754944e-38, %v2672_v25  ;;  %v8609_v25 = vld [vmem:[#allocation40_spill] sm:$0xff] }
 0x297   :  { %3149 = vst [vmem:[#allocation12 + $0x20] sm:$0xff] %v3085_v42  ;;  %v6678_v22 = vpop.eup %4434  ;;  %v2678_v35 = vsub.f32 1.0, %v2677_v10  ;;  %v2685_v0 = vand.u32 2147483647, %v6399_v51  ;;  %v6697_v10 = vadd.f32 %v1779_v14, %v8609_v25  ;;  %vm2681_vm3 = vweird.f32 %v6399_v51 }
 0x298   :  { %8604 = vst [vmem:[#allocation54_spill] sm:$0xff] %v6678_v22  ;;  %v3214_v42 = vmul.f32 %v3086_v61, %v3086_v61  ;;  %v6685_v44 = vpop.eup %4436  ;;  %v2669_v55 = vsel %vm2668_vm15, %v6445_v60, %v2665_v32  ;;  %v8606_v22 = vld [vmem:[#allocation49_spill] sm:$0xff]  ;;  %v8611_v60 = vld [vmem:[#allocation23_spill] sm:$0xff]  ;;  %4442 = vrcp.f32 %v6668_v23  ;;  %vm2683_vm4 = vmor %vm2681_vm3, %vm2682_vm2  ;;  %vm2697_vm6 = vweird.f32 %v6494_v33 }
 0x299   :  { %3150 = vst [vmem:[#allocation12 + $0x28] sm:$0xff] %v3086_v61  ;;  %v6690_v6 = vadd.f32 %v1779_v14, %v8606_v22  ;;  %v6692_v61 = vpop.eup %4438  ;;  %v2674_v2 = vsel %vm2671_vm0, %v2673_v34, %v2669_v55  ;;  %v2679_v39 = vmul.f32 %v6453_v56, %v2678_v35  ;;  %v6706_v22 = vadd.f32 %v1779_v14, %v6498_v58 }
 0x29a   :  { %8605 = vst [vmem:[#allocation88_spill] sm:$0xff] %v6685_v44  ;;  %v3279_v4 = vadd.f32 %v3214_v42, %v3213_v43  ;;  %v6699_v44 = vadd.f32 1.0, %v4431_v30  ;;  %v3117_v43 = vmul.f32 %v2674_v2, %v8611_v60  ;;  %v8612_v42 = vld [vmem:[#allocation25_spill] sm:$0xff]  ;;  %v6708_v55 = vpop.eup %4440  ;;  %v4185_v30 = vmul.f32 -1.442695, %v6697_v10 }
 0x29b   :  { %8607 = vst [vmem:[#allocation89_spill] sm:$0xff] %v6690_v6  ;;  %v6703_v32 = vadd.f32 %v1779_v14, %v8612_v42  ;;  %v2680_v34 = vadd.f32 %v6453_v56, %v2679_v39  ;;  %v4184_v35 = vmul.f32 -1.442695, %v6690_v6  ;;  %v8616_v14 = vld [vmem:[#allocation35_spill] sm:$0xff]  ;;  %4444 = vrcp.f32 %v6680_v9  ;;  %v8618_v39 = vld [vmem:[#allocation41_spill] sm:$0xff]  ;;  %v8621_v6 = vld [vmem:[#allocation66_spill] sm:$0xff] }
 0x29c   :  { %8608 = vst [vmem:[#allocation55_spill] sm:$0xff] %v6692_v61  ;;  %3280 = vadd.xlane.f32.xlu0 %v3279_v4  ;;  %v2688_v4 = vor.u32 1.1754944e-38, %v2687_v20  ;;  %v6719_v2 = vadd.f32 %v1764_v45, %v8616_v14  ;;  %vm2686_vm5 = vcmp.eq.f32.partialorder %v2685_v0, 8.507059e+37  ;;  %v6724_v25 = vadd.f32 %v1764_v45, %v8618_v39  ;;  %v8622_v61 = vld [vmem:[#allocation91_spill] sm:$0xff] }
 0x29d   :  { %8610 = vst [vmem:[#allocation49_spill] sm:$0xff] %v6697_v10  ;;  %v4216_v58 = vmul.f32 -1.442695, %v6703_v32  ;;  %v2684_v51 = vsel %vm2683_vm4, %v6453_v56, %v2680_v34  ;;  %v6726_v60 = vadd.f32 1.0, %v4433_v59  ;;  %4446 = vpow2.f32 %v4184_v35  ;;  %v8620_v10 = vld [vmem:[#allocation44_spill] sm:$0xff]  ;;  %v8623_v34 = vld [vmem:[#allocation45_spill] sm:$0xff] }
 0x29e   :  { %8613 = vst [vmem:[#allocation40_spill] sm:$0xff] %v6703_v32  ;;  %v2689_v42 = vsel %vm2686_vm5, %v2688_v4, %v2684_v51  ;;  %v6729_v20 = vadd.f32 %v1764_v45, %v8620_v10  ;;  %4448 = vpow2.f32 %v4185_v30  ;;  %v4217_v14 = vmul.f32 -1.442695, %v6706_v22  ;;  %v6745_v35 = vpop.eup %4442 }
 0x29f   :  { %8614 = vst [vmem:[#allocation23_spill] sm:$0xff] %v6706_v22  ;;  %v3118_v32 = vmul.f32 %v2689_v42, %v8621_v6  ;;  %v6735_v56 = vmul.f32 %v8593_v19, %v8622_v61  ;;  %4450 = vpow2.f32 %v4216_v58  ;;  %v4178_v0 = vmul.f32 -1.442695, %v6719_v2 }
 0x2a0   :  { %8615 = vst [vmem:[#allocation25_spill] sm:$0xff] %v6708_v55  ;;  %v3245_v55 = vmul.f32 %v3117_v43, %v3117_v43  ;;  %v2692_v59 = vmul.f32 %v6494_v33, %v6436_v29  ;;  %4452 = vrcp.f32 %v6699_v44  ;;  %v6742_v6 = vadd.f32 %v1764_v45, %v8623_v34 }
 0x2a1   :  { %3181 = vst [vmem:[#allocation12 + $0x120] sm:$0xff] %v3117_v43  ;;  %v3246_v10 = vmul.f32 %v3118_v32, %v3118_v32  ;;  %v4179_v43 = vmul.f32 -1.442695, %v6724_v25  ;;  %4454 = vrcp.f32 %v6726_v60  ;;  %v4210_v19 = vmul.f32 -1.442695, %v6729_v20  ;;  %v6751_v4 = vpop.eup %4444 }
 0x2a2   :  { %8617 = vst [vmem:[#allocation35_spill] sm:$0xff] %v6719_v2  ;;  %v2693_v61 = vsub.f32 1.0, %v2692_v59  ;;  %v2707_v30 = vmul.f32 %v6501_v3, %v6447_v63  ;;  %4456 = vpow2.f32 %v4217_v14  ;;  %v2702_v45 = vand.u32 2147483648, %v6436_v29 }
 0x2a3   :  { %8619 = vst [vmem:[#allocation41_spill] sm:$0xff] %v6724_v25  ;;  %v3327_v58 = vadd.f32 %v3246_v10, %v3245_v55  ;;  %4458 = vpow2.f32 %v4178_v0  ;;  %v2700_v39 = vand.u32 2147483647, %v6436_v29  ;;  %v4211_v59 = vmul.f32 -1.442695, %v6742_v6 }
 0x2a4   :  { %3182 = vst [vmem:[#allocation12 + $0x128] sm:$0xff] %v3118_v32  ;;  %v4447_v32 = vpop.eup %4446  ;;  %v2694_v51 = vmul.f32 %v6494_v33, %v2693_v61  ;;  %v2708_v42 = vsub.f32 1.0, %v2707_v30  ;;  %4460 = vpow2.f32 %v4179_v43  ;;  %vm2696_vm7 = vweird.f32 %v6436_v29 }
 0x2a5   :  { %v4449_v34 = vpop.eup %4448  ;;  %3328 = vadd.xlane.f32.xlu2 %v3327_v58  ;;  %v2717_v55 = vand.u32 2147483648, %v6447_v63  ;;  %v2715_v0 = vand.u32 2147483647, %v6447_v63  ;;  %v6766_v30 = vadd.f32 1.0, %v4447_v32  ;;  %4462 = vpow2.f32 %v4210_v19  ;;  %vm2698_vm13 = vmor %vm2696_vm7, %vm2697_vm6 }
 0x2a6   :  { %v4451_v14 = vpop.eup %4450  ;;  %v2695_v10 = vadd.f32 %v6494_v33, %v2694_v51  ;;  %v2709_v22 = vmul.f32 %v6501_v3, %v2708_v42  ;;  %v2703_v29 = vor.u32 1.1754944e-38, %v2702_v45  ;;  %vm2711_vm15 = vweird.f32 %v6447_v63 }
 0x2a7   :  { %v6764_v61 = vpop.eup %4452  ;;  %8624 = vst [vmem:[#allocation44_spill] sm:$0xff] %v6766_v30  ;;  %v6773_v58 = vadd.f32 1.0, %v4449_v34  ;;  %vm2701_vm0 = vcmp.eq.f32.partialorder %v2700_v39, 8.507059e+37  ;;  %v6777_v2 = vadd.f32 1.0, %v4451_v14  ;;  %vm2713_vm2 = vmor %vm2711_vm15, %vm2712_vm14  ;;  %v2718_v19 = vor.u32 1.1754944e-38, %v2717_v55  ;;  %v8628_v14 = vld [vmem:[#allocation135_spill] sm:$0xff] }
 0x2a8   :  { %v6771_v43 = vpop.eup %4454  ;;  %v2699_v51 = vsel %vm2698_vm13, %v6494_v33, %v2695_v10  ;;  %v2710_v42 = vadd.f32 %v6501_v3, %v2709_v22  ;;  %v2212_v63 = vmul.f32 %v6465_v38, %v6407_v21  ;;  %4464 = vpow2.f32 %v4211_v59  ;;  %v8627_v22 = vld [vmem:[#allocation24_spill] sm:$0xff] }
 0x2a9   :  { %8625 = vst [vmem:[#allocation66_spill] sm:$0xff] %v6773_v58  ;;  %v4457_v25 = vpop.eup %4456  ;;  %v2704_v32 = vsel %vm2701_vm0, %v2703_v29, %v2699_v51  ;;  %vm2716_vm3 = vcmp.eq.f32.partialorder %v2715_v0, 8.507059e+37  ;;  %v6789_v10 = vmul.f32 %v8628_v14, %v8627_v22  ;;  %4466 = vrcp.f32 %v6766_v30 }
 0x2aa   :  { %8626 = vst [vmem:[#allocation91_spill] sm:$0xff] %v6777_v2  ;;  %v4459_v45 = vpop.eup %4458  ;;  %v2714_v34 = vsel %vm2713_vm2, %v6501_v3, %v2710_v42  ;;  %v3119_v33 = vmul.f32 %v2704_v32, %v6276_v50  ;;  %v2213_v55 = vsub.f32 1.0, %v2212_v63  ;;  %v6792_v51 = vadd.f32 1.0, %v4457_v25 }
 0x2ab   :  { %v6785_v39 = vpop.eup %4460  ;;  %v2719_v29 = vsel %vm2716_vm3, %v2718_v19, %v2714_v34  ;;  %4468 = vrcp.f32 %v6773_v58  ;;  %vm2217_vm4 = vweird.f32 %v6465_v38  ;;  %v2220_v42 = vand.u32 2147483647, %v6407_v21 }
 0x2ac   :  { %v3120_v59 = vmul.f32 %v2719_v29, %v6279_v48  ;;  %v3247_v3 = vmul.f32 %v3119_v33, %v3119_v33  ;;  %3183 = vst [vmem:[#allocation12 + $0x130] sm:$0xff] %v3119_v33  ;;  %v6796_v0 = vpop.eup %4462  ;;  %4470 = vrcp.f32 %v6777_v2  ;;  %v2214_v50 = vmul.f32 %v6465_v38, %v2213_v55 }
 0x2ad   :  { %v6802_v32 = vadd.f32 1.0, %v4459_v45  ;;  %v2222_v19 = vand.u32 2147483648, %v6407_v21  ;;  %v2227_v48 = vmul.f32 %v6479_v11, %v6420_v16  ;;  %vm2216_vm5 = vweird.f32 %v6407_v21  ;;  %v8630_v21 = vld [vmem:[#allocation67_spill] sm:$0xff] }
 0x2ae   :  { %3184 = vst [vmem:[#allocation12 + $0x138] sm:$0xff] %v3120_v59  ;;  %v3248_v25 = vmul.f32 %v3120_v59, %v3120_v59  ;;  %v2215_v63 = vadd.f32 %v6465_v38, %v2214_v50  ;;  %vm2231_vm6 = vweird.f32 %v6420_v16  ;;  %v2235_v34 = vand.u32 2147483647, %v6420_v16  ;;  %v6811_v33 = vpop.eup %4464  ;;  %vm2218_vm7 = vmor %vm2216_vm5, %vm2217_vm4 }
 0x2af   :  { %v2223_v45 = vor.u32 1.1754944e-38, %v2222_v19  ;;  %v2228_v29 = vsub.f32 1.0, %v2227_v48  ;;  %v2237_v55 = vand.u32 2147483648, %v6420_v16  ;;  %v6814_v59 = vpop.eup %4466  ;;  %vm2221_vm14 = vcmp.eq.f32.partialorder %v2220_v42, 8.507059e+37 }
 0x2b0   :  { %v3330_v22 = vadd.f32 %v3248_v25, %v3247_v3  ;;  %8629 = vst [vmem:[#allocation45_spill] sm:$0xff] %v6814_v59  ;;  %v2219_v58 = vsel %vm2218_vm7, %v6465_v38, %v2215_v63  ;;  %vm2232_vm13 = vweird.f32 %v6479_v11  ;;  %v2242_v50 = vmul.f32 %v6308_v8, %v8630_v21 }
 0x2b1   :  { %v6820_v30 = vpop.eup %4468  ;;  %v2224_v2 = vsel %vm2221_vm14, %v2223_v45, %v2219_v58  ;;  %v2229_v3 = vmul.f32 %v6479_v11, %v2228_v29  ;;  %vm6823_vm15 = vcmp.eq.f32.partialorder %v2235_v34, 8.507059e+37  ;;  %vm2246_vm0 = vweird.f32 %v8630_v21  ;;  %vm2233_vm3 = vmor %vm2231_vm6, %vm2232_vm13 }
 0x2b2   :  { %8631 = vst [vmem:[#allocation24_spill] sm:$0xff] %v6820_v30  ;;  %3331 = vadd.xlane.f32.xlu0 %v3330_v22  ;;  %v6828_v19 = vpop.eup %4470  ;;  %v3087_v38 = vmul.f32 %v2224_v2, %v6267_v41  ;;  %v2243_v42 = vsub.f32 1.0, %v2242_v50  ;;  %v2250_v48 = vand.u32 2147483647, %v8630_v21  ;;  %v2252_v63 = vand.u32 2147483648, %v8630_v21  ;;  %v8636_v30 = vld [vmem:[#allocation26_spill] sm:$0xff] }
 0x2b3   :  { %v2230_v22 = vadd.f32 %v6479_v11, %v2229_v3  ;;  %v2238_v58 = vor.u32 1.1754944e-38, %v2237_v55  ;;  %vm2247_vm2 = vweird.f32 %v6308_v8  ;;  %v2257_v34 = vmul.f32 %v6329_v27, %v6261_v13 }
 0x2b4   :  { %v3215_v45 = vmul.f32 %v3087_v38, %v3087_v38  ;;  %3151 = vst [vmem:[#allocation12 + $0x30] sm:$0xff] %v3087_v38  ;;  %v2244_v41 = vmul.f32 %v6308_v8, %v2243_v42  ;;  %vm2261_vm4 = vweird.f32 %v6261_v13  ;;  %vm2262_vm5 = vweird.f32 %v6329_v27  ;;  %vm2248_vm6 = vmor %vm2246_vm0, %vm2247_vm2 }
 0x2b5   :  { %v2234_v2 = vsel %vm2233_vm3, %v6479_v11, %v2230_v22  ;;  %vm6845_vm7 = vcmp.eq.f32.partialorder %v2250_v48, 8.507059e+37  ;;  %v2258_v55 = vsub.f32 1.0, %v2257_v34  ;;  %v2267_v50 = vand.u32 2147483648, %v6261_v13  ;;  %vm2263_vm13 = vmor %vm2261_vm4, %vm2262_vm5 }
 0x2b6   :  { %v2239_v16 = vsel %vm6823_vm15, %v2238_v58, %v2234_v2  ;;  %v2245_v3 = vadd.f32 %v6308_v8, %v2244_v41  ;;  %v2253_v38 = vor.u32 1.1754944e-38, %v2252_v63  ;;  %v2272_v42 = vmul.f32 %v6353_v15, %v6284_v54  ;;  %v8637_v2 = vld [vmem:[#allocation37_spill] sm:$0xff] }
 0x2b7   :  { %v3088_v59 = vmul.f32 %v2239_v16, %v8636_v30  ;;  %v2259_v11 = vmul.f32 %v6329_v27, %v2258_v55  ;;  %v2265_v48 = vand.u32 2147483647, %v6261_v13  ;;  %vm2276_vm14 = vweird.f32 %v6284_v54 }
 0x2b8   :  { %v2249_v25 = vsel %vm2248_vm6, %v6308_v8, %v2245_v3  ;;  %v2268_v22 = vor.u32 1.1754944e-38, %v2267_v50  ;;  %v2273_v63 = vsub.f32 1.0, %v2272_v42  ;;  %v2280_v58 = vand.u32 2147483647, %v6284_v54 }
 0x2b9   :  { %3152 = vst [vmem:[#allocation12 + $0x38] sm:$0xff] %v3088_v59  ;;  %v3216_v34 = vmul.f32 %v3088_v59, %v3088_v59  ;;  %v2254_v30 = vsel %vm6845_vm7, %v2253_v38, %v2249_v25  ;;  %v2260_v21 = vadd.f32 %v6329_v27, %v2259_v11  ;;  %v2282_v41 = vand.u32 2147483648, %v6284_v54  ;;  %v8640_v11 = vld [vmem:[#allocation42_spill] sm:$0xff] }
 0x2ba   :  { %v3089_v8 = vmul.f32 %v2254_v30, %v8637_v2  ;;  %v2274_v55 = vmul.f32 %v6353_v15, %v2273_v63  ;;  %vm2277_vm15 = vweird.f32 %v6353_v15  ;;  %v2287_v59 = vmul.f32 %v6370_v26, %v6324_v17 }
 0x2bb   :  { %v3282_v29 = vadd.f32 %v3216_v34, %v3215_v45  ;;  %v2264_v50 = vsel %vm2263_vm13, %v6329_v27, %v2260_v21  ;;  %vm2266_vm0 = vcmp.eq.f32.partialorder %v2265_v48, 8.507059e+37  ;;  %vm6879_vm2 = vcmp.eq.f32.partialorder %v2280_v58, 8.507059e+37  ;;  %vm2278_vm3 = vmor %vm2276_vm14, %vm2277_vm15  ;;  %v8641_v58 = vld [vmem:[#allocation68_spill] sm:$0xff] }
 0x2bc   :  { %v2269_v3 = vsel %vm2266_vm0, %v2268_v22, %v2264_v50  ;;  %3153 = vst [vmem:[#allocation12 + $0x40] sm:$0xff] %v3089_v8  ;;  %v2275_v13 = vadd.f32 %v6353_v15, %v2274_v55  ;;  %v2283_v38 = vor.u32 1.1754944e-38, %v2282_v41  ;;  %v2288_v42 = vsub.f32 1.0, %v2287_v59 }
 0x2bd   :  { %3283 = vadd.xlane.f32.xlu1 %v3282_v29  ;;  %v3090_v25 = vmul.f32 %v2269_v3, %v8640_v11  ;;  %v3217_v63 = vmul.f32 %v3089_v8, %v3089_v8  ;;  %v2295_v27 = vand.u32 2147483647, %v6324_v17  ;;  %v2297_v45 = vand.u32 2147483648, %v6324_v17  ;;  %v8643_v29 = vld [vmem:[#allocation69_spill] sm:$0xff]  ;;  %v8644_v11 = vld [vmem:[#allocation51_spill] sm:$0xff] }
 0x2be   :  { %v2279_v48 = vsel %vm2278_vm3, %v6353_v15, %v2275_v13  ;;  %v2289_v22 = vmul.f32 %v6370_v26, %v2288_v42  ;;  %vm2292_vm4 = vweird.f32 %v6370_v26  ;;  %v2722_v34 = vmul.f32 %v6338_v36, %v8641_v58  ;;  %v8642_v15 = vld [vmem:[#allocation50_spill] sm:$0xff] }
 0x2bf   :  { %3154 = vst [vmem:[#allocation12 + $0x48] sm:$0xff] %v3090_v25  ;;  %v3218_v30 = vmul.f32 %v3090_v25, %v3090_v25  ;;  %v2284_v21 = vsel %vm6879_vm2, %v2283_v38, %v2279_v48  ;;  %vm2291_vm5 = vweird.f32 %v6324_v17  ;;  %vm2726_vm7 = vweird.f32 %v8641_v58 }
 0x2c0   :  { %v2290_v54 = vadd.f32 %v6370_v26, %v2289_v22  ;;  %vm2296_vm6 = vcmp.eq.f32.partialorder %v2295_v27, 8.507059e+37  ;;  %v3091_v41 = vmul.f32 %v2284_v21, %v8642_v15  ;;  %v2723_v2 = vsub.f32 1.0, %v2722_v34  ;;  %vm2293_vm14 = vmor %vm2291_vm5, %vm2292_vm4  ;;  %v8649_v21 = vld [vmem:[#allocation52_spill] sm:$0xff] }
 0x2c1   :  { %v3285_v8 = vadd.f32 %v3218_v30, %v3217_v63  ;;  %v2298_v55 = vor.u32 1.1754944e-38, %v2297_v45  ;;  %v2732_v59 = vand.u32 2147483648, %v8641_v58  ;;  %v2737_v50 = vmul.f32 %v6344_v7, %v8643_v29 }
 0x2c2   :  { %v2294_v16 = vsel %vm2293_vm14, %v6370_v26, %v2290_v54  ;;  %3155 = vst [vmem:[#allocation12 + $0x50] sm:$0xff] %v3091_v41  ;;  %v2724_v17 = vmul.f32 %v6338_v36, %v2723_v2  ;;  %vm2727_vm13 = vweird.f32 %v6338_v36  ;;  %v2730_v3 = vand.u32 2147483647, %v8641_v58 }
 0x2c3   :  { %3286 = vadd.xlane.f32.xlu2 %v3285_v8  ;;  %v2299_v13 = vsel %vm2296_vm6, %v2298_v55, %v2294_v16  ;;  %v3219_v38 = vmul.f32 %v3091_v41, %v3091_v41  ;;  %v2738_v42 = vsub.f32 1.0, %v2737_v50  ;;  %vm2741_vm15 = vweird.f32 %v8643_v29  ;;  %vm2728_vm0 = vmor %vm2726_vm7, %vm2727_vm13  ;;  %v8647_v8 = vld [vmem:[#allocation43_spill] sm:$0xff] }
 0x2c4   :  { %v3092_v25 = vmul.f32 %v2299_v13, %v8644_v11  ;;  %v2725_v63 = vadd.f32 %v6338_v36, %v2724_v17  ;;  %v2733_v27 = vor.u32 1.1754944e-38, %v2732_v59  ;;  %v2745_v26 = vand.u32 2147483647, %v8643_v29  ;;  %v8648_v13 = vld [vmem:[#allocation22_spill] sm:$0xff] }
 0x2c5   :  { %v2739_v45 = vmul.f32 %v6344_v7, %v2738_v42  ;;  %vm2742_vm2 = vweird.f32 %v6344_v7  ;;  %v2747_v48 = vand.u32 2147483648, %v8643_v29  ;;  %v2752_v22 = vmul.f32 %v6376_v57, %v6331_v18 }
 0x2c6   :  { %3156 = vst [vmem:[#allocation12 + $0x58] sm:$0xff] %v3092_v25  ;;  %v3220_v34 = vmul.f32 %v3092_v25, %v3092_v25  ;;  %v2729_v30 = vsel %vm2728_vm0, %v6338_v36, %v2725_v63  ;;  %vm2731_vm3 = vcmp.eq.f32.partialorder %v2730_v3, 8.507059e+37  ;;  %vm6919_vm4 = vcmp.eq.f32.partialorder %v2745_v26, 8.507059e+37  ;;  %vm2743_vm5 = vmor %vm2741_vm15, %vm2742_vm2 }
 0x2c7   :  { %v2734_v58 = vsel %vm2731_vm3, %v2733_v27, %v2729_v30  ;;  %v2740_v54 = vadd.f32 %v6344_v7, %v2739_v45  ;;  %v2748_v15 = vor.u32 1.1754944e-38, %v2747_v48  ;;  %v2753_v41 = vsub.f32 1.0, %v2752_v22 }
 0x2c8   :  { %v3288_v2 = vadd.f32 %v3220_v34, %v3219_v38  ;;  %v3121_v55 = vmul.f32 %v2734_v58, %v8647_v8  ;;  %v2760_v59 = vand.u32 2147483647, %v6331_v18  ;;  %v2762_v36 = vand.u32 2147483648, %v6331_v18 }
 0x2c9   :  { %v2744_v50 = vsel %vm2743_vm5, %v6344_v7, %v2740_v54  ;;  %v2754_v16 = vmul.f32 %v6376_v57, %v2753_v41  ;;  %vm2757_vm7 = vweird.f32 %v6376_v57  ;;  %v2767_v17 = vmul.f32 %v6404_v62, %v6355_v12 }
 0x2ca   :  { %4472 = vrcp.f32 %v6792_v51  ;;  %3289 = vadd.xlane.f32.xlu0 %v3288_v2  ;;  %v2749_v29 = vsel %vm6919_vm4, %v2748_v15, %v2744_v50  ;;  %3185 = vst [vmem:[#allocation12 + $0x140] sm:$0xff] %v3121_v55  ;;  %v3249_v3 = vmul.f32 %v3121_v55, %v3121_v55  ;;  %vm2756_vm6 = vweird.f32 %v6331_v18 }
 0x2cb   :  { %v3122_v38 = vmul.f32 %v2749_v29, %v8648_v13  ;;  %v2755_v7 = vadd.f32 %v6376_v57, %v2754_v16  ;;  %vm2761_vm14 = vcmp.eq.f32.partialorder %v2760_v59, 8.507059e+37  ;;  %v2768_v42 = vsub.f32 1.0, %v2767_v17  ;;  %vm2758_vm13 = vmor %vm2756_vm6, %vm2757_vm7  ;;  %v8650_v16 = vld [vmem:[#allocation53_spill] sm:$0xff] }
 0x2cc   :  { %v2763_v11 = vor.u32 1.1754944e-38, %v2762_v36  ;;  %vm2772_vm15 = vweird.f32 %v6404_v62  ;;  %v2777_v25 = vand.u32 2147483648, %v6355_v12  ;;  %v2782_v63 = vmul.f32 %v6572_v28, %v6519_v47 }
 0x2cd   :  { %3186 = vst [vmem:[#allocation12 + $0x148] sm:$0xff] %v3122_v38  ;;  %v3250_v27 = vmul.f32 %v3122_v38, %v3122_v38  ;;  %v2759_v26 = vsel %vm2758_vm13, %v6376_v57, %v2755_v7  ;;  %v2769_v18 = vmul.f32 %v6404_v62, %v2768_v42  ;;  %v2775_v45 = vand.u32 2147483647, %v6355_v12 }
 0x2ce   :  { %v2764_v48 = vsel %vm2761_vm14, %v2763_v11, %v2759_v26  ;;  %vm2771_vm0 = vweird.f32 %v6355_v12  ;;  %v2783_v22 = vsub.f32 1.0, %v2782_v63  ;;  %vm2787_vm2 = vweird.f32 %v6572_v28 }
 0x2cf   :  { %v3333_v34 = vadd.f32 %v3250_v27, %v3249_v3  ;;  %v2770_v30 = vadd.f32 %v6404_v62, %v2769_v18  ;;  %v3123_v58 = vmul.f32 %v2764_v48, %v8649_v21  ;;  %v2790_v54 = vand.u32 2147483647, %v6519_v47  ;;  %vm2773_vm3 = vmor %vm2771_vm0, %vm2772_vm15  ;;  %v8651_v21 = vld [vmem:[#allocation29_spill] sm:$0xff] }
 0x2d0   :  { %v6952_v15 = vpop.eup %4472  ;;  %v2778_v57 = vor.u32 1.1754944e-38, %v2777_v25  ;;  %v2784_v41 = vmul.f32 %v6572_v28, %v2783_v22  ;;  %v2792_v12 = vand.u32 2147483648, %v6519_v47  ;;  %v2797_v2 = vmul.f32 %v6582_v1, %v6528_v24 }
 0x2d1   :  { %3334 = vadd.xlane.f32.xlu1 %v3333_v34  ;;  %v2774_v8 = vsel %vm2773_vm3, %v6404_v62, %v2770_v30  ;;  %vm2776_vm4 = vcmp.eq.f32.partialorder %v2775_v45, 8.507059e+37  ;;  %3187 = vst [vmem:[#allocation12 + $0x150] sm:$0xff] %v3123_v58  ;;  %v3251_v55 = vmul.f32 %v3123_v58, %v3123_v58  ;;  %vm2786_vm5 = vweird.f32 %v6519_v47 }
 0x2d2   :  { %v2779_v59 = vsel %vm2776_vm4, %v2778_v57, %v2774_v8  ;;  %v2785_v36 = vadd.f32 %v6572_v28, %v2784_v41  ;;  %vm2791_vm7 = vcmp.eq.f32.partialorder %v2790_v54, 8.507059e+37  ;;  %v2798_v50 = vsub.f32 1.0, %v2797_v2  ;;  %vm2788_vm6 = vmor %vm2786_vm5, %vm2787_vm2  ;;  %v8652_v2 = vld [vmem:[#allocation47_spill] sm:$0xff] }
 0x2d3   :  { %v3124_v17 = vmul.f32 %v2779_v59, %v8650_v16  ;;  %v2793_v29 = vor.u32 1.1754944e-38, %v2792_v12  ;;  %v2807_v3 = vand.u32 2147483648, %v6528_v24  ;;  %v2302_v62 = vmul.f32 %v6557_v5, %v6509_v40 }
 0x2d4   :  { %v2789_v13 = vsel %vm2788_vm6, %v6572_v28, %v2785_v36  ;;  %v2799_v47 = vmul.f32 %v6582_v1, %v2798_v50  ;;  %vm2802_vm14 = vweird.f32 %v6582_v1  ;;  %v2805_v38 = vand.u32 2147483647, %v6528_v24  ;;  %v8653_v50 = vld [vmem:[#allocation46_spill] sm:$0xff] }
 0x2d5   :  { %v6974_v7 = vadd.f32 1.0, %v6785_v39  ;;  %3188 = vst [vmem:[#allocation12 + $0x158] sm:$0xff] %v3124_v17  ;;  %v3252_v42 = vmul.f32 %v3124_v17, %v3124_v17  ;;  %v2794_v11 = vsel %vm2791_vm7, %v2793_v29, %v2789_v13  ;;  %vm2801_vm13 = vweird.f32 %v6528_v24  ;;  %v8654_v17 = vld [vmem:[#allocation48_spill] sm:$0xff]  ;;  %v8655_v13 = vld [vmem:[#allocation70_spill] sm:$0xff] }
 0x2d6   :  { %v2800_v25 = vadd.f32 %v6582_v1, %v2799_v47  ;;  %v3125_v63 = vmul.f32 %v2794_v11, %v6451_v53  ;;  %v2303_v27 = vsub.f32 1.0, %v2302_v62  ;;  %vm2307_vm15 = vweird.f32 %v6557_v5  ;;  %vm2803_vm0 = vmor %vm2801_vm13, %vm2802_vm14  ;;  %v1794_v53 = vpop.permute.xlu0 %1793 }
 0x2d7   :  { %v3336_v28 = vadd.f32 %v3252_v42, %v3251_v55  ;;  %v2808_v26 = vor.u32 1.1754944e-38, %v2807_v3  ;;  %v2312_v18 = vand.u32 2147483648, %v6509_v40  ;;  %v2317_v39 = vmul.f32 %v6565_v31, %v6515_v49 }
 0x2d8   :  { %v2804_v45 = vsel %vm2803_vm0, %v6582_v1, %v2800_v25  ;;  %vm2806_vm2 = vcmp.eq.f32.partialorder %v2805_v38, 8.507059e+37  ;;  %3189 = vst [vmem:[#allocation12 + $0x160] sm:$0xff] %v3125_v63  ;;  %v2304_v24 = vmul.f32 %v6557_v5, %v2303_v27  ;;  %v2310_v48 = vand.u32 2147483647, %v6509_v40 }
 0x2d9   :  { %3337 = vadd.xlane.f32.xlu2 %v3336_v28  ;;  %v2809_v22 = vsel %vm2806_vm2, %v2808_v26, %v2804_v45  ;;  %v3253_v34 = vmul.f32 %v3125_v63, %v3125_v63  ;;  %vm2306_vm3 = vweird.f32 %v6509_v40  ;;  %v2318_v30 = vsub.f32 1.0, %v2317_v39  ;;  %v8656_v63 = vld [vmem:[#allocation19_spill] sm:$0xff] }
 0x2da   :  { %v3126_v58 = vmul.f32 %v2809_v22, %v8651_v21  ;;  %v2305_v54 = vadd.f32 %v6557_v5, %v2304_v24  ;;  %v2313_v57 = vor.u32 1.1754944e-38, %v2312_v18  ;;  %v2327_v1 = vand.u32 2147483648, %v6515_v49  ;;  %vm2308_vm4 = vmor %vm2306_vm3, %vm2307_vm15  ;;  %v8658_v28 = vld [vmem:[#allocation71_spill] sm:$0xff] }
 0x2db   :  { %v2319_v41 = vmul.f32 %v6565_v31, %v2318_v30  ;;  %vm2322_vm5 = vweird.f32 %v6565_v31  ;;  %v2325_v12 = vand.u32 2147483647, %v6515_v49  ;;  %v6996_v8 = vadd.f32 %v1794_v53, %v8652_v2 }
 0x2dc   :  { %3190 = vst [vmem:[#allocation12 + $0x168] sm:$0xff] %v3126_v58  ;;  %v3254_v40 = vmul.f32 %v3126_v58, %v3126_v58  ;;  %v2309_v55 = vsel %vm2308_vm4, %v6557_v5, %v2305_v54  ;;  %vm2311_vm7 = vcmp.eq.f32.partialorder %v2310_v48, 8.507059e+37  ;;  %vm2321_vm6 = vweird.f32 %v6515_v49 }
 0x2dd   :  { %v2314_v59 = vsel %vm2311_vm7, %v2313_v57, %v2309_v55  ;;  %v2320_v36 = vadd.f32 %v6565_v31, %v2319_v41  ;;  %v7002_v16 = vadd.f32 %v1794_v53, %v8653_v50  ;;  %v7005_v29 = vadd.f32 %v1794_v53, %v8654_v17  ;;  %vm2323_vm14 = vmor %vm2321_vm6, %vm2322_vm5 }
 0x2de   :  { %v3339_v3 = vadd.f32 %v3254_v40, %v3253_v34  ;;  %v2328_v62 = vor.u32 1.1754944e-38, %v2327_v1  ;;  %v3093_v47 = vmul.f32 %v2314_v59, %v8655_v13  ;;  %v4222_v38 = vmul.f32 -1.442695, %v6996_v8 }
 0x2df   :  { %v2324_v5 = vsel %vm2323_vm14, %v6565_v31, %v2320_v36  ;;  %vm2326_vm13 = vcmp.eq.f32.partialorder %v2325_v12, 8.507059e+37  ;;  %v4223_v49 = vmul.f32 -1.442695, %v7005_v29  ;;  %v2812_v42 = vmul.f32 %v6764_v61, %v6699_v44 }
 0x2e0   :  { %v7014_v11 = vadd.f32 1.0, %v6796_v0  ;;  %4474 = vrcp.f32 %v6802_v32  ;;  %3340 = vadd.xlane.f32.xlu0 %v3339_v3  ;;  %v2329_v25 = vsel %vm2326_vm13, %v2328_v62, %v2324_v5  ;;  %3157 = vst [vmem:[#allocation12 + $0x60] sm:$0xff] %v3093_v47  ;;  %v7018_v27 = vadd.f32 %v1794_v53, %v8656_v63 }
 0x2e1   :  { %v3094_v26 = vmul.f32 %v2329_v25, %v8658_v28  ;;  %v3221_v31 = vmul.f32 %v3093_v47, %v3093_v47  ;;  %4476 = vpow2.f32 %v4222_v38  ;;  %v2813_v18 = vsub.f32 1.0, %v2812_v42 }
 0x2e2   :  { %8657 = vst [vmem:[#allocation135_spill] sm:$0xff] %v7018_v27  ;;  %v4190_v39 = vmul.f32 -1.442695, %v7002_v16  ;;  %4478 = vpow2.f32 %v4223_v49  ;;  %v2822_v45 = vand.u32 2147483648, %v6699_v44  ;;  %v2827_v0 = vmul.f32 %v6771_v43, %v6726_v60 }
 0x2e3   :  { %3158 = vst [vmem:[#allocation12 + $0x68] sm:$0xff] %v3094_v26  ;;  %v3222_v24 = vmul.f32 %v3094_v26, %v3094_v26  ;;  %v2814_v48 = vmul.f32 %v6764_v61, %v2813_v18  ;;  %vm2817_vm15 = vweird.f32 %v6764_v61  ;;  %v2820_v53 = vand.u32 2147483647, %v6699_v44 }
 0x2e4   :  { %v7029_v22 = vadd.f32 1.0, %v6811_v33  ;;  %4480 = vrcp.f32 %v6974_v7  ;;  %v4191_v34 = vmul.f32 -1.442695, %v7018_v27  ;;  %v2828_v30 = vsub.f32 1.0, %v2827_v0  ;;  %v8725_v27 = vld [vmem:[#allocation76_spill] sm:$0xff] }
 0x2e5   :  { %v3291_v21 = vadd.f32 %v3222_v24, %v3221_v31  ;;  %v2815_v58 = vadd.f32 %v6764_v61, %v2814_v48  ;;  %vm2816_vm0 = vweird.f32 %v6699_v44  ;;  %v2332_v54 = vmul.f32 %v6745_v35, %v6668_v23  ;;  %v8659_v31 = vld [vmem:[#allocation38_spill] sm:$0xff] }
 0x2e6   :  { %v7037_v57 = vpop.eup %4474  ;;  %4482 = vpow2.f32 %v4190_v39  ;;  %vm2818_vm2 = vmor %vm2816_vm0, %vm2817_vm15  ;;  %v2823_v1 = vor.u32 1.1754944e-38, %v2822_v45  ;;  %v2829_v33 = vmul.f32 %v6771_v43, %v2828_v30  ;;  %v2835_v41 = vand.u32 2147483647, %v6726_v60 }
 0x2e7   :  { %v4477_v12 = vpop.eup %4476  ;;  %3292 = vadd.xlane.f32.xlu1 %v3291_v21  ;;  %v2819_v2 = vsel %vm2818_vm2, %v6764_v61, %v2815_v58  ;;  %vm2821_vm3 = vcmp.eq.f32.partialorder %v2820_v53, 8.507059e+37  ;;  %v2837_v40 = vand.u32 2147483648, %v6726_v60  ;;  %v2333_v44 = vsub.f32 1.0, %v2332_v54  ;;  %v8675_v54 = vld [vmem:[#allocation74_spill] sm:$0xff] }
 0x2e8   :  { %v4479_v55 = vpop.eup %4478  ;;  %v7043_v59 = vadd.f32 1.0, %v4477_v12  ;;  %v2824_v36 = vsel %vm2821_vm3, %v2823_v1, %v2819_v2  ;;  %v2830_v50 = vadd.f32 %v6771_v43, %v2829_v33  ;;  %vm2832_vm4 = vweird.f32 %v6771_v43 }
 0x2e9   :  { %4484 = vpow2.f32 %v4191_v34  ;;  %v7047_v17 = vadd.f32 1.0, %v4479_v55  ;;  %v3127_v3 = vmul.f32 %v2824_v36, %v6586_v37  ;;  %v2334_v62 = vmul.f32 %v6745_v35, %v2333_v44  ;;  %v8666_v36 = vld [vmem:[#allocation72_spill] sm:$0xff] }
 0x2ea   :  { %v7051_v61 = vpop.eup %4480  ;;  %4486 = vrcp.f32 %v7043_v59  ;;  %v3032_v13 = vand.u32 2147483648, %v7043_v59  ;;  %vm2831_vm5 = vweird.f32 %v6726_v60  ;;  %vm2836_vm7 = vcmp.eq.f32.partialorder %v2835_v41, 8.507059e+37  ;;  %v1784_v41 = vpop.permute.xlu1 %1783 }
 0x2eb   :  { %4488 = vrcp.f32 %v7047_v17  ;;  %v3047_v47 = vand.u32 2147483648, %v7047_v17  ;;  %vm2833_vm6 = vmor %vm2831_vm5, %vm2832_vm4  ;;  %v2838_v38 = vor.u32 1.1754944e-38, %v2837_v40  ;;  %3191 = vst [vmem:[#allocation12 + $0x170] sm:$0xff] %v3127_v3  ;;  %vm2336_vm14 = vweird.f32 %v6668_v23 }
 0x2ec   :  { %v7059_v37 = vpop.eup %4482  ;;  %v3030_v5 = vand.u32 2147483647, %v7043_v59  ;;  %v7062_v49 = vor.u32 1.1754944e-38, %v3032_v13  ;;  %v3045_v42 = vand.u32 2147483647, %v7047_v17  ;;  %v2834_v60 = vsel %vm2833_vm6, %v6771_v43, %v2830_v50 }
 0x2ed   :  { %v7066_v25 = vor.u32 1.1754944e-38, %v3047_v47  ;;  %v2839_v63 = vsel %vm2836_vm7, %v2838_v38, %v2834_v60  ;;  %v3255_v28 = vmul.f32 %v3127_v3, %v3127_v3  ;;  %v2335_v26 = vadd.f32 %v6745_v35, %v2334_v62  ;;  %v8667_v62 = vld [vmem:[#allocation36_spill] sm:$0xff]  ;;  %v8668_v47 = vld [vmem:[#allocation27_spill] sm:$0xff] }
 0x2ee   :  { %v3128_v18 = vmul.f32 %v2839_v63, %v8659_v31  ;;  %vm2337_vm13 = vweird.f32 %v6745_v35  ;;  %v2340_v39 = vand.u32 2147483647, %v6668_v23  ;;  %v2342_v45 = vand.u32 2147483648, %v6668_v23  ;;  %v1799_v63 = vpop.permute.xlu2 %1798 }
 0x2ef   :  { %v7073_v0 = vpop.eup %4484  ;;  %vm3026_vm15 = vweird.f32 %v7043_v59  ;;  %vm7078_vm0 = vmor %vm2336_vm14, %vm2337_vm13  ;;  %v2347_v24 = vmul.f32 %v6751_v4, %v6680_v9  ;;  %vm2351_vm2 = vweird.f32 %v6680_v9  ;;  %vm2352_vm3 = vweird.f32 %v6751_v4 }
 0x2f0   :  { %v2355_v48 = vand.u32 2147483647, %v6680_v9  ;;  %v4487_v53 = vpop.eup %4486  ;;  %vm3041_vm4 = vweird.f32 %v7047_v17  ;;  %3192 = vst [vmem:[#allocation12 + $0x178] sm:$0xff] %v3128_v18  ;;  %v3256_v34 = vmul.f32 %v3128_v18, %v3128_v18  ;;  %v2339_v23 = vsel %vm7078_vm0, %v6745_v35, %v2335_v26  ;;  %vm2353_vm0 = vmor %vm2351_vm2, %vm2352_vm3 }
 0x2f1   :  { %vm2341_vm5 = vcmp.eq.f32.partialorder %v2340_v39, 8.507059e+37  ;;  %v2343_v30 = vor.u32 1.1754944e-38, %v2342_v45  ;;  %v4489_v21 = vpop.eup %4488  ;;  %v3022_v58 = vmul.f32 %v4487_v53, %v7043_v59  ;;  %vm3027_vm7 = vweird.f32 %v4487_v53  ;;  %v8670_v45 = vld [vmem:[#allocation126_spill] sm:$0xff] }
 0x2f2   :  { %vm7092_vm6 = vcmp.eq.f32.partialorder %v3030_v5, 8.507059e+37  ;;  %v2348_v1 = vsub.f32 1.0, %v2347_v24  ;;  %vm7096_vm14 = vcmp.eq.f32.partialorder %v2355_v48, 8.507059e+37  ;;  %v3037_v12 = vmul.f32 %v4489_v21, %v7047_v17  ;;  %v8669_v5 = vld [vmem:[#allocation21_spill] sm:$0xff] }
 0x2f3   :  { %vm3042_vm13 = vweird.f32 %v4489_v21  ;;  %v3342_v35 = vadd.f32 %v3256_v34, %v3255_v28  ;;  %v2344_v2 = vsel %vm2341_vm5, %v2343_v30, %v2339_v23  ;;  %v3023_v40 = vsub.f32 1.0, %v3022_v58  ;;  %v8671_v58 = vld [vmem:[#allocation34_spill] sm:$0xff]  ;;  %vm3028_vm5 = vmor %vm3026_vm15, %vm3027_vm7 }
 0x2f4   :  { %v2349_v44 = vmul.f32 %v6751_v4, %v2348_v1  ;;  %v2357_v55 = vand.u32 2147483648, %v6680_v9  ;;  %v3095_v50 = vmul.f32 %v2344_v2, %v8666_v36  ;;  %v3038_v3 = vsub.f32 1.0, %v3037_v12  ;;  %vm3043_vm2 = vmor %vm3041_vm4, %vm3042_vm13 }
 0x2f5   :  { %3343 = vadd.xlane.f32.xlu1 %v3342_v35  ;;  %v7105_v13 = vadd.f32 %v1784_v41, %v8667_v62  ;;  %v7108_v38 = vadd.f32 %v1784_v41, %v8668_v47  ;;  %v7111_v60 = vadd.f32 %v1784_v41, %v8669_v5  ;;  %v3024_v28 = vmul.f32 %v4487_v53, %v3023_v40 }
 0x2f6   :  { %v2350_v26 = vadd.f32 %v6751_v4, %v2349_v44  ;;  %v2358_v31 = vor.u32 1.1754944e-38, %v2357_v55  ;;  %v3223_v18 = vmul.f32 %v3095_v50, %v3095_v50  ;;  %3159 = vst [vmem:[#allocation12 + $0x70] sm:$0xff] %v3095_v50  ;;  %v3039_v39 = vmul.f32 %v4489_v21, %v3038_v3 }
 0x2f7   :  { %v7119_v43 = vadd.f32 %v1784_v41, %v8670_v45  ;;  %v4186_v24 = vmul.f32 -1.442695, %v7105_v13  ;;  %v4187_v48 = vmul.f32 -1.442695, %v7108_v38  ;;  %v3025_v34 = vadd.f32 %v4487_v53, %v3024_v28  ;;  %v8680_v45 = vld [vmem:[#allocation39_spill] sm:$0xff] }
 0x2f8   :  { %v2354_v23 = vsel %vm2353_vm0, %v6751_v4, %v2350_v26  ;;  %v4218_v30 = vmul.f32 -1.442695, %v7111_v60  ;;  %v7126_v1 = vadd.f32 %v1799_v63, %v8671_v58  ;;  %v3040_v9 = vadd.f32 %v4489_v21, %v3039_v39  ;;  %v8672_v4 = vld [vmem:[#allocation73_spill] sm:$0xff]  ;;  %v8679_v39 = vld [vmem:[#allocation64_spill] sm:$0xff] }
 0x2f9   :  { %v2359_v41 = vsel %vm7096_vm14, %v2358_v31, %v2354_v23  ;;  %4490 = vpow2.f32 %v4186_v24  ;;  %v4219_v12 = vmul.f32 -1.442695, %v7119_v43  ;;  %v3029_v35 = vsel %vm3028_vm5, %v4487_v53, %v3025_v34  ;;  %v8681_v34 = vld [vmem:[#allocation81_spill] sm:$0xff] }
 0x2fa   :  { %v3096_v2 = vmul.f32 %v2359_v41, %v8672_v4  ;;  %4492 = vpow2.f32 %v4187_v48  ;;  %v7139_v40 = vadd.f32 %v1799_v63, %v6659_v46  ;;  %v3034_v59 = vsel %vm7092_vm6, %v7062_v49, %v3029_v35 }
 0x2fb   :  { %v3044_v33 = vsel %vm3043_vm2, %v4489_v21, %v3040_v9  ;;  %vm3046_vm15 = vcmp.eq.f32.partialorder %v3045_v42, 8.507059e+37  ;;  %v7147_v53 = vadd.f32 %v1799_v63, %v6665_v52  ;;  %4494 = vrcp.f32 %v7014_v11  ;;  %v8674_v42 = vld [vmem:[#allocation61_spill] sm:$0xff] }
 0x2fc   :  { %v3049_v44 = vsel %vm3046_vm15, %v7066_v25, %v3044_v33  ;;  %v3141_v55 = vmul.f32 %v3034_v59, %v6996_v8  ;;  %3160 = vst [vmem:[#allocation12 + $0x78] sm:$0xff] %v3096_v2  ;;  %v3224_v46 = vmul.f32 %v3096_v2, %v3096_v2  ;;  %4496 = vpow2.f32 %v4218_v30  ;;  %v8676_v8 = vld [vmem:[#allocation78_spill] sm:$0xff] }
 0x2fd   :  { %8673 = vst [vmem:[#allocation67_spill] sm:$0xff] %v7147_v53  ;;  %v3142_v36 = vmul.f32 %v3049_v44, %v7005_v29  ;;  %v4192_v49 = vmul.f32 -1.442695, %v7126_v1  ;;  %v4193_v21 = vmul.f32 -1.442695, %v7139_v40  ;;  %v7156_v17 = vadd.f32 1.0, %v7059_v37 }
 0x2fe   :  { %3205 = vst [vmem:[#allocation12 + $0x1e0] sm:$0xff] %v3141_v55  ;;  %v3294_v52 = vadd.f32 %v3224_v46, %v3223_v18  ;;  %4498 = vpow2.f32 %v4219_v12  ;;  %v2392_v25 = vmul.f32 %v8675_v54, %v8674_v42  ;;  %v7162_v3 = vmul.f32 %v8628_v14, %v8676_v8  ;;  %v8677_v29 = vld [vmem:[#allocation80_spill] sm:$0xff] }
 0x2ff   :  { %v4491_v50 = vpop.eup %4490  ;;  %v7166_v62 = vmul.f32 %v8628_v14, %v8677_v29  ;;  %3206 = vst [vmem:[#allocation12 + $0x1e8] sm:$0xff] %v3142_v36  ;;  %4500 = vpow2.f32 %v4192_v49  ;;  %v4224_v37 = vmul.f32 -1.442695, %v7147_v53  ;;  %v7170_v5 = vadd.f32 1.0, %v7073_v0 }
 0x300   :  { %v4493_v47 = vpop.eup %4492  ;;  %3295 = vadd.xlane.f32.xlu2 %v3294_v52  ;;  %v7173_v28 = vadd.f32 %v1799_v63, %v6735_v56  ;;  %4502 = vpow2.f32 %v4193_v21  ;;  %v2393_v26 = vsub.f32 1.0, %v2392_v25  ;;  %v7176_v31 = vadd.f32 1.0, %v4491_v50 }
 0x301   :  { %4504 = vrcp.f32 %v7029_v22  ;;  %v2402_v18 = vand.u32 2147483648, %v8674_v42  ;;  %v2407_v24 = vmul.f32 %v8680_v45, %v8679_v39  ;;  %v7181_v48 = vpop.eup %4494  ;;  %v7185_v0 = vmul.f32 %v8628_v14, %v8681_v34 }
 0x302   :  { %8678 = vst [vmem:[#allocation26_spill] sm:$0xff] %v7173_v28  ;;  %4506 = vrcp.f32 %v7156_v17  ;;  %v2394_v56 = vmul.f32 %v8675_v54, %v2393_v26  ;;  %vm2397_vm3 = vweird.f32 %v8675_v54  ;;  %v4497_v63 = vpop.eup %4496  ;;  %v7190_v23 = vadd.f32 1.0, %v4493_v47 }
 0x303   :  { %4508 = vpow2.f32 %v4224_v37  ;;  %v2400_v30 = vand.u32 2147483647, %v8674_v42  ;;  %v2408_v58 = vsub.f32 1.0, %v2407_v24  ;;  %v4225_v41 = vmul.f32 -1.442695, %v7173_v28 }
 0x304   :  { %v4499_v9 = vpop.eup %4498  ;;  %4510 = vrcp.f32 %v7170_v5  ;;  %v2395_v14 = vadd.f32 %v8675_v54, %v2394_v56  ;;  %vm2396_vm4 = vweird.f32 %v8674_v42  ;;  %v2403_v4 = vor.u32 1.1754944e-38, %v2402_v18  ;;  %v8684_v56 = vld [vmem:[#allocation56_spill] sm:$0xff] }
 0x305   :  { %v4501_v12 = vpop.eup %4500  ;;  %4512 = vrcp.f32 %v7176_v31  ;;  %vm7198_vm7 = vmor %vm2396_vm4, %vm2397_vm3  ;;  %v2409_v2 = vmul.f32 %v8680_v45, %v2408_v58  ;;  %v2417_v59 = vand.u32 2147483648, %v8679_v39  ;;  %vm2412_vm6 = vweird.f32 %v8680_v45 }
 0x306   :  { %v4503_v33 = vpop.eup %4502  ;;  %v7204_v44 = vadd.f32 1.0, %v4501_v12  ;;  %v2399_v55 = vsel %vm7198_vm7, %v8675_v54, %v2395_v14  ;;  %v2415_v46 = vand.u32 2147483647, %v8679_v39  ;;  %4514 = vrcp.f32 %v7190_v23 }
 0x307   :  { %v7211_v36 = vpop.eup %4504  ;;  %v7214_v49 = vadd.f32 1.0, %v4503_v33  ;;  %vm2401_vm14 = vcmp.eq.f32.partialorder %v2400_v30, 8.507059e+37  ;;  %v2410_v21 = vadd.f32 %v8680_v45, %v2409_v2  ;;  %vm2411_vm13 = vweird.f32 %v8679_v39 }
 0x308   :  { %v7217_v52 = vpop.eup %4506  ;;  %4516 = vrcp.f32 %v7204_v44  ;;  %v2404_v42 = vsel %vm2401_vm14, %v2403_v4, %v2399_v55  ;;  %v2842_v54 = vmul.f32 %v7181_v48, %v7014_v11  ;;  %v7223_v50 = vadd.f32 1.0, %v4497_v63  ;;  %vm2413_vm0 = vmor %vm2411_vm13, %vm2412_vm6 }
 0x309   :  { %v4509_v25 = vpop.eup %4508  ;;  %v7225_v8 = vadd.f32 1.0, %v4499_v9  ;;  %4518 = vrcp.f32 %v7214_v49  ;;  %v2418_v29 = vor.u32 1.1754944e-38, %v2417_v59  ;;  %v2580_v47 = vand.u32 2147483647, %v7204_v44  ;;  %v8686_v9 = vld [vmem:[#allocation59_spill] sm:$0xff] }
 0x30a   :  { %v7230_v37 = vpop.eup %4510  ;;  %4520 = vpow2.f32 %v4225_v41  ;;  %v2414_v26 = vsel %vm2413_vm0, %v8680_v45, %v2410_v21  ;;  %vm2416_vm5 = vcmp.eq.f32.partialorder %v2415_v46, 8.507059e+37  ;;  %v2582_v39 = vand.u32 2147483648, %v7204_v44 }
 0x30b   :  { %v7234_v18 = vpop.eup %4512  ;;  %v2597_v24 = vand.u32 2147483648, %v7214_v49  ;;  %v2419_v34 = vsel %vm2416_vm5, %v2418_v29, %v2414_v26  ;;  %v3099_v63 = vmul.f32 %v2404_v42, %v8684_v56  ;;  %v7239_v30 = vadd.f32 1.0, %v4509_v25 }
 0x30c   :  { %v2595_v58 = vand.u32 2147483647, %v7214_v49  ;;  %v3100_v41 = vmul.f32 %v2419_v34, %v8686_v9  ;;  %v2843_v14 = vsub.f32 1.0, %v2842_v54  ;;  %v7243_v12 = vpop.eup %4514  ;;  %vm2576_vm2 = vweird.f32 %v7204_v44 }
 0x30d   :  { %8685 = vst [vmem:[#allocation37_spill] sm:$0xff] %v7239_v30  ;;  %v3227_v45 = vmul.f32 %v3099_v63, %v3099_v63  ;;  %vm2847_vm15 = vweird.f32 %v7181_v48  ;;  %v2850_v35 = vand.u32 2147483647, %v7014_v11  ;;  %vm2591_vm3 = vweird.f32 %v7214_v49 }
 0x30e   :  { %3163 = vst [vmem:[#allocation12 + $0x90] sm:$0xff] %v3099_v63  ;;  %v4517_v4 = vpop.eup %4516  ;;  %v3228_v2 = vmul.f32 %v3100_v41, %v3100_v41  ;;  %v2844_v59 = vmul.f32 %v7181_v48, %v2843_v14  ;;  %v2852_v33 = vand.u32 2147483648, %v7014_v11  ;;  %v2857_v55 = vmul.f32 %v7211_v36, %v7029_v22 }
 0x30f   :  { %3164 = vst [vmem:[#allocation12 + $0x98] sm:$0xff] %v3100_v41  ;;  %v4519_v46 = vpop.eup %4518  ;;  %v2572_v21 = vmul.f32 %v4517_v4, %v7204_v44  ;;  %vm7254_vm4 = vcmp.eq.f32.partialorder %v2580_v47, 8.507059e+37  ;;  %v2583_v54 = vor.u32 1.1754944e-38, %v2582_v39  ;;  %v2598_v25 = vor.u32 1.1754944e-38, %v2597_v24 }
 0x310   :  { %vm2846_vm7 = vweird.f32 %v7014_v11  ;;  %v7259_v29 = vpop.eup %4520  ;;  %vm2577_vm6 = vweird.f32 %v4517_v4  ;;  %v2587_v26 = vmul.f32 %v4519_v46, %v7214_v49  ;;  %vm7262_vm14 = vcmp.eq.f32.partialorder %v2595_v58, 8.507059e+37 }
 0x311   :  { %v3300_v56 = vadd.f32 %v3228_v2, %v3227_v45  ;;  %v2845_v63 = vadd.f32 %v7181_v48, %v2844_v59  ;;  %v2573_v47 = vsub.f32 1.0, %v2572_v21  ;;  %vm2848_vm13 = vmor %vm2846_vm7, %vm2847_vm15  ;;  %vm2851_vm0 = vcmp.eq.f32.partialorder %v2850_v35, 8.507059e+37 }
 0x312   :  { %v2853_v39 = vor.u32 1.1754944e-38, %v2852_v33  ;;  %v2858_v24 = vsub.f32 1.0, %v2857_v55  ;;  %v2588_v11 = vsub.f32 1.0, %v2587_v26  ;;  %vm2862_vm5 = vweird.f32 %v7211_v36  ;;  %vm7280_vm15 = vmor %vm2576_vm2, %vm2577_vm6 }
 0x313   :  { %3301 = vadd.xlane.f32.xlu1 %v3300_v56  ;;  %v2849_v9 = vsel %vm2848_vm13, %v7181_v48, %v2845_v63  ;;  %v2865_v58 = vand.u32 2147483647, %v7029_v22  ;;  %v2574_v41 = vmul.f32 %v4517_v4, %v2573_v47  ;;  %v2867_v2 = vand.u32 2147483648, %v7029_v22 }
 0x314   :  { %v2854_v14 = vsel %vm2851_vm0, %v2853_v39, %v2849_v9  ;;  %v2859_v45 = vmul.f32 %v7211_v36, %v2858_v24  ;;  %v2589_v59 = vmul.f32 %v4519_v46, %v2588_v11  ;;  %vm2592_vm12 = vweird.f32 %v4519_v46 }
 0x315   :  { %v3129_v35 = vmul.f32 %v2854_v14, %v6729_v20  ;;  %v2362_v33 = vmul.f32 %v7037_v57, %v6802_v32  ;;  %v2575_v55 = vadd.f32 %v4517_v4, %v2574_v41  ;;  %vm2861_vm7 = vweird.f32 %v7029_v22  ;;  %vm2593_vm2 = vmor %vm2591_vm3, %vm2592_vm12  ;;  %v1789_v41 = vpop.permute.xlu1 %1788 }
 0x316   :  { %v2860_v21 = vadd.f32 %v7211_v36, %v2859_v45  ;;  %vm2866_vm13 = vcmp.eq.f32.partialorder %v2865_v58, 8.507059e+37  ;;  %v2590_v26 = vadd.f32 %v4519_v46, %v2589_v59  ;;  %vm2863_vm0 = vmor %vm2861_vm7, %vm2862_vm5  ;;  %v2868_v20 = vor.u32 1.1754944e-38, %v2867_v2 }
 0x317   :  { %3193 = vst [vmem:[#allocation12 + $0x180] sm:$0xff] %v3129_v35  ;;  %v2363_v56 = vsub.f32 1.0, %v2362_v33  ;;  %vm2367_vm11 = vweird.f32 %v7037_v57  ;;  %v2579_v44 = vsel %vm7280_vm15, %v4517_v4, %v2575_v55  ;;  %v2370_v22 = vand.u32 2147483647, %v6802_v32  ;;  %v8695_v33 = vld [vmem:[#allocation35_spill] sm:$0xff] }
 0x318   :  { %v2864_v63 = vsel %vm2863_vm0, %v7211_v36, %v2860_v21  ;;  %v2372_v47 = vand.u32 2147483648, %v6802_v32  ;;  %v2584_v39 = vsel %vm7254_vm4, %v2583_v54, %v2579_v44  ;;  %v2594_v24 = vsel %vm2593_vm2, %v4519_v46, %v2590_v26  ;;  %v8696_v26 = vld [vmem:[#allocation31_spill] sm:$0xff] }
 0x319   :  { %v2869_v11 = vsel %vm2866_vm13, %v2868_v20, %v2864_v63  ;;  %v2364_v9 = vmul.f32 %v7037_v57, %v2363_v56  ;;  %v2599_v4 = vsel %vm7262_vm14, %v2598_v25, %v2594_v24  ;;  %v7303_v58 = vmul.f32 %v2584_v39, %v7126_v1 }
 0x31a   :  { %v3130_v49 = vmul.f32 %v2869_v11, %v6742_v6  ;;  %v3257_v36 = vmul.f32 %v3129_v35, %v3129_v35  ;;  %v7307_v14 = vmul.f32 %v2599_v4, %v7139_v40  ;;  %vm2366_vm12 = vweird.f32 %v6802_v32 }
 0x31b   :  { %8693 = vst [vmem:[#allocation42_spill] sm:$0xff] %v7303_v58  ;;  %v2365_v42 = vadd.f32 %v7037_v57, %v2364_v9  ;;  %v2377_v46 = vmul.f32 %v7051_v61, %v6974_v7  ;;  %vm2368_vm3 = vmor %vm2366_vm12, %vm2367_vm11  ;;  %vm2371_vm4 = vcmp.eq.f32.partialorder %v2370_v22, 8.507059e+37  ;;  %v2373_v6 = vor.u32 1.1754944e-38, %v2372_v47  ;;  %v8698_v9 = vld [vmem:[#allocation33_spill] sm:$0xff] }
 0x31c   :  { %8694 = vst [vmem:[#allocation68_spill] sm:$0xff] %v7307_v14  ;;  %v3258_v54 = vmul.f32 %v3130_v49, %v3130_v49  ;;  %v2385_v1 = vand.u32 2147483647, %v6974_v7  ;;  %v2387_v32 = vand.u32 2147483648, %v6974_v7  ;;  %v7321_v34 = vadd.f32 %v1789_v41, %v6789_v10 }
 0x31d   :  { %3175 = vst [vmem:[#allocation12 + $0xf0] sm:$0xff] %v7303_v58  ;;  %v2369_v40 = vsel %vm2368_vm3, %v7037_v57, %v2365_v42  ;;  %v2378_v25 = vsub.f32 1.0, %v2377_v46  ;;  %vm2381_vm6 = vweird.f32 %v6974_v7  ;;  %v7325_v59 = vadd.f32 %v1789_v41, %v7162_v3  ;;  %v8697_v3 = vld [vmem:[#allocation55_spill] sm:$0xff]  ;;  %v8699_v7 = vld [vmem:[#allocation25_spill] sm:$0xff] }
 0x31e   :  { %3176 = vst [vmem:[#allocation12 + $0xf8] sm:$0xff] %v7307_v14  ;;  %v3345_v45 = vadd.f32 %v3258_v54, %v3257_v36  ;;  %v2374_v2 = vsel %vm2371_vm4, %v2373_v6, %v2369_v40  ;;  %vm2382_vm11 = vweird.f32 %v7051_v61  ;;  %v7331_v55 = vadd.f32 %v1789_v41, %v7166_v62 }
 0x31f   :  { %3194 = vst [vmem:[#allocation12 + $0x188] sm:$0xff] %v3130_v49  ;;  %v2379_v35 = vmul.f32 %v7051_v61, %v2378_v25  ;;  %v3097_v57 = vmul.f32 %v2374_v2, %v8695_v33  ;;  %v7334_v10 = vadd.f32 %v1789_v41, %v7185_v0  ;;  %v4188_v48 = vmul.f32 -1.442695, %v7321_v34  ;;  %vm2383_vm5 = vmor %vm2381_vm6, %vm2382_vm11  ;;  %v8700_v49 = vld [vmem:[#allocation41_spill] sm:$0xff]  ;;  %v8704_v2 = vld [vmem:[#allocation131_spill] sm:$0xff] }
 0x320   :  { %3346 = vadd.xlane.f32.xlu2 %v3345_v45  ;;  %v4189_v21 = vmul.f32 -1.442695, %v7325_v59  ;;  %v2902_v20 = vmul.f32 %v8697_v3, %v8696_v26  ;;  %vm2386_vm14 = vcmp.eq.f32.partialorder %v2385_v1, 8.507059e+37  ;;  %v2388_v44 = vor.u32 1.1754944e-38, %v2387_v32  ;;  %v8703_v45 = vld [vmem:[#allocation136_spill] sm:$0xff] }
 0x321   :  { %v2380_v56 = vadd.f32 %v7051_v61, %v2379_v35  ;;  %3161 = vst [vmem:[#allocation12 + $0x80] sm:$0xff] %v3097_v57  ;;  %v4220_v63 = vmul.f32 -1.442695, %v7331_v55  ;;  %4522 = vpow2.f32 %v4188_v48  ;;  %v4221_v62 = vmul.f32 -1.442695, %v7334_v10  ;;  %v8705_v35 = vld [vmem:[#allocation130_spill] sm:$0xff] }
 0x322   :  { %v2903_v0 = vsub.f32 1.0, %v2902_v20  ;;  %vm2907_vm15 = vweird.f32 %v8697_v3  ;;  %4524 = vpow2.f32 %v4189_v21  ;;  %v2910_v47 = vand.u32 2147483647, %v8696_v26 }
 0x323   :  { %v2384_v22 = vsel %vm2383_vm5, %v7051_v61, %v2380_v56  ;;  %v2912_v39 = vand.u32 2147483648, %v8696_v26  ;;  %4526 = vpow2.f32 %v4220_v63  ;;  %v2917_v4 = vmul.f32 %v8699_v7, %v8698_v9 }
 0x324   :  { %v2389_v24 = vsel %vm2386_vm14, %v2388_v44, %v2384_v22  ;;  %v2904_v11 = vmul.f32 %v8697_v3, %v2903_v0  ;;  %v3225_v41 = vmul.f32 %v3097_v57, %v3097_v57  ;;  %4528 = vpow2.f32 %v4221_v62  ;;  %v8708_v62 = vld [vmem:[#allocation87_spill] sm:$0xff] }
 0x325   :  { %v3098_v36 = vmul.f32 %v2389_v24, %v8700_v49  ;;  %vm8311_vm7 = vcmask 982912   ;;  %4530 = vrcp.f32 %v7223_v50  ;;  %vm2906_vm13 = vweird.f32 %v8696_v26 }
 0x326   :  { %v2905_v61 = vadd.f32 %v8697_v3, %v2904_v11  ;;  %v2918_v42 = vsub.f32 1.0, %v2917_v4  ;;  %4532 = vrcp.f32 %v7225_v8  ;;  %vm2908_vm0 = vmor %vm2906_vm13, %vm2907_vm15  ;;  %v2913_v40 = vor.u32 1.1754944e-38, %v2912_v39 }
 0x327   :  { %3162 = vst [vmem:[#allocation12 + $0x88] sm:$0xff] %v3098_v36  ;;  %v3226_v1 = vmul.f32 %v3098_v36, %v3098_v36  ;;  %v4523_v25 = vpop.eup %4522  ;;  %4534 = vrcp.f32 %v7239_v30  ;;  %vm2911_vm2 = vcmp.eq.f32.partialorder %v2910_v47, 8.507059e+37  ;;  %v8706_v33 = vperm.slane %v8704_v2, %v8705_v35 }
 0x328   :  { %v2909_v32 = vsel %vm2908_vm0, %v8697_v3, %v2905_v61  ;;  %v4525_v48 = vpop.eup %4524  ;;  %v7370_v26 = vadd.f32 1.0, %v4523_v25  ;;  %v2919_v56 = vmul.f32 %v8699_v7, %v2918_v42  ;;  %v7374_v63 = vadd.f32 1.0, %v7259_v29  ;;  %v8709_v61 = vld [vmem:[#allocation75_spill] sm:$0xff]  ;;  %v8710_v42 = vld [vmem:[#allocation54_spill] sm:$0xff] }
 0x329   :  { %v7368_v57 = vsel %vm8311_vm7, %v8706_v33, %v8703_v45  ;;  %v3297_v21 = vadd.f32 %v3226_v1, %v3225_v41  ;;  %v2914_v20 = vsel %vm2911_vm2, %v2913_v40, %v2909_v32  ;;  %v4527_v44 = vpop.eup %4526  ;;  %v7376_v3 = vadd.f32 1.0, %v4525_v48 }
 0x32a   :  { %8707 = vst [vmem:[#allocation50_spill] sm:$0xff] %v7368_v57  ;;  %vm2921_vm12 = vweird.f32 %v8698_v9  ;;  %v3133_v0 = vmul.f32 %v2914_v20, %v8708_v62  ;;  %v4529_v22 = vpop.eup %4528  ;;  %v7380_v47 = vadd.f32 1.0, %v4527_v44  ;;  %4536 = vrcp.f32 %v7370_v26  ;;  %v8730_v44 = vld [vmem:[#allocation32_spill] sm:$0xff] }
 0x32b   :  { %3298 = vadd.xlane.f32.xlu0 %v3297_v21  ;;  %v2925_v39 = vand.u32 2147483647, %v8698_v9  ;;  %v2927_v24 = vand.u32 2147483648, %v8698_v9  ;;  %v7385_v11 = vpop.eup %4530  ;;  %v7387_v29 = vadd.f32 1.0, %v4529_v22  ;;  %v2522_v4 = vand.u32 2147483648, %v7370_v26  ;;  %v8729_v9 = vld [vmem:[#allocation65_spill] sm:$0xff] }
 0x32c   :  { %4538 = vrcp.f32 %v7376_v3  ;;  %vm2922_vm3 = vweird.f32 %v8699_v7  ;;  %3197 = vst [vmem:[#allocation12 + $0x1a0] sm:$0xff] %v3133_v0  ;;  %v7392_v49 = vpop.eup %4532  ;;  %v2537_v36 = vand.u32 2147483648, %v7376_v3  ;;  %v2920_v41 = vadd.f32 %v8699_v7, %v2919_v56 }
 0x32d   :  { %4540 = vrcp.f32 %v7380_v47  ;;  %v2422_v1 = vmul.f32 %v8710_v42, %v8709_v61  ;;  %v7399_v40 = vpop.eup %4534  ;;  %v2520_v25 = vand.u32 2147483647, %v7370_v26  ;;  %v3002_v32 = vand.u32 2147483648, %v7380_v47  ;;  %vm7420_vm5 = vmor %vm2921_vm12, %vm2922_vm3 }
 0x32e   :  { %8711 = vst [vmem:[#allocation69_spill] sm:$0xff] %v7399_v40  ;;  %vm2426_vm4 = vweird.f32 %v8709_v61  ;;  %vm2427_vm6 = vweird.f32 %v8710_v42  ;;  %v2535_v45 = vand.u32 2147483647, %v7376_v3  ;;  %4542 = vrcp.f32 %v7387_v29 }
 0x32f   :  { %vm7407_vm11 = vcmp.eq.f32.partialorder %v2925_v39, 8.507059e+37  ;;  %v2928_v33 = vor.u32 1.1754944e-38, %v2927_v24  ;;  %vm2516_vm14 = vweird.f32 %v7370_v26  ;;  %v2523_v48 = vor.u32 1.1754944e-38, %v2522_v4  ;;  %vm2428_vm1 = vmor %vm2426_vm4, %vm2427_vm6 }
 0x330   :  { %v7412_v21 = vor.u32 1.1754944e-38, %v2537_v36  ;;  %v3000_v20 = vand.u32 2147483647, %v7380_v47  ;;  %v3017_v56 = vand.u32 2147483648, %v7387_v29  ;;  %v4537_v62 = vpop.eup %4536  ;;  %vm2531_vm15 = vweird.f32 %v7376_v3 }
 0x331   :  { %v7425_v22 = vor.u32 1.1754944e-38, %v3002_v32  ;;  %v3015_v39 = vand.u32 2147483647, %v7387_v29  ;;  %v2924_v24 = vsel %vm7420_vm5, %v8699_v7, %v2920_v41  ;;  %v2423_v4 = vsub.f32 1.0, %v2422_v1 }
 0x332   :  { %v4539_v36 = vpop.eup %4538  ;;  %v2512_v6 = vmul.f32 %v4537_v62, %v7370_v26  ;;  %vm2517_vm13 = vweird.f32 %v4537_v62  ;;  %vm7432_vm0 = vcmp.eq.f32.partialorder %v2520_v25, 8.507059e+37  ;;  %vm2996_vm2 = vweird.f32 %v7380_v47 }
 0x333   :  { %v3261_v28 = vmul.f32 %v3133_v0, %v3133_v0  ;;  %v2430_v32 = vand.u32 2147483647, %v8709_v61  ;;  %v4541_v14 = vpop.eup %4540  ;;  %v2527_v58 = vmul.f32 %v4539_v36, %v7376_v3  ;;  %vm7439_vm12 = vcmp.eq.f32.partialorder %v2535_v45, 8.507059e+37  ;;  %v8722_v45 = vld [vmem:[#allocation30_spill] sm:$0xff]  ;;  %vm2518_vm7 = vmor %vm2516_vm14, %vm2517_vm13 }
 0x334   :  { %v3018_v7 = vor.u32 1.1754944e-38, %v3017_v56  ;;  %v2929_v41 = vsel %vm7407_vm11, %v2928_v33, %v2924_v24  ;;  %v2424_v1 = vmul.f32 %v8710_v42, %v2423_v4  ;;  %v2513_v25 = vsub.f32 1.0, %v2512_v6  ;;  %v4543_v46 = vpop.eup %4542 }
 0x335   :  { %vm2532_vm3 = vweird.f32 %v4539_v36  ;;  %v2992_v53 = vmul.f32 %v4541_v14, %v7380_v47  ;;  %vm7447_vm5 = vcmp.eq.f32.partialorder %v3000_v20, 8.507059e+37  ;;  %v3134_v54 = vmul.f32 %v2929_v41, %v8722_v45  ;;  %v8731_v20 = vld [vmem:[#allocation85_spill] sm:$0xff] }
 0x336   :  { %v2528_v57 = vsub.f32 1.0, %v2527_v58  ;;  %vm2997_vm9 = vweird.f32 %v4541_v14  ;;  %v2425_v2 = vadd.f32 %v8710_v42, %v2424_v1  ;;  %v2432_v33 = vand.u32 2147483648, %v8709_v61 }
 0x337   :  { %v2514_v56 = vmul.f32 %v4537_v62, %v2513_v25  ;;  %v2993_v6 = vsub.f32 1.0, %v2992_v53  ;;  %v3007_v24 = vmul.f32 %v4543_v46, %v7387_v29  ;;  %vm7456_vm11 = vcmp.eq.f32.partialorder %v3015_v39, 8.507059e+37  ;;  %3198 = vst [vmem:[#allocation12 + $0x1a8] sm:$0xff] %v3134_v54  ;;  %v8726_v39 = vld [vmem:[#allocation88_spill] sm:$0xff]  ;;  %vm2998_vm4 = vmor %vm2996_vm2, %vm2997_vm9 }
 0x338   :  { %vm2431_vm8 = vcmp.eq.f32.partialorder %v2430_v32, 8.507059e+37  ;;  %v2529_v58 = vmul.f32 %v4539_v36, %v2528_v57  ;;  %v3262_v4 = vmul.f32 %v3134_v54, %v3134_v54  ;;  %v2429_v41 = vsel %vm2428_vm1, %v8710_v42, %v2425_v2  ;;  %vm2533_vm1 = vmor %vm2531_vm15, %vm2532_vm3 }
 0x339   :  { %v2433_v1 = vor.u32 1.1754944e-38, %v2432_v33  ;;  %v2515_v25 = vadd.f32 %v4537_v62, %v2514_v56  ;;  %v2994_v53 = vmul.f32 %v4541_v14, %v2993_v6  ;;  %v3008_v45 = vsub.f32 1.0, %v3007_v24 }
 0x33a   :  { %v2437_v35 = vmul.f32 %v8726_v39, %v8725_v27  ;;  %v2530_v40 = vadd.f32 %v4539_v36, %v2529_v58  ;;  %vm3012_vm10 = vweird.f32 %v4543_v46  ;;  %v3351_v61 = vadd.f32 %v3262_v4, %v3261_v28  ;;  %v8733_v4 = vld [vmem:[#allocation83_spill] sm:$0xff] }
 0x33b   :  { %v2434_v30 = vsel %vm2431_vm8, %v2433_v1, %v2429_v41  ;;  %v2519_v32 = vsel %vm2518_vm7, %v4537_v62, %v2515_v25  ;;  %v2995_v54 = vadd.f32 %v4541_v14, %v2994_v53  ;;  %v3009_v57 = vmul.f32 %v4543_v46, %v3008_v45 }
 0x33c   :  { %v2438_v42 = vsub.f32 1.0, %v2437_v35  ;;  %v2524_v2 = vsel %vm7432_vm0, %v2523_v48, %v2519_v32  ;;  %v2534_v33 = vsel %vm2533_vm1, %v4539_v36, %v2530_v40  ;;  %3352 = vadd.xlane.f32.xlu1 %v3351_v61  ;;  %vm2441_vm6 = vweird.f32 %v8725_v27  ;;  %v8736_v61 = vld [vmem:[#allocation91_spill] sm:$0xff] }
 0x33d   :  { %v2445_v28 = vand.u32 2147483647, %v8725_v27  ;;  %v2539_v26 = vsel %vm7439_vm12, %v7412_v21, %v2534_v33  ;;  %v2999_v3 = vsel %vm2998_vm4, %v4541_v14, %v2995_v54  ;;  %v3010_v62 = vadd.f32 %v4543_v46, %v3009_v57 }
 0x33e   :  { %v7484_v35 = vmul.f32 %v2524_v2, %v7321_v34  ;;  %v3004_v40 = vsel %vm7447_vm5, %v7425_v22, %v2999_v3  ;;  %vm8727_vm8 = vweird.f32 %v7387_v29  ;;  %v7493_v47 = vmul.f32 %v2539_v26, %v7325_v59  ;;  %v8728_v22 = vld [vmem:[#allocation28_spill] sm:$0xff] }
 0x33f   :  { %vm3013_vm9 = vmor %vm8727_vm8, %vm3012_vm10  ;;  %v2439_v48 = vmul.f32 %v8726_v39, %v2438_v42  ;;  %vm2442_vm7 = vweird.f32 %v8726_v39  ;;  %v7498_v21 = vmul.f32 %v3004_v40, %v7331_v55  ;;  %v2447_v34 = vand.u32 2147483648, %v8725_v27  ;;  %v8732_v27 = vld [vmem:[#allocation77_spill] sm:$0xff] }
 0x340   :  { %v3014_v14 = vsel %vm3013_vm9, %v4543_v46, %v3010_v62  ;;  %3171 = vst [vmem:[#allocation12 + $0xd0] sm:$0xff] %v7484_v35  ;;  %v3101_v36 = vmul.f32 %v2434_v30, %v8728_v22  ;;  %vm2446_vm10 = vcmp.eq.f32.partialorder %v2445_v28, 8.507059e+37  ;;  %v2872_v46 = vmul.f32 %v8730_v44, %v8729_v9  ;;  %vm2443_vm14 = vmor %vm2441_vm6, %vm2442_vm7 }
 0x341   :  { %v3019_v29 = vsel %vm7456_vm11, %v3018_v7, %v3014_v14  ;;  %3172 = vst [vmem:[#allocation12 + $0xd8] sm:$0xff] %v7493_v47  ;;  %v2440_v59 = vadd.f32 %v8726_v39, %v2439_v48  ;;  %v2448_v30 = vor.u32 1.1754944e-38, %v2447_v34  ;;  %vm2876_vm15 = vweird.f32 %v8729_v9 }
 0x342   :  { %v7510_v55 = vmul.f32 %v3019_v29, %v7334_v10  ;;  %3203 = vst [vmem:[#allocation12 + $0x1d0] sm:$0xff] %v7498_v21  ;;  %v3229_v0 = vmul.f32 %v3101_v36, %v3101_v36  ;;  %v2873_v56 = vsub.f32 1.0, %v2872_v46  ;;  %v2880_v6 = vand.u32 2147483647, %v8729_v9  ;;  %v8739_v29 = vld [vmem:[#allocation60_spill] sm:$0xff] }
 0x343   :  { %v2444_v7 = vsel %vm2443_vm14, %v8726_v39, %v2440_v59  ;;  %3165 = vst [vmem:[#allocation12 + $0xa0] sm:$0xff] %v3101_v36  ;;  %v2882_v24 = vand.u32 2147483648, %v8729_v9  ;;  %vm2877_vm13 = vweird.f32 %v8730_v44  ;;  %v2887_v58 = vmul.f32 %v8732_v27, %v8731_v20 }
 0x344   :  { %3204 = vst [vmem:[#allocation12 + $0x1d8] sm:$0xff] %v7510_v55  ;;  %v2449_v10 = vsel %vm2446_vm10, %v2448_v30, %v2444_v7  ;;  %vm2891_vm0 = vweird.f32 %v8731_v20  ;;  %v2874_v1 = vmul.f32 %v8730_v44, %v2873_v56  ;;  %vm7526_vm2 = vcmp.eq.f32.partialorder %v2880_v6, 8.507059e+37  ;;  %vm2878_vm5 = vmor %vm2876_vm15, %vm2877_vm13 }
 0x345   :  { %v3102_v41 = vmul.f32 %v2449_v10, %v8733_v4  ;;  %vm2892_vm12 = vweird.f32 %v8732_v27  ;;  %v2883_v53 = vor.u32 1.1754944e-38, %v2882_v24  ;;  %v2888_v45 = vsub.f32 1.0, %v2887_v58  ;;  %v8742_v10 = vld [vmem:[#allocation20_spill] sm:$0xff] }
 0x346   :  { %v2895_v39 = vand.u32 2147483647, %v8731_v20  ;;  %v2932_v32 = vmul.f32 %v6828_v19, %v8736_v61  ;;  %v2875_v57 = vadd.f32 %v8730_v44, %v2874_v1  ;;  %v2897_v42 = vand.u32 2147483648, %v8731_v20  ;;  %vm2893_vm4 = vmor %vm2891_vm0, %vm2892_vm12  ;;  %v8743_v4 = vld [vmem:[#allocation44_spill] sm:$0xff] }
 0x347   :  { %3166 = vst [vmem:[#allocation12 + $0xa8] sm:$0xff] %v3102_v41  ;;  %v3230_v54 = vmul.f32 %v3102_v41, %v3102_v41  ;;  %vm2936_vm3 = vweird.f32 %v8736_v61  ;;  %v2889_v2 = vmul.f32 %v8732_v27, %v2888_v45  ;;  %vm2937_vm1 = vweird.f32 %v6828_v19  ;;  %v8744_v41 = vld [vmem:[#allocation45_spill] sm:$0xff] }
 0x348   :  { %vm7542_vm11 = vcmp.eq.f32.partialorder %v2895_v39, 8.507059e+37  ;;  %v2933_v28 = vsub.f32 1.0, %v2932_v32  ;;  %v2879_v3 = vsel %vm2878_vm5, %v8730_v44, %v2875_v57  ;;  %v2940_v62 = vand.u32 2147483647, %v8736_v61  ;;  %vm2938_vm9 = vmor %vm2936_vm3, %vm2937_vm1  ;;  %v8747_v39 = vld [vmem:[#allocation40_spill] sm:$0xff] }
 0x349   :  { %v3303_v26 = vadd.f32 %v3230_v54, %v3229_v0  ;;  %v2942_v40 = vand.u32 2147483648, %v8736_v61  ;;  %v2884_v48 = vsel %vm7526_vm2, %v2883_v53, %v2879_v3  ;;  %v2890_v14 = vadd.f32 %v8732_v27, %v2889_v2  ;;  %v8752_v53 = vld [vmem:[#allocation49_spill] sm:$0xff] }
 0x34a   :  { %v2934_v34 = vmul.f32 %v6828_v19, %v2933_v28  ;;  %v2947_v22 = vmul.f32 %v6952_v15, %v6792_v51  ;;  %v2898_v36 = vor.u32 1.1754944e-38, %v2897_v42  ;;  %v3131_v59 = vmul.f32 %v2884_v48, %v8739_v29  ;;  %v8749_v42 = vld [vmem:[#allocation24_spill] sm:$0xff] }
 0x34b   :  { %3304 = vadd.xlane.f32.xlu2 %v3303_v26  ;;  %vm7561_vm6 = vcmp.eq.f32.partialorder %v2940_v62, 8.507059e+37  ;;  %v2943_v44 = vor.u32 1.1754944e-38, %v2942_v40  ;;  %v2894_v46 = vsel %vm2893_vm4, %v8732_v27, %v2890_v14  ;;  %vm2952_vm8 = vweird.f32 %v6952_v15  ;;  %v8750_v14 = vld [vmem:[#allocation23_spill] sm:$0xff] }
 0x34c   :  { %v2935_v30 = vadd.f32 %v6828_v19, %v2934_v34  ;;  %v2948_v0 = vsub.f32 1.0, %v2947_v22  ;;  %v2899_v7 = vsel %vm7542_vm11, %v2898_v36, %v2894_v46  ;;  %3195 = vst [vmem:[#allocation12 + $0x190] sm:$0xff] %v3131_v59  ;;  %v3259_v56 = vmul.f32 %v3131_v59, %v3131_v59 }
 0x34d   :  { %v2955_v6 = vand.u32 2147483647, %v6792_v51  ;;  %v2957_v24 = vand.u32 2147483648, %v6792_v51  ;;  %v3132_v20 = vmul.f32 %v2899_v7, %v8742_v10  ;;  %v2452_v1 = vmul.f32 %v8744_v41, %v8743_v4 }
 0x34e   :  { %v2939_v27 = vsel %vm2938_vm9, %v6828_v19, %v2935_v30  ;;  %v2949_v58 = vmul.f32 %v6952_v15, %v2948_v0  ;;  %4544 = vrcp.f32 %v7374_v63  ;;  %vm2951_vm7 = vweird.f32 %v6792_v51  ;;  %v8748_v51 = vld [vmem:[#allocation66_spill] sm:$0xff] }
 0x34f   :  { %v2944_v25 = vsel %vm7561_vm6, %v2943_v44, %v2939_v27  ;;  %vm7585_vm10 = vcmp.eq.f32.partialorder %v2955_v6, 8.507059e+37  ;;  %3196 = vst [vmem:[#allocation12 + $0x198] sm:$0xff] %v3132_v20  ;;  %v3260_v45 = vmul.f32 %v3132_v20, %v3132_v20  ;;  %v2453_v32 = vsub.f32 1.0, %v2452_v1  ;;  %vm2953_vm14 = vmor %vm2951_vm7, %vm2952_vm8 }
 0x350   :  { %v2950_v19 = vadd.f32 %v6952_v15, %v2949_v58  ;;  %v3135_v61 = vmul.f32 %v2944_v25, %v8747_v39  ;;  %v2958_v54 = vor.u32 1.1754944e-38, %v2957_v24  ;;  %vm2457_vm15 = vweird.f32 %v8744_v41  ;;  %v8751_v24 = vld [vmem:[#allocation89_spill] sm:$0xff] }
 0x351   :  { %v2462_v57 = vand.u32 2147483648, %v8743_v4  ;;  %v2467_v2 = vmul.f32 %v8749_v42, %v8748_v51  ;;  %v3348_v33 = vadd.f32 %v3260_v45, %v3259_v56  ;;  %v2454_v26 = vmul.f32 %v8744_v41, %v2453_v32 }
 0x352   :  { %v2954_v28 = vsel %vm2953_vm14, %v6952_v15, %v2950_v19  ;;  %3199 = vst [vmem:[#allocation12 + $0x1b0] sm:$0xff] %v3135_v61  ;;  %v2460_v3 = vand.u32 2147483647, %v8743_v4  ;;  %v3263_v40 = vmul.f32 %v3135_v61, %v3135_v61  ;;  %vm2456_vm13 = vweird.f32 %v8743_v4 }
 0x353   :  { %v2959_v62 = vsel %vm7585_vm10, %v2958_v54, %v2954_v28  ;;  %v2468_v48 = vsub.f32 1.0, %v2467_v2  ;;  %3349 = vadd.xlane.f32.xlu0 %v3348_v33  ;;  %v2455_v22 = vadd.f32 %v8744_v41, %v2454_v26  ;;  %v2463_v36 = vor.u32 1.1754944e-38, %v2462_v57  ;;  %vm2458_vm2 = vmor %vm2456_vm13, %vm2457_vm15 }
 0x354   :  { %v3136_v34 = vmul.f32 %v2959_v62, %v8750_v14  ;;  %vm2472_vm0 = vweird.f32 %v8749_v42  ;;  %v7606_v15 = vpop.eup %4544  ;;  %v2475_v59 = vand.u32 2147483647, %v8748_v51  ;;  %v2477_v9 = vand.u32 2147483648, %v8748_v51 }
 0x355   :  { %v2469_v29 = vmul.f32 %v8749_v42, %v2468_v48  ;;  %v2962_v44 = vmul.f32 %v7385_v11, %v7223_v50  ;;  %v2459_v30 = vsel %vm2458_vm2, %v8744_v41, %v2455_v22  ;;  %vm2461_vm12 = vcmp.eq.f32.partialorder %v2460_v3, 8.507059e+37 }
 0x356   :  { %3200 = vst [vmem:[#allocation12 + $0x1b8] sm:$0xff] %v3136_v34  ;;  %v3264_v46 = vmul.f32 %v3136_v34, %v3136_v34  ;;  %vm2471_vm3 = vweird.f32 %v8748_v51  ;;  %v2464_v0 = vsel %vm2461_vm12, %v2463_v36, %v2459_v30  ;;  %v2478_v56 = vor.u32 1.1754944e-38, %v2477_v9 }
 0x357   :  { %v2470_v7 = vadd.f32 %v8749_v42, %v2469_v29  ;;  %vm2966_vm5 = vweird.f32 %v7223_v50  ;;  %vm2473_vm11 = vmor %vm2471_vm3, %vm2472_vm0  ;;  %v3103_v10 = vmul.f32 %v2464_v0, %v8751_v24  ;;  %v2963_v20 = vsub.f32 1.0, %v2962_v44  ;;  %v8768_v29 = vld [vmem:[#allocation93_spill] sm:$0xff] }
 0x358   :  { %v3354_v6 = vadd.f32 %v3264_v46, %v3263_v40  ;;  %v2970_v27 = vand.u32 2147483647, %v7223_v50  ;;  %vm2476_vm1 = vcmp.eq.f32.partialorder %v2475_v59, 8.507059e+37  ;;  %v2972_v4 = vand.u32 2147483648, %v7223_v50 }
 0x359   :  { %v2474_v58 = vsel %vm2473_vm11, %v8749_v42, %v2470_v7  ;;  %v2977_v41 = vmul.f32 %v7392_v49, %v7225_v8  ;;  %3167 = vst [vmem:[#allocation12 + $0xb0] sm:$0xff] %v3103_v10  ;;  %v2964_v25 = vmul.f32 %v7385_v11, %v2963_v20  ;;  %vm2967_vm4 = vweird.f32 %v7385_v11 }
 0x35a   :  { %3355 = vadd.xlane.f32.xlu2 %v3354_v6  ;;  %v2479_v1 = vsel %vm2476_vm1, %v2478_v56, %v2474_v58  ;;  %vm2981_vm6 = vweird.f32 %v7225_v8  ;;  %v3231_v19 = vmul.f32 %v3103_v10, %v3103_v10  ;;  %vm7631_vm8 = vcmp.eq.f32.partialorder %v2970_v27, 8.507059e+37  ;;  %vm2968_vm9 = vmor %vm2966_vm5, %vm2967_vm4 }
 0x35b   :  { %v3104_v45 = vmul.f32 %v2479_v1, %v8752_v53  ;;  %v2978_v61 = vsub.f32 1.0, %v2977_v41  ;;  %v2965_v32 = vadd.f32 %v7385_v11, %v2964_v25  ;;  %v2973_v54 = vor.u32 1.1754944e-38, %v2972_v4 }
 0x35c   :  { %v2987_v57 = vand.u32 2147483648, %v7225_v8  ;;  %v2482_v51 = vmul.f32 %v7234_v18, %v7176_v31  ;;  %vm2982_vm7 = vweird.f32 %v7392_v49  ;;  %v2985_v33 = vand.u32 2147483647, %v7225_v8 }
 0x35d   :  { %3168 = vst [vmem:[#allocation12 + $0xb8] sm:$0xff] %v3104_v45  ;;  %v3232_v42 = vmul.f32 %v3104_v45, %v3104_v45  ;;  %v2979_v2 = vmul.f32 %v7392_v49, %v2978_v61  ;;  %v2969_v28 = vsel %vm2968_vm9, %v7385_v11, %v2965_v32  ;;  %vm2487_vm10 = vweird.f32 %v7234_v18  ;;  %vm2983_vm14 = vmor %vm2981_vm6, %vm2982_vm7 }
 0x35e   :  { %v2988_v26 = vor.u32 1.1754944e-38, %v2987_v57  ;;  %v2483_v3 = vsub.f32 1.0, %v2482_v51  ;;  %v2974_v40 = vsel %vm7631_vm8, %v2973_v54, %v2969_v28  ;;  %v2490_v50 = vand.u32 2147483647, %v7176_v31  ;;  %v3275_v54 = vpop.xlane.xlu1 %3274 }
 0x35f   :  { %v3306_v62 = vadd.f32 %v3232_v42, %v3231_v19  ;;  %v2980_v48 = vadd.f32 %v7392_v49, %v2979_v2  ;;  %v3137_v14 = vmul.f32 %v2974_v40, %v7111_v60  ;;  %v2492_v11 = vand.u32 2147483648, %v7176_v31 }
 0x360   :  { %v2484_v34 = vmul.f32 %v7234_v18, %v2483_v3  ;;  %v2497_v22 = vmul.f32 %v7243_v12, %v7190_v23  ;;  %vm2986_vm15 = vcmp.eq.f32.partialorder %v2985_v33, 8.507059e+37  ;;  %vm2486_vm13 = vweird.f32 %v7176_v31  ;;  %v8760_v3 = vld [vmem:[#allocation37_spill] sm:$0xff] }
 0x361   :  { %3307 = vadd.xlane.f32.xlu0 %v3306_v62  ;;  %v2984_v36 = vsel %vm2983_vm14, %v7392_v49, %v2980_v48  ;;  %vm7659_vm0 = vcmp.eq.f32.partialorder %v2490_v50, 8.507059e+37  ;;  %3201 = vst [vmem:[#allocation12 + $0x1c0] sm:$0xff] %v3137_v14  ;;  %vm2501_vm2 = vweird.f32 %v7190_v23  ;;  %vm2502_vm12 = vweird.f32 %v7243_v12  ;;  %vm2488_vm3 = vmor %vm2486_vm13, %vm2487_vm10  ;;  %v8762_v50 = vld [vmem:[#allocation137_spill] sm:$0xff] }
 0x362   :  { %v2989_v8 = vsel %vm2986_vm15, %v2988_v26, %v2984_v36  ;;  %v2485_v60 = vadd.f32 %v7234_v18, %v2484_v34  ;;  %v3265_v9 = vmul.f32 %v3137_v14, %v3137_v14  ;;  %v2493_v49 = vor.u32 1.1754944e-38, %v2492_v11  ;;  %vm2503_vm4 = vmor %vm2501_vm2, %vm2502_vm12  ;;  %v8763_v14 = vld [vmem:[#allocation134_spill] sm:$0xff] }
 0x363   :  { %v3138_v59 = vmul.f32 %v2989_v8, %v7119_v43  ;;  %v2498_v31 = vsub.f32 1.0, %v2497_v22  ;;  %v2505_v46 = vand.u32 2147483647, %v7190_v23  ;;  %v2507_v30 = vand.u32 2147483648, %v7190_v23  ;;  %v8764_v34 = vld [vmem:[#allocation130_spill] sm:$0xff] }
 0x364   :  { %v2489_v44 = vsel %vm2488_vm3, %v7234_v18, %v2485_v60  ;;  %v2542_v0 = vmul.f32 %v7217_v52, %v7156_v17  ;;  %vm2546_vm5 = vweird.f32 %v7156_v17  ;;  %vm2547_vm11 = vweird.f32 %v7217_v52  ;;  %v8767_v22 = vld [vmem:[#allocation18_spill] sm:$0xff]  ;;  %v8769_v60 = vld [vmem:[#allocation135_spill] sm:$0xff] }
 0x365   :  { %3202 = vst [vmem:[#allocation12 + $0x1c8] sm:$0xff] %v3138_v59  ;;  %v3266_v7 = vmul.f32 %v3138_v59, %v3138_v59  ;;  %v2494_v43 = vsel %vm7659_vm0, %v2493_v49, %v2489_v44  ;;  %v2499_v56 = vmul.f32 %v7243_v12, %v2498_v31  ;;  %v2550_v18 = vand.u32 2147483647, %v7156_v17  ;;  %vm2548_vm7 = vmor %vm2546_vm5, %vm2547_vm11  ;;  %v8770_v49 = vld [vmem:[#allocation50_spill] sm:$0xff]  ;;  %v8771_v31 = vld [vmem:[#allocation133_spill] sm:$0xff] }
 0x366   :  { %v3105_v6 = vmul.f32 %v2494_v43, %v7105_v13  ;;  %v2543_v24 = vsub.f32 1.0, %v2542_v0  ;;  %vm3527_vm1 = vcmask 1048512   ;;  %v2552_v27 = vand.u32 2147483648, %v7156_v17  ;;  %v8772_v44 = vld [vmem:[#allocation132_spill] sm:$0xff] }
 0x367   :  { %v3357_v10 = vadd.f32 %v3266_v7, %v3265_v9  ;;  %v2500_v20 = vadd.f32 %v7243_v12, %v2499_v56  ;;  %v2557_v58 = vmul.f32 %v7230_v37, %v7170_v5  ;;  %vm2506_vm6 = vcmp.eq.f32.partialorder %v2505_v46, 8.507059e+37  ;;  %v8774_v56 = vld [vmem:[#allocation138_spill] sm:$0xff] }
 0x368   :  { %v2508_v13 = vor.u32 1.1754944e-38, %v2507_v30  ;;  %v3233_v4 = vmul.f32 %v3105_v6, %v3105_v6  ;;  %3169 = vst [vmem:[#allocation12 + $0xc0] sm:$0xff] %v3105_v6  ;;  %v2544_v41 = vmul.f32 %v7217_v52, %v2543_v24  ;;  %vm7691_vm8 = vcmp.eq.f32.partialorder %v2550_v18, 8.507059e+37 }
 0x369   :  { %3358 = vadd.xlane.f32.xlu0 %v3357_v10  ;;  %v2504_v1 = vsel %vm2503_vm4, %v7243_v12, %v2500_v20  ;;  %v2558_v53 = vsub.f32 1.0, %v2557_v58  ;;  %vm2561_vm9 = vweird.f32 %v7170_v5  ;;  %v2553_v19 = vor.u32 1.1754944e-38, %v2552_v27  ;;  %v8776_v27 = vld [vmem:[#allocation92_spill] sm:$0xff] }
 0x36a   :  { %v2509_v45 = vsel %vm2506_vm6, %v2508_v13, %v2504_v1  ;;  %v2545_v23 = vadd.f32 %v7217_v52, %v2544_v41  ;;  %v2567_v39 = vand.u32 2147483648, %v7170_v5  ;;  %vm2562_vm10 = vweird.f32 %v7230_v37  ;;  %v3278_v41 = vpop.xlane.xlu0 %3277 }
 0x36b   :  { %v3106_v61 = vmul.f32 %v2509_v45, %v7108_v38  ;;  %v2559_v12 = vmul.f32 %v7230_v37, %v2558_v53  ;;  %v2565_v32 = vand.u32 2147483647, %v7170_v5  ;;  %v3267_v51 = vmul.f32 %v7498_v21, %v7498_v21  ;;  %vm2563_vm14 = vmor %vm2561_vm9, %vm2562_vm10 }
 0x36c   :  { %v2549_v57 = vsel %vm2548_vm7, %v7217_v52, %v2545_v23  ;;  %v3268_v38 = vmul.f32 %v7510_v55, %v7510_v55  ;;  %v3235_v42 = vmul.f32 %v7484_v35, %v7484_v35  ;;  %v2568_v28 = vor.u32 1.1754944e-38, %v2567_v39  ;;  %v8759_v55 = vld [vmem:[#allocation17_spill] sm:$0xff]  ;;  %v4561_v39 = vld [vmem:[#allocation12 + $0x1e0] sm:$0xff] }
 0x36d   :  { %3170 = vst [vmem:[#allocation12 + $0xc8] sm:$0xff] %v3106_v61  ;;  %v3234_v17 = vmul.f32 %v3106_v61, %v3106_v61  ;;  %v2554_v2 = vsel %vm7691_vm8, %v2553_v19, %v2549_v57  ;;  %v2560_v33 = vadd.f32 %v7230_v37, %v2559_v12  ;;  %v3236_v21 = vmul.f32 %v7493_v47, %v7493_v47  ;;  %v8761_v35 = vld [vmem:[#allocation69_spill] sm:$0xff] }
 0x36e   :  { %v3109_v52 = vmul.f32 %v2554_v2, %v7002_v16  ;;  %v3369_v26 = vmul.f32 %v3275_v54, %v8759_v55  ;;  %v3052_v62 = vmul.f32 %v8761_v35, %v8760_v3  ;;  %vm2566_vm15 = vcmp.eq.f32.partialorder %v2565_v32, 8.507059e+37  ;;  %v4562_v32 = vld [vmem:[#allocation12 + $0x1e8] sm:$0xff] }
 0x36f   :  { %v3309_v40 = vadd.f32 %v3234_v17, %v3233_v4  ;;  %v2564_v48 = vsel %vm2563_vm14, %v7230_v37, %v2560_v33  ;;  %v8765_v11 = vperm.slane %v8763_v14, %v8764_v34  ;;  %vm8766_vm13 = vcmask 982912   ;;  %v8777_v17 = vld [vmem:[#allocation67_spill] sm:$0xff] }
 0x370   :  { %v7731_v16 = vrot.slane %v8767_v22, 7  ;;  %v2569_v36 = vsel %vm2566_vm15, %v2568_v28, %v2564_v48  ;;  %3173 = vst [vmem:[#allocation12 + $0xe0] sm:$0xff] %v3109_v52  ;;  %v3312_v47 = vadd.f32 %v3236_v21, %v3235_v42  ;;  %v7734_v8 = vmul.f32 %v3369_v26, %v8768_v29  ;;  %v8778_v28 = vld [vmem:[#allocation94_spill] sm:$0xff]  ;;  %v8784_v29 = vld [vmem:[#allocation16_spill] sm:$0xff] }
 0x371   :  { %v3557_v5 = vsel %vm8766_vm13, %v8765_v11, %v8762_v50  ;;  %3310 = vadd.xlane.f32.xlu1 %v3309_v40  ;;  %v3110_v59 = vmul.f32 %v2569_v36, %v8769_v60  ;;  %v3237_v37 = vmul.f32 %v3109_v52, %v3109_v52  ;;  %v3053_v9 = vsub.f32 1.0, %v3052_v62  ;;  %v8781_v48 = vld [vmem:[#allocation98_spill] sm:$0xff] }
 0x372   :  { %v8773_v46 = vperm.slane %v8771_v31, %v8772_v44  ;;  %v3360_v0 = vadd.f32 %v3268_v38, %v3267_v51  ;;  %3313 = vadd.xlane.f32.xlu2 %v3312_v47  ;;  %v3062_v7 = vand.u32 2147483648, %v8760_v3  ;;  %v3067_v43 = vmul.f32 %v7606_v15, %v7374_v63  ;;  %v8782_v11 = vld [vmem:[#allocation26_spill] sm:$0xff] }
 0x373   :  { %v8775_v6 = vperm.slane %v8774_v56, %v8772_v44  ;;  %3174 = vst [vmem:[#allocation12 + $0xe8] sm:$0xff] %v3110_v59  ;;  %v3238_v18 = vmul.f32 %v3110_v59, %v3110_v59  ;;  %v3054_v10 = vmul.f32 %v8761_v35, %v3053_v9  ;;  %vm3057_vm0 = vweird.f32 %v8761_v35 }
 0x374   :  { %v7742_v30 = vsel %vm3527_vm1, %v8773_v46, %v8770_v49  ;;  %v3060_v20 = vand.u32 2147483647, %v8760_v3  ;;  %v3633_v58 = vperm.slane %v7734_v8, %v8776_v27  ;;  %v3703_v13 = vmul.f32 %v3369_v26, %v3369_v26 }
 0x375   :  { %v7751_v24 = vsel %vm3527_vm1, %v8775_v6, %v3557_v5  ;;  %vm3056_vm2 = vweird.f32 %v8760_v3  ;;  %v3068_v4 = vsub.f32 1.0, %v3067_v43  ;;  %vm318_vm12 = vcmask 1041409   ;;  %v8779_v3 = vld [vmem:[#allocation42_spill] sm:$0xff]  ;;  %v3326_v6 = vpop.xlane.xlu1 %3325 }
 0x376   :  { %v3315_v1 = vadd.f32 %v3238_v18, %v3237_v37  ;;  %v3055_v25 = vadd.f32 %v8761_v35, %v3054_v10  ;;  %v3063_v53 = vor.u32 1.1754944e-38, %v3062_v7  ;;  %v3077_v45 = vand.u32 2147483648, %v7374_v63  ;;  %vm3058_vm3 = vmor %vm3056_vm2, %vm3057_vm0  ;;  %v3323_v18 = vpop.xlane.xlu2 %3322 }
 0x377   :  { %v3069_v23 = vmul.f32 %v7606_v15, %v3068_v4  ;;  %vm3072_vm5 = vweird.f32 %v7606_v15  ;;  %v3075_v19 = vand.u32 2147483647, %v7374_v63  ;;  %v3269_v61 = vmul.f32 %v4561_v39, %v4561_v39 }
 0x378   :  { %3316 = vadd.xlane.f32.xlu0 %v3315_v1  ;;  %v3059_v12 = vsel %vm3058_vm3, %v8761_v35, %v3055_v25  ;;  %vm3061_vm11 = vcmp.eq.f32.partialorder %v3060_v20, 8.507059e+37  ;;  %v3270_v54 = vmul.f32 %v4562_v32, %v4562_v32  ;;  %v3370_v57 = vmul.f32 %v3278_v41, %v8759_v55  ;;  %v3281_v20 = vpop.xlane.xlu0 %3280 }
 0x379   :  { %v3064_v51 = vsel %vm3061_vm11, %v3063_v53, %v3059_v12  ;;  %v3070_v38 = vadd.f32 %v7606_v15, %v3069_v23  ;;  %vm3071_vm4 = vweird.f32 %v7374_v63  ;;  %v3078_v42 = vor.u32 1.1754944e-38, %v3077_v45  ;;  %3361 = vadd.xlane.f32.xlu1 %v3360_v0  ;;  %v8780_v63 = vld [vmem:[#allocation68_spill] sm:$0xff] }
 0x37a   :  { %vm3073_vm6 = vmor %vm3071_vm4, %vm3072_vm5  ;;  %v3143_v2 = vmul.f32 %v3064_v51, %v8777_v17  ;;  %v3363_v33 = vadd.f32 %v3270_v54, %v3269_v61  ;;  %v3570_v52 = vmul.f32 %v3370_v57, %v8778_v28  ;;  %v3704_v21 = vmul.f32 %v3370_v57, %v3370_v57  ;;  %v8787_v23 = vld [vmem:[#allocation96_spill] sm:$0xff]  ;;  %v8788_v61 = vld [vmem:[#allocation95_spill] sm:$0xff] }
 0x37b   :  { %v3074_v26 = vsel %vm3073_vm6, %v7606_v15, %v3070_v38  ;;  %vm3076_vm8 = vcmp.eq.f32.partialorder %v3075_v19, 8.507059e+37  ;;  %v3239_v35 = vmul.f32 %v8779_v3, %v8779_v3  ;;  %v3240_v40 = vmul.f32 %v8780_v63, %v8780_v63  ;;  %v8789_v51 = vld [vmem:[#allocation97_spill] sm:$0xff] }
 0x37c   :  { %v3079_v62 = vsel %vm3076_vm8, %v3078_v42, %v3074_v26  ;;  %3207 = vst [vmem:[#allocation12 + $0x1f0] sm:$0xff] %v3143_v2  ;;  %3364 = vadd.xlane.f32.xlu2 %v3363_v33  ;;  %v3634_v50 = vperm.slane %v3570_v52, %v8781_v48  ;;  %vm320_vm9 = vcmask 1043459   ;;  %v3767_v14 = vperm.slane %v3703_v13, %v8776_v27  ;;  %v8791_v26 = vld [vmem:[#allocation100_spill] sm:$0xff] }
 0x37d   :  { %v3144_v5 = vmul.f32 %v3079_v62, %v8782_v11  ;;  %v3271_v22 = vmul.f32 %v3143_v2, %v3143_v2  ;;  %v3768_v15 = vperm.slane %v3704_v21, %v8781_v48  ;;  %v4637_v36 = vmov 0.0   ;;  %v3284_v10 = vpop.xlane.xlu1 %3283  ;;  %v8790_v2 = vld [vmem:[#allocation99_spill] sm:$0xff] }
 0x37e   :  { %41 = vst [vmem:[#allocation2] sm:$0xf] %v4637_v36  ;;  %vm8783_vm7 = vcmask 130112   ;;  %v319_v8 = vsel %vm318_vm12, %v7731_v16, %v8784_v29  ;;  %vm322_vm10 = vcmask 1045509   ;;  %vm324_vm14 = vcmask 1047559  }
 0x37f   :  { %v7783_v47 = vsel %vm8783_vm7, %v3634_v50, %v3633_v58  ;;  %3208 = vst [vmem:[#allocation12 + $0x1f8] sm:$0xff] %v3144_v5  ;;  %v3272_v60 = vmul.f32 %v3144_v5, %v3144_v5  ;;  %vm8785_vm15 = vmmov %vm8783_vm7  ;;  %v321_v37 = vsel %vm320_vm9, %v7731_v16, %v319_v8  ;;  %v3318_v9 = vadd.f32 %v3240_v40, %v3239_v35  ;;  %v3329_v58 = vpop.xlane.xlu2 %3328  ;;  %v8793_v8 = vld [vmem:[#allocation102_spill] sm:$0xff] }
 0x380   :  { %v7789_v59 = vsel %vm8785_vm15, %v3768_v15, %v3767_v14  ;;  %v323_v49 = vsel %vm322_vm10, %v7731_v16, %v321_v37  ;;  %v3560_v31 = vsel %vm318_vm12, %v7751_v24, %v7742_v30  ;;  %vm8786_vm13 = vcmask 1041408   ;;  %v3332_v4 = vpop.xlane.xlu0 %3331  ;;  %vm8797_vm0 = vmmov %vm8783_vm7 }
 0x381   :  { %v3366_v46 = vadd.f32 %v3272_v60, %v3271_v22  ;;  %v325_v0 = vsel %vm324_vm14, %v7731_v16, %v323_v49  ;;  %3319 = vadd.xlane.f32.xlu1 %v3318_v9  ;;  %v3562_v7 = vsel %vm8786_vm13, %v3560_v31, 0.0  ;;  %v3386_v41 = vmul.f32 %v3326_v6, %v8759_v55  ;;  %v8792_v22 = vld [vmem:[#allocation101_spill] sm:$0xff]  ;;  %v8794_v31 = vld [vmem:[#allocation103_spill] sm:$0xff]  ;;  %vm8798_vm2 = vmmov %vm8797_vm0 }
 0x382   :  { %v3385_v25 = vmul.f32 %v3323_v18, %v8759_v55  ;;  %v3371_v53 = vmul.f32 %v3281_v20, %v8759_v55  ;;  %v3387_v45 = vmul.f32 %v3329_v58, %v8759_v55  ;;  %v3372_v39 = vmul.f32 %v3284_v10, %v8759_v55  ;;  %v8799_v20 = vld [vmem:[#allocation106_spill] sm:$0xff] }
 0x383   :  { %3367 = vadd.xlane.f32.xlu0 %v3366_v46  ;;  %v3586_v19 = vmul.f32 %v3386_v41, %v8787_v23  ;;  %v3720_v57 = vmul.f32 %v3386_v41, %v3386_v41  ;;  %v3388_v17 = vmul.f32 %v3332_v4, %v8759_v55  ;;  %vm8800_vm3 = vcmask 195712  }
 0x384   :  { %3563 = vadd.xlane.f32.xlu2 %v3562_v7  ;;  %v3585_v12 = vmul.f32 %v3385_v25, %v8788_v61  ;;  %v3719_v32 = vmul.f32 %v3385_v25, %v3385_v25  ;;  %v3571_v38 = vmul.f32 %v3371_v53, %v8789_v51  ;;  %v3705_v42 = vmul.f32 %v3371_v53, %v3371_v53  ;;  %vm8801_vm5 = vmmov %vm8800_vm3  ;;  %v8803_v25 = vld [vmem:[#allocation107_spill] sm:$0xff]  ;;  %v8805_v61 = vld [vmem:[#allocation108_spill] sm:$0xff] }
 0x385   :  { %v219_v43 = vld [vmem:[#allocation2] sm:$0xf]  ;;  %v3335_v13 = vpop.xlane.xlu1 %3334  ;;  %v3587_v33 = vmul.f32 %v3387_v45, %v8790_v2  ;;  %v3721_v28 = vmul.f32 %v3387_v45, %v3387_v45  ;;  %v3665_v21 = vperm.slane %v3586_v19, %v8781_v48  ;;  %v3572_v3 = vmul.f32 %v3372_v39, %v8791_v26  ;;  %vm8802_vm11 = vmmov %vm8800_vm3 }
 0x386   :  { %v327_v56 = vadd.f32 %v325_v0, %v219_v43  ;;  %v3389_v35 = vmul.f32 %v3335_v13, %v8759_v55  ;;  %v3664_v40 = vperm.slane %v3585_v12, %v8776_v27  ;;  %v3798_v50 = vperm.slane %v3719_v32, %v8776_v27  ;;  %v8795_v0 = vld [vmem:[#allocation104_spill] sm:$0xff]  ;;  %v8796_v43 = vld [vmem:[#allocation105_spill] sm:$0xff]  ;;  %vm8808_vm8 = vmmov %vm8800_vm3 }
 0x387   :  { %v3287_v30 = vpop.xlane.xlu2 %3286  ;;  %v3706_v14 = vmul.f32 %v3372_v39, %v3372_v39  ;;  %v3799_v5 = vperm.slane %v3720_v57, %v8781_v48  ;;  %v3636_v15 = vperm.slane %v3571_v38, %v8792_v22  ;;  %v3770_v29 = vperm.slane %v3705_v42, %v8792_v22  ;;  %v8807_v57 = vld [vmem:[#allocation110_spill] sm:$0xff] }
 0x388   :  { %328 = vst [vmem:[#allocation2] sm:$0xf] %v327_v56  ;;  %v3290_v16 = vpop.xlane.xlu0 %3289  ;;  %v3373_v52 = vmul.f32 %v3287_v30, %v8759_v55  ;;  %v3588_v60 = vmul.f32 %v3388_v17, %v8793_v8  ;;  %v3667_v37 = vperm.slane %v3587_v33, %v8792_v22  ;;  %v3801_v9 = vperm.slane %v3721_v28, %v8792_v22 }
 0x389   :  { %v3374_v11 = vmul.f32 %v3290_v16, %v8759_v55  ;;  %v3722_v49 = vmul.f32 %v3388_v17, %v3388_v17  ;;  %v3638_v27 = vperm.slane %v3572_v3, %v8795_v0  ;;  %v3589_v56 = vmul.f32 %v3389_v35, %v8796_v43  ;;  %v8821_v43 = vld [vmem:[#allocation115_spill] sm:$0xff] }
 0x38a   :  { %v3573_v46 = vmul.f32 %v3373_v52, %v8794_v31  ;;  %v3707_v7 = vmul.f32 %v3373_v52, %v3373_v52  ;;  %v3666_v6 = vsel %vm8797_vm0, %v3665_v21, %v3664_v40  ;;  %v3800_v18 = vsel %vm8798_vm2, %v3799_v5, %v3798_v50  ;;  %v8816_v5 = vld [vmem:[#allocation109_spill] sm:$0xff] }
 0x38b   :  { %v3772_v10 = vperm.slane %v3706_v14, %v8795_v0  ;;  %v3574_v58 = vmul.f32 %v3374_v11, %v8799_v20  ;;  %v3637_v13 = vsel %vm8800_vm3, %v3636_v15, %v7783_v47  ;;  %v3771_v4 = vsel %vm8801_vm5, %v3770_v29, %v7789_v59 }
 0x38c   :  { %v3669_v30 = vperm.slane %v3588_v60, %v8795_v0  ;;  %v3708_v41 = vmul.f32 %v3374_v11, %v3374_v11  ;;  %v3668_v16 = vsel %vm8802_vm11, %v3667_v37, %v3666_v6  ;;  %v3640_v53 = vperm.slane %v3573_v46, %v8803_v25  ;;  %v8815_v11 = vld [vmem:[#allocation111_spill] sm:$0xff]  ;;  %v8818_v60 = vld [vmem:[#allocation112_spill] sm:$0xff] }
 0x38d   :  { %v3293_v24 = vpop.xlane.xlu1 %3292  ;;  %v3723_v45 = vmul.f32 %v3389_v35, %v3389_v35  ;;  %vm8804_vm4 = vcmask 261312   ;;  %v3774_v39 = vperm.slane %v3707_v7, %v8803_v25  ;;  %v3671_v47 = vperm.slane %v3589_v56, %v8803_v25 }
 0x38e   :  { %v3639_v19 = vsel %vm8804_vm4, %v3638_v27, %v3637_v13  ;;  %vm8806_vm6 = vmmov %vm8804_vm4  ;;  %v3642_v51 = vperm.slane %v3574_v58, %v8807_v57  ;;  %v3375_v42 = vmul.f32 %v3293_v24, %v8759_v55  ;;  %v3802_v17 = vsel %vm8808_vm8, %v3801_v9, %v3800_v18 }
 0x38f   :  { %v3338_v1 = vpop.xlane.xlu2 %3337  ;;  %v3773_v32 = vsel %vm8806_vm6, %v3772_v10, %v3771_v4  ;;  %vm8809_vm7 = vmmov %vm8804_vm4  ;;  %v3776_v33 = vperm.slane %v3708_v41, %v8807_v57  ;;  %vm8811_vm13 = vcmask 326912   ;;  %v3805_v3 = vperm.slane %v3723_v45, %v8803_v25  ;;  %v8823_v10 = vld [vmem:[#allocation114_spill] sm:$0xff] }
 0x390   :  { %v3341_v62 = vpop.xlane.xlu0 %3340  ;;  %v3390_v48 = vmul.f32 %v3338_v1, %v8759_v55  ;;  %v3803_v1 = vperm.slane %v3722_v49, %v8795_v0  ;;  %v3670_v2 = vsel %vm8809_vm7, %v3669_v30, %v3668_v16  ;;  %vm8810_vm15 = vmmov %vm8804_vm4  ;;  %v3641_v26 = vsel %vm8811_vm13, %v3640_v53, %v3639_v19  ;;  %v8824_v30 = vld [vmem:[#allocation116_spill] sm:$0xff]  ;;  %v8825_v16 = vld [vmem:[#allocation117_spill] sm:$0xff] }
 0x391   :  { %v3391_v38 = vmul.f32 %v3341_v62, %v8759_v55  ;;  %vm8812_vm0 = vmmov %vm8811_vm13  ;;  %vm8814_vm3 = vcmask 392512   ;;  %v3575_v22 = vmul.f32 %v3375_v42, %v8816_v5  ;;  %v3709_v8 = vmul.f32 %v3375_v42, %v3375_v42  ;;  %v8827_v19 = vld [vmem:[#allocation118_spill] sm:$0xff] }
 0x392   :  { %v3590_v12 = vmul.f32 %v3390_v48, %v8805_v61  ;;  %v3804_v21 = vsel %vm8810_vm15, %v3803_v1, %v3802_v17  ;;  %v3724_v35 = vmul.f32 %v3390_v48, %v3390_v48  ;;  %v3775_v62 = vsel %vm8812_vm0, %v3774_v39, %v3773_v32  ;;  %vm8813_vm2 = vmmov %vm8812_vm0  ;;  %v8822_v48 = vld [vmem:[#allocation113_spill] sm:$0xff] }
 0x393   :  { %v3672_v24 = vsel %vm8813_vm2, %v3671_v47, %v3670_v2  ;;  %v3643_v14 = vsel %vm8814_vm3, %v3642_v51, %v3641_v26  ;;  %vm8817_vm5 = vmmov %vm8814_vm3  ;;  %v3725_v7 = vmul.f32 %v3391_v38, %v3391_v38  ;;  %v3644_v18 = vperm.slane %v3575_v22, %v8822_v48 }
 0x394   :  { %v3673_v40 = vperm.slane %v3590_v12, %v8807_v57  ;;  %v3777_v29 = vsel %vm8817_vm5, %v3776_v33, %v3775_v62  ;;  %vm8819_vm11 = vmmov %vm8812_vm0  ;;  %v3807_v31 = vperm.slane %v3724_v35, %v8807_v57  ;;  %v3778_v4 = vperm.slane %v3709_v8, %v8822_v48  ;;  %v8828_v12 = vld [vmem:[#allocation119_spill] sm:$0xff] }
 0x395   :  { %v7808_v54 = vpop.xlane.xlu1 %3343  ;;  %v3806_v49 = vsel %vm8819_vm11, %v3805_v3, %v3804_v21  ;;  %vm8820_vm4 = vmmov %vm8814_vm3  ;;  %v3809_v61 = vperm.slane %v3725_v7, %v8822_v48  ;;  %vm8829_vm8 = vcmask 458112   ;;  %vm8832_vm13 = vcmask 523712   ;;  %v8834_v3 = vld [vmem:[#allocation122_spill] sm:$0xff]  ;;  %v8846_v7 = vld [vmem:[#allocation124_spill] sm:$0xff] }
 0x396   :  { %v3392_v15 = vmul.f32 %v7808_v54, %v8759_v55  ;;  %v3674_v27 = vsel %vm8820_vm4, %v3673_v40, %v3672_v24  ;;  %vm8826_vm6 = vmmov %vm8814_vm3  ;;  %vm8836_vm3 = vcmask 589312  }
 0x397   :  { %v3296_v63 = vpop.xlane.xlu2 %3295  ;;  %v3808_v45 = vsel %vm8826_vm6, %v3807_v31, %v3806_v49  ;;  %vm8830_vm7 = vmmov %vm8829_vm8  ;;  %v3839_v31 = vld [vmem:[#allocation2] sm:$0xf] }
 0x398   :  { %v3376_v28 = vmul.f32 %v3296_v63, %v8759_v55  ;;  %v3591_v63 = vmul.f32 %v3391_v38, %v8815_v11  ;;  %v3592_v20 = vmul.f32 %v3392_v15, %v8823_v10  ;;  %v3726_v58 = vmul.f32 %v3392_v15, %v3392_v15  ;;  %vm8831_vm15 = vmmov %vm8830_vm7  ;;  %v8838_v11 = vld [vmem:[#allocation123_spill] sm:$0xff] }
 0x399   :  { %v3645_v42 = vsel %vm8830_vm7, %v3644_v18, %v3643_v14  ;;  %v3779_v33 = vsel %vm8831_vm15, %v3778_v4, %v3777_v29  ;;  %vm8833_vm0 = vmmov %vm8832_vm13  ;;  %v3845_v18 = vld [vmem:[%s8078_s1 + $0x20] sm:$0xff] }
 0x39a   :  { %v3576_v37 = vmul.f32 %v3376_v28, %v8818_v60  ;;  %v3710_v46 = vmul.f32 %v3376_v28, %v3376_v28  ;;  %v3675_v6 = vperm.slane %v3591_v63, %v8822_v48  ;;  %v3677_v17 = vperm.slane %v3592_v20, %v8824_v30  ;;  %vm8835_vm2 = vmmov %vm8830_vm7  ;;  %v3843_v48 = vld [vmem:[%s8078_s1 + $0x10] sm:$0xff]  ;;  %v3846_v20 = vld [vmem:[%s8078_s1 + $0x28] sm:$0xff] }
 0x39b   :  { %v3811_v2 = vperm.slane %v3726_v58, %v8824_v30  ;;  %v3810_v40 = vsel %vm8835_vm2, %v3809_v61, %v3808_v45  ;;  %vm8837_vm5 = vmmov %vm8836_vm3  ;;  %vm8843_vm7 = vcmask 654912   ;;  %v3847_v58 = vld [vmem:[%s8078_s1 + $0x30] sm:$0xff] }
 0x39c   :  { %v3646_v41 = vperm.slane %v3576_v37, %v8824_v30  ;;  %v3676_v38 = vsel %vm8829_vm8, %v3675_v6, %v3674_v27  ;;  %vm8839_vm11 = vmmov %vm8833_vm0  ;;  %v8845_v37 = vld [vmem:[#allocation121_spill] sm:$0xff]  ;;  %v3844_v6 = vld [vmem:[%s8078_s1 + $0x18] sm:$0xff] }
 0x39d   :  { %v3302_v23 = vpop.xlane.xlu1 %3301  ;;  %v3678_v5 = vsel %vm8839_vm11, %v3677_v17, %v3676_v38  ;;  %vm8840_vm4 = vmmov %vm8833_vm0 }
 0x39e   :  { %v3299_v59 = vpop.xlane.xlu0 %3298  ;;  %v3378_v0 = vmul.f32 %v3302_v23, %v8759_v55  ;;  %v3780_v23 = vperm.slane %v3710_v46, %v8824_v30  ;;  %v3647_v28 = vsel %vm8832_vm13, %v3646_v41, %v3645_v42  ;;  %v3812_v22 = vsel %vm8840_vm4, %v3811_v2, %v3810_v40  ;;  %vm8841_vm6 = vmmov %vm8836_vm3  ;;  %v3841_v46 = vld [vmem:[%s8078_s1] sm:$0xff] }
 0x39f   :  { %v3347_v52 = vpop.xlane.xlu2 %3346  ;;  %v3377_v50 = vmul.f32 %v3299_v59, %v8759_v55  ;;  %vm8842_vm8 = vmmov %vm8836_vm3  ;;  %v3849_v10 = vmul.f32 %v3841_v46, %v3841_v46  ;;  %v3851_v30 = vmul.f32 %v3843_v48, %v3843_v48  ;;  %v3852_v41 = vmul.f32 %v3844_v6, %v3844_v6 }
 0x3a0   :  { %v3393_v9 = vmul.f32 %v3347_v52, %v8759_v55  ;;  %v3578_v39 = vmul.f32 %v3378_v0, %v8827_v19  ;;  %v3712_v47 = vmul.f32 %v3378_v0, %v3378_v0  ;;  %v3781_v26 = vsel %vm8833_vm0, %v3780_v23, %v3779_v33  ;;  %vm8844_vm15 = vmmov %vm8843_vm7  ;;  %v3842_v0 = vld [vmem:[%s8078_s1 + $0x8] sm:$0xff] }
 0x3a1   :  { %v3577_v56 = vmul.f32 %v3377_v50, %v8821_v43  ;;  %v3711_v54 = vmul.f32 %v3377_v50, %v3377_v50  ;;  %v3850_v4 = vmul.f32 %v3842_v0, %v3842_v0  ;;  %vm42_vm13 = vcmask 1024  }
 0x3a2   :  { %v3593_v1 = vmul.f32 %v3393_v9, %v8825_v16  ;;  %v3727_v25 = vmul.f32 %v3393_v9, %v3393_v9  ;;  %v3650_v35 = vperm.slane %v3578_v39, %v8834_v3  ;;  %v3784_v62 = vperm.slane %v3712_v47, %v8834_v3  ;;  %43 = vst.msk [vmem:[#allocation3] sm:$0x3] %vm42_vm13, %v4637_v36 }
 0x3a3   :  { %v3648_v59 = vperm.slane %v3577_v56, %v8828_v12  ;;  %v3782_v32 = vperm.slane %v3711_v54, %v8828_v12  ;;  %v7929_v54 = vmul.f32 0.0078125, %v3839_v31  ;;  %v3853_v16 = vmul.f32 %v3845_v18, %v3845_v18  ;;  %44 = vst.msk [vmem:[#allocation4] sm:$0x3] %vm42_vm13, %v4637_v36 }
 0x3a4   :  { %v3679_v52 = vperm.slane %v3593_v1, %v8828_v12  ;;  %v3813_v21 = vperm.slane %v3727_v25, %v8828_v12  ;;  %v3854_v1 = vmul.f32 %v3846_v20, %v3846_v20  ;;  %v3855_v25 = vmul.f32 %v3847_v58, %v3847_v58  ;;  %45 = vst.msk [vmem:[#allocation5] sm:$0x3] %vm42_vm13, %v4637_v36 }
 0x3a5   :  { %v3649_v50 = vsel %vm8836_vm3, %v3648_v59, %v3647_v28  ;;  %v3783_v14 = vsel %vm8837_vm5, %v3782_v32, %v3781_v26  ;;  %v3857_v39 = vadd.f32 %v3851_v30, %v3849_v10  ;;  %v3864_v47 = vadd.f32 %v3852_v41, %v3850_v4  ;;  %vm8852_vm3 = vmmov %vm8843_vm7 }
 0x3a6   :  { %v7908_v15 = vsel %vm8841_vm6, %v3679_v52, %v3678_v5  ;;  %v7911_v29 = vsel %vm8842_vm8, %v3813_v21, %v3812_v22  ;;  %v3651_v8 = vsel %vm8843_vm7, %v3650_v35, %v3649_v50  ;;  %v7915_v60 = vsel %vm8844_vm15, %v3784_v62, %v3783_v14  ;;  %vm8853_vm5 = vmmov %vm8852_vm3 }
 0x3a7   :  { %v3871_v61 = vadd.f32 %v3855_v25, %v3853_v16  ;;  %v4638_v59 = vmov 16.0   ;;  %v3896_v32 = vmul.f32 %v7929_v54, %v7929_v54  ;;  %v3858_v42 = vrot.slane %v3857_v39, 4  ;;  %v8854_v16 = vld [vmem:[#allocation127_spill] sm:$0xff] }
 0x3a8   :  { %4546 = vrcp.f32 %v4638_v59  ;;  %v3865_v17 = vrot.slane %v3864_v47, 4  ;;  %vm8848_vm0 = vcmask 720512   ;;  %vm8856_vm4 = vcmask 1041408  }
 0x3a9   :  { %v3872_v33 = vrot.slane %v3871_v61, 4  ;;  %3898 = vst [vmem:[#allocation1] ss:$4 sm:$0xff] %v3896_v32  ;;  %v3859_v26 = vadd.f32 %v3858_v42, %v3857_v39  ;;  %vm8851_vm2 = vmmov %vm8848_vm0  ;;  %vm8861_vm15 = vcmask 786112  }
 0x3aa   :  { %v3866_v35 = vadd.f32 %v3865_v17, %v3864_v47  ;;  %v8855_v47 = vld [vmem:[#allocation84_spill] sm:$0xff]  ;;  %vm8857_vm6 = vmmov %vm8856_vm4 }
 0x3ab   :  { %v3873_v50 = vadd.f32 %v3872_v33, %v3871_v61  ;;  %v3860_v22 = vrot.slane %v3859_v26, 2  ;;  %vm8858_vm8 = vmmov %vm8848_vm0 }
 0x3ac   :  { %vm8860_vm7 = vmmov %vm8848_vm0 }
 0x3ad   :  { %v3874_v46 = vrot.slane %v3873_v50, 2  ;;  %v3861_v6 = vadd.f32 %v3860_v22, %v3859_v26  ;;  %v8862_v22 = vld [vmem:[#allocation57_spill] sm:$0xff] }
 0x3af   :  { %v3353_v13 = vpop.xlane.xlu1 %3352  ;;  %v3875_v10 = vadd.f32 %v3874_v46, %v3873_v50  ;;  %v3862_v4 = vrot.slane %v3861_v6, 1 }
 0x3b0   :  { %v3395_v51 = vmul.f32 %v3353_v13, %v8759_v55  ;;  %v3848_v13 = vld [vmem:[%s8078_s1 + $0x38] sm:$0xff]  ;;  %v3899_v41 = vld.sshfl [vmem:[#allocation1] sm:$0xff pattern:$0x73625140]  ;;  %s4639_s1 = smov [#allocation12]  }
 0x3b1   :  { %v3876_v25 = vrot.slane %v3875_v10, 1  ;;  %s4057_s7 = sshll.u32 %s4639_s1, 4  ;;  %s4058_s7 = int_to_ptr.vmem [resolvable:$true] %s4057_s7 }
 0x3b2   :  { %v7903_v63 = vmul.f32 %v3395_v51, %v8838_v11  ;;  %v7918_v49 = vmul.f32 %v3395_v51, %v3395_v51  ;;  %4065 = dma.vmem_to_hbm [thread:$0]  %s4058_s7, 8192, %s4060_s9, [#allocation9], %s4630_s23, %s4630_s23, %s4631_s24  }
 0x3b3   :  { %v3877_v17 = vadd.f32 %v3876_v25, %v3875_v10  ;;  %v8869_v25 = vld [vmem:[#allocation129_spill] sm:$0xff] }
 0x3b4   :  { %v3683_v43 = vperm.slane %v7903_v63, %v8846_v7  ;;  %v3817_v52 = vperm.slane %v7918_v49, %v8846_v7 }
 0x3be   :  { %v3305_v57 = vpop.xlane.xlu2 %3304 }
 0x3bf   :  { %v3379_v24 = vmul.f32 %v3305_v57, %v8759_v55  ;;  %v8847_v57 = vld [vmem:[#allocation120_spill] sm:$0xff] }
 0x3c1   :  { %v3579_v9 = vmul.f32 %v3379_v24, %v8845_v37  ;;  %v3713_v23 = vmul.f32 %v3379_v24, %v3379_v24  ;;  %v3867_v37 = vrot.slane %v3866_v35, 2 }
 0x3c3   :  { %v3652_v45 = vperm.slane %v3579_v9, %v8846_v7  ;;  %v3786_v24 = vperm.slane %v3713_v23, %v8846_v7  ;;  %v4547_v9 = vpop.eup %4546  ;;  %v3868_v18 = vadd.f32 %v3867_v37, %v3866_v35  ;;  %v3900_v23 = vld.sshfl [vmem:[#allocation1 + $0x8] sm:$0xff pattern:$0x73625140] }
 0x3c4   :  { %v3886_v58 = vmul.f32 16.0, %v4547_v9  ;;  %vm3890_vm11 = vweird.f32 %v4547_v9  ;;  %v3904_v42 = vsel %vm8857_vm6, %v3900_v23, 0.0  ;;  %v8859_v35 = vld [vmem:[#allocation128_spill] sm:$0xff]  ;;  %vm8871_vm6 = vmmov %vm8856_vm4 }
 0x3c5   :  { %v7960_v62 = vsel %vm8848_vm0, %v3652_v45, %v3651_v8  ;;  %v8849_v8 = vld [vmem:[#allocation79_spill] sm:$0xff]  ;;  %v3869_v30 = vrot.slane %v3868_v18, 1  ;;  %vm8863_vm0 = vmmov %vm8861_vm15 }
 0x3c6   :  { %v3350_v53 = vpop.xlane.xlu0 %3349  ;;  %v3887_v45 = vsub.f32 1.0, %v3886_v58 }
 0x3c7   :  { %v3394_v27 = vmul.f32 %v3350_v53, %v8759_v55  ;;  %v3856_v53 = vmul.f32 %v3848_v13, %v3848_v13 }
 0x3c8   :  { %v3888_v59 = vmul.f32 %v4547_v9, %v3887_v45  ;;  %v8870_v45 = vld [vmem:[#allocation82_spill] sm:$0xff] }
 0x3c9   :  { %v3878_v12 = vadd.f32 %v3856_v53, %v3854_v1  ;;  %v3594_v51 = vmul.f32 %v3394_v27, %v8847_v57  ;;  %v3728_v38 = vmul.f32 %v3394_v27, %v3394_v27  ;;  %v8850_v27 = vld [vmem:[#allocation125_spill] sm:$0xff] }
 0x3ca   :  { %v3889_v33 = vadd.f32 %v4547_v9, %v3888_v59 }
 0x3cb   :  { %v3879_v28 = vrot.slane %v3878_v12, 4  ;;  %v3681_v11 = vperm.slane %v3594_v51, %v8834_v3  ;;  %v3815_v5 = vperm.slane %v3728_v38, %v8834_v3  ;;  %v3787_v3 = vsel %vm8851_vm2, %v3786_v24, %v7915_v60  ;;  %vm8864_vm2 = vmmov %vm8863_vm0 }
 0x3cc   :  { %v3863_v51 = vadd.f32 %v3862_v4, %v3861_v6  ;;  %v3870_v38 = vadd.f32 %v3869_v30, %v3868_v18 }
 0x3cd   :  { %v3356_v19 = vpop.xlane.xlu2 %3355  ;;  %v3880_v14 = vadd.f32 %v3879_v28, %v3878_v12  ;;  %v3682_v36 = vsel %vm8852_vm3, %v3681_v11, %v7908_v15  ;;  %v3816_v13 = vsel %vm8853_vm5, %v3815_v5, %v7911_v29  ;;  %v3903_v29 = vsel %vm8856_vm4, %v3899_v41, 0.0  ;;  %vm8865_vm3 = vmmov %vm8863_vm0 }
 0x3ce   :  { %v3396_v2 = vmul.f32 %v3356_v19, %v8759_v55  ;;  %v3905_v28 = vadd.f32 %v3904_v42, %v3903_v29  ;;  %v3818_v50 = vsel %vm8860_vm7, %v3817_v52, %v3816_v13  ;;  %v3891_v5 = vsel %vm3890_vm11, %v4547_v9, %v3889_v33  ;;  %vm8874_vm7 = vmmov %vm8856_vm4  ;;  %v8875_v42 = vld [vmem:[#allocation86_spill] sm:$0xff] }
 0x3cf   :  { %v3881_v0 = vrot.slane %v3880_v14, 2  ;;  %v3892_v7 = vmul.f32 %v3891_v5, %v3863_v51  ;;  %v3894_v46 = vmul.f32 %v3891_v5, %v3877_v17  ;;  %vm8866_vm5 = vcmask 851712  }
 0x3d0   :  { %v3596_v49 = vmul.f32 %v3396_v2, %v8849_v8  ;;  %v3730_v31 = vmul.f32 %v3396_v2, %v3396_v2  ;;  %3906 = vadd.xlane.f32.xlu0 %v3905_v28  ;;  %vm8868_vm11 = vmmov %vm8866_vm5 }
 0x3d1   :  { %v3882_v20 = vadd.f32 %v3881_v0, %v3880_v14  ;;  %v3936_v58 = vmul.f32 %v3892_v7, %v3892_v7  ;;  %v3938_v41 = vmul.f32 %v3894_v46, %v3894_v46 }
 0x3d2   :  { %v3685_v1 = vperm.slane %v3596_v49, %v8854_v16  ;;  %v3819_v60 = vperm.slane %v3730_v31, %v8854_v16 }
 0x3d3   :  { %v3883_v53 = vrot.slane %v3882_v20, 1 }
 0x3d4   :  { %v3308_v56 = vpop.xlane.xlu0 %3307  ;;  %v3820_v8 = vsel %vm8863_vm0, %v3819_v60, %v3818_v50  ;;  %vm8877_vm0 = vmmov %vm8866_vm5 }
 0x3d5   :  { %v3380_v21 = vmul.f32 %v3308_v56, %v8759_v55  ;;  %v3884_v2 = vadd.f32 %v3883_v53, %v3882_v20 }
 0x3d7   :  { %v3580_v56 = vmul.f32 %v3380_v21, %v8850_v27  ;;  %v3714_v39 = vmul.f32 %v3380_v21, %v3380_v21  ;;  %v3684_v21 = vsel %vm8858_vm8, %v3683_v43, %v3682_v36  ;;  %v3893_v43 = vmul.f32 %v3891_v5, %v3870_v38  ;;  %vm8873_vm8 = vmmov %vm8856_vm4 }
 0x3d8   :  { %v3686_v14 = vsel %vm8861_vm15, %v3685_v1, %v3684_v21  ;;  %v3895_v52 = vmul.f32 %v3891_v5, %v3884_v2  ;;  %vm8876_vm15 = vmmov %vm8866_vm5 }
 0x3d9   :  { %v3654_v19 = vperm.slane %v3580_v56, %v8854_v16  ;;  %v3788_v26 = vperm.slane %v3714_v39, %v8854_v16  ;;  %v8867_v56 = vld [vmem:[#allocation62_spill] sm:$0xff]  ;;  %v3937_v30 = vmul.f32 %v3893_v43, %v3893_v43 }
 0x3da   :  { %v3913_v20 = vrot.slane %v3895_v52, 6  ;;  %v3939_v16 = vmul.f32 %v3895_v52, %v3895_v52 }
 0x3db   :  { %v3655_v49 = vsel %vm8864_vm2, %v3654_v19, %v7960_v62  ;;  %v3789_v0 = vsel %vm8865_vm3, %v3788_v26, %v3787_v3  ;;  %vm8878_vm2 = vcmask 917312   ;;  %vm8884_vm3 = vcmask 982912  }
 0x3dc   :  { %v3359_v40 = vpop.xlane.xlu0 %3358  ;;  %v3915_v3 = vsel %vm8856_vm4, %v3894_v46, %v3913_v20  ;;  %v8883_v20 = vld [vmem:[#allocation90_spill] sm:$0xff]  ;;  %vm8887_vm4 = vmmov %vm8884_vm3 }
 0x3dd   :  { %v3397_v48 = vmul.f32 %v3359_v40, %v8759_v55  ;;  %v3918_v39 = vrot.slane %v3915_v3, 7 }
 0x3df   :  { %v3597_v61 = vmul.f32 %v3397_v48, %v8855_v47  ;;  %v3731_v15 = vmul.f32 %v3397_v48, %v3397_v48  ;;  %v3912_v48 = vrot.slane %v3893_v43, 6  ;;  %v3944_v47 = vsel %vm318_vm12, %v3938_v41, %v3936_v58 }
 0x3e1   :  { %v3687_v24 = vperm.slane %v3597_v61, %v8859_v35  ;;  %v3821_v11 = vperm.slane %v3731_v15, %v8859_v35  ;;  %v3914_v19 = vsel %vm8871_vm6, %v3892_v7, %v3912_v48  ;;  %v3945_v61 = vsel %vm318_vm12, %v3939_v16, %v3937_v30 }
 0x3e2   :  { %v3919_v51 = vsel %vm318_vm12, %v3918_v39, %v3914_v19 }
 0x3e3   :  { %v3688_v27 = vsel %vm8866_vm5, %v3687_v24, %v3686_v14  ;;  %v3822_v6 = vsel %vm8868_vm11, %v3821_v11, %v3820_v8  ;;  %v3920_v26 = vsel %vm320_vm9, %v3918_v39, %v3919_v51  ;;  %v3401_v11 = vld [vmem:[#allocation3] sm:$0x3]  ;;  %vm8879_vm9 = vmmov %vm8878_vm2 }
 0x3e4   :  { %v3311_v12 = vpop.xlane.xlu1 %3310  ;;  %v3921_v50 = vsel %vm322_vm10, %v3918_v39, %v3920_v26  ;;  %vm8881_vm10 = vmmov %vm8878_vm2 }
 0x3e5   :  { %v3381_v32 = vmul.f32 %v3311_v12, %v8759_v55  ;;  %v3314_v57 = vpop.xlane.xlu2 %3313  ;;  %v8872_v12 = vld [vmem:[#allocation58_spill] sm:$0xff]  ;;  %v3922_v5 = vsel %vm324_vm14, %v3918_v39, %v3921_v50  ;;  %vm8882_vm14 = vmmov %vm8878_vm2 }
 0x3e6   :  { %v3382_v40 = vmul.f32 %v3314_v57, %v8759_v55  ;;  %v3949_v57 = vsel %vm8874_vm7, %v3945_v61, 0.0  ;;  %vm8885_vm5 = vmmov %vm8884_vm3 }
 0x3e7   :  { %v3581_v37 = vmul.f32 %v3381_v32, %v8862_v22  ;;  %v3715_v63 = vmul.f32 %v3381_v32, %v3381_v32  ;;  %v3948_v32 = vsel %vm8873_vm8, %v3944_v47, 0.0  ;;  %vm8886_vm11 = vmmov %vm8884_vm3 }
 0x3e8   :  { %v3582_v9 = vmul.f32 %v3382_v40, %v8867_v56  ;;  %v3716_v18 = vmul.f32 %v3382_v40, %v3382_v40  ;;  %v3950_v38 = vadd.f32 %v3949_v57, %v3948_v32  ;;  %vm8888_vm8 = vmmov %vm8871_vm6 }
 0x3e9   :  { %v3656_v36 = vperm.slane %v3581_v37, %v8859_v35  ;;  %v3790_v62 = vperm.slane %v3715_v63, %v8859_v35  ;;  %vm8889_vm7 = vmmov %vm8871_vm6 }
 0x3ea   :  { %v3658_v53 = vperm.slane %v3582_v9, %v8869_v25  ;;  %v3792_v21 = vperm.slane %v3716_v18, %v8869_v25  ;;  %3951 = vadd.xlane.f32.xlu2 %v3950_v38 }
 0x3eb   :  { %v3317_v31 = vpop.xlane.xlu0 %3316  ;;  %v3657_v33 = vsel %vm8876_vm15, %v3656_v36, %v3655_v49  ;;  %v3791_v28 = vsel %vm8877_vm0, %v3790_v62, %v3789_v0  ;;  %v3924_v49 = vmul.f32 %v3922_v5, %v7929_v54  ;;  %v8880_v0 = vld [vmem:[#allocation63_spill] sm:$0xff]  ;;  %vm8890_vm15 = vmmov %vm8871_vm6 }
 0x3ec   :  { %v3362_v10 = vpop.xlane.xlu1 %3361  ;;  %v3383_v13 = vmul.f32 %v3317_v31, %v8759_v55  ;;  %v3659_v35 = vsel %vm8878_vm2, %v3658_v53, %v3657_v33  ;;  %v3793_v52 = vsel %vm8879_vm9, %v3792_v21, %v3791_v28  ;;  %v3702_v33 = vld [vmem:[#allocation5] sm:$0x3] }
 0x3ed   :  { %v3398_v4 = vmul.f32 %v3362_v10, %v8759_v55  ;;  %3926 = vst [vmem:[#allocation1] ss:$4 sm:$0xff] %v3924_v49 }
 0x3ee   :  { %v3583_v59 = vmul.f32 %v3383_v13, %v8872_v12  ;;  %v3717_v29 = vmul.f32 %v3383_v13, %v3383_v13 }
 0x3ef   :  { %v3365_v1 = vpop.xlane.xlu2 %3364  ;;  %v3598_v23 = vmul.f32 %v3398_v4, %v8870_v45  ;;  %v3732_v60 = vmul.f32 %v3398_v4, %v3398_v4 }
 0x3f0   :  { %v3399_v15 = vmul.f32 %v3365_v1, %v8759_v55  ;;  %v3660_v43 = vperm.slane %v3583_v59, %v8764_v34  ;;  %v3794_v8 = vperm.slane %v3717_v29, %v8764_v34 }
 0x3f1   :  { %v3689_v24 = vperm.slane %v3598_v23, %v8869_v25  ;;  %v3823_v40 = vperm.slane %v3732_v60, %v8869_v25 }
 0x3f2   :  { %v3599_v17 = vmul.f32 %v3399_v15, %v8875_v42  ;;  %v3733_v2 = vmul.f32 %v3399_v15, %v3399_v15  ;;  %v3661_v4 = vsel %vm8887_vm4, %v3660_v43, %v3659_v35 }
 0x3f3   :  { %v3690_v18 = vsel %vm8881_vm10, %v3689_v24, %v3688_v27  ;;  %v3824_v10 = vsel %vm8882_vm14, %v3823_v40, %v3822_v6  ;;  %v3795_v6 = vsel %vm8886_vm11, %v3794_v8, %v3793_v52 }
 0x3f4   :  { %v3320_v14 = vpop.xlane.xlu1 %3319  ;;  %v3691_v37 = vperm.slane %v3599_v17, %v8764_v34  ;;  %v3825_v63 = vperm.slane %v3733_v2, %v8764_v34  ;;  %v3928_v45 = vld.sshfl [vmem:[#allocation1 + $0x8] sm:$0xff pattern:$0x73625140] }
 0x3f5   :  { %v3384_v7 = vmul.f32 %v3320_v14, %v8759_v55  ;;  %v3932_v60 = vsel %vm8889_vm7, %v3928_v45, 0.0 }
 0x3f6   :  { %v3368_v22 = vpop.xlane.xlu0 %3367  ;;  %v3692_v62 = vsel %vm8885_vm5, %v3691_v37, %v3690_v18 }
 0x3f7   :  { %v3400_v31 = vmul.f32 %v3368_v22, %v8759_v55  ;;  %v3564_v46 = vpop.xlane.xlu2 %3563  ;;  %v3584_v56 = vmul.f32 %v3384_v7, %v8880_v0  ;;  %v3718_v9 = vmul.f32 %v3384_v7, %v3384_v7  ;;  %v3826_v55 = vsel %vm8884_vm3, %v3825_v63, %v3824_v10  ;;  %v3568_v63 = vld [vmem:[#allocation4] sm:$0x3] }
 0x3f8   :  { %v3565_v48 = vadd.f32 %v3564_v46, %v3401_v11 }
 0x3f9   :  { %v3600_v58 = vmul.f32 %v3400_v31, %v8883_v20  ;;  %v3734_v36 = vmul.f32 %v3400_v31, %v3400_v31  ;;  %v3662_v34 = vperm.slane %v3584_v56, %v8772_v44  ;;  %v3796_v54 = vperm.slane %v3718_v9, %v8772_v44 }
 0x3fa   :  { %3567 = vst.msk [vmem:[#allocation3] sm:$0x3] %vm42_vm13, %v3565_v48 }
 0x3fb   :  { %v3693_v13 = vperm.slane %v3600_v58, %v8772_v44  ;;  %v3827_v27 = vperm.slane %v3734_v36, %v8772_v44  ;;  %v3797_v3 = vsel %vm3527_vm1, %v3796_v54, %v3795_v6  ;;  %v3663_v30 = vsel %vm3527_vm1, %v3662_v34, %v3661_v4  ;;  %v3927_v44 = vld.sshfl [vmem:[#allocation1] sm:$0xff pattern:$0x73625140] }
 0x3fc   :  { %v3931_v23 = vsel %vm8888_vm8, %v3927_v44, 0.0 }
 0x3fd   :  { %v3828_v41 = vsel %vm3527_vm1, %v3827_v27, %v3826_v55  ;;  %v3694_v16 = vsel %vm3527_vm1, %v3693_v13, %v3692_v62  ;;  %v3933_v19 = vadd.f32 %v3932_v60, %v3931_v23 }
 0x3fe   :  { %v3829_v1 = vsel %vm318_vm12, %v3828_v41, %v3797_v3  ;;  %v3695_v25 = vsel %vm318_vm12, %v3694_v16, %v3663_v30 }
 0x3ff   :  { %v3831_v53 = vsel %vm8871_vm6, %v3829_v1, 0.0  ;;  %3934 = vadd.xlane.f32.xlu0 %v3933_v19  ;;  %v3697_v39 = vsel %vm8890_vm15, %v3695_v25, 0.0 }
 0x400   :  { %3832 = vadd.xlane.f32.xlu1 %v3831_v53 }
 0x401   :  { %v8060_v59 = vld [vmem:[#allocation3] sm:$0x3] }
 0x402   :  { %v4000_v38 = vmax.f32 %v8060_v59, 1e-24 }
 0x404   :  { %vm4007_vm3 = vweird.f32 %v4000_v38 }
 0x408   :  { %3698 = vadd.xlane.f32.xlu1 %v3697_v39 }
 0x443   :  { %v3907_v47 = vpop.xlane.xlu0 %3906 }
 0x444   :  { %v3953_v61 = vmax.f32 %v3907_v47, 1e-24 }
 0x446   :  { %4548 = vrsqrt.f32 %v3953_v61  ;;  %vm3960_vm1 = vweird.f32 %v3953_v61 }
 0x44c   :  { %v4549_v15 = vpop.eup %4548 }
 0x44d   :  { %v3955_v12 = vmul.f32 %v4549_v15, %v3953_v61  ;;  %vm3961_vm12 = vweird.f32 %v4549_v15 }
 0x44e   :  { %vm3962_vm0 = vmor %vm3960_vm1, %vm3961_vm12 }
 0x44f   :  { %v3956_v29 = vmul.f32 %v4549_v15, %v3955_v12 }
 0x451   :  { %v3957_v51 = vmul.f32 0.5, %v3956_v29 }
 0x453   :  { %v3958_v42 = vsub.f32 1.5, %v3957_v51 }
 0x455   :  { %v3959_v17 = vmul.f32 %v4549_v15, %v3958_v42 }
 0x457   :  { %v3963_v35 = vsel %vm3962_vm0, %v4549_v15, %v3959_v17 }
 0x458   :  { %v3975_v14 = vmul.f32 %v3963_v35, %v3907_v47 }
 0x45a   :  { %v3976_v8 = vmul.f32 %v3975_v14, %v3963_v35 }
 0x45d   :  { %v3952_v32 = vpop.xlane.xlu2 %3951 }
 0x45e   :  { %v3964_v57 = vmax.f32 %v3952_v32, 1e-24 }
 0x460   :  { %4550 = vrsqrt.f32 %v3964_v57  ;;  %vm3971_vm2 = vweird.f32 %v3964_v57 }
 0x461   :  { %4552 = vrsqrt.f32 %v4000_v38 }
 0x466   :  { %v4551_v2 = vpop.eup %4550 }
 0x467   :  { %v3966_v28 = vmul.f32 %v4551_v2, %v3964_v57  ;;  %v4553_v26 = vpop.eup %4552  ;;  %vm3972_vm9 = vweird.f32 %v4551_v2 }
 0x468   :  { %v4002_v5 = vmul.f32 %v4553_v26, %v4000_v38  ;;  %vm3973_vm10 = vmor %vm3971_vm2, %vm3972_vm9  ;;  %vm4008_vm14 = vweird.f32 %v4553_v26 }
 0x469   :  { %v3967_v24 = vmul.f32 %v4551_v2, %v3966_v28  ;;  %vm4009_vm5 = vmor %vm4007_vm3, %vm4008_vm14 }
 0x46a   :  { %v4003_v31 = vmul.f32 %v4553_v26, %v4002_v5 }
 0x46b   :  { %v3968_v50 = vmul.f32 0.5, %v3967_v24 }
 0x46c   :  { %v4004_v20 = vmul.f32 0.5, %v4003_v31 }
 0x46d   :  { %v3969_v22 = vsub.f32 1.5, %v3968_v50 }
 0x46e   :  { %v4005_v34 = vsub.f32 1.5, %v4004_v20 }
 0x46f   :  { %v3970_v7 = vmul.f32 %v4551_v2, %v3969_v22 }
 0x470   :  { %v4006_v55 = vmul.f32 %v4553_v26, %v4005_v34 }
 0x471   :  { %v3974_v46 = vsel %vm3973_vm10, %v4551_v2, %v3970_v7 }
 0x472   :  { %v3935_v11 = vpop.xlane.xlu0 %3934  ;;  %v3981_v0 = vmul.f32 %v3974_v46, %v3952_v32  ;;  %v4010_v6 = vsel %vm4009_vm5, %v4553_v26, %v4006_v55 }
 0x473   :  { %v3833_v21 = vpop.xlane.xlu1 %3832  ;;  %v3977_v37 = vmul.f32 2.0, %v3935_v11  ;;  %v4022_v41 = vmul.f32 %v4010_v6, %v8060_v59 }
 0x474   :  { %v3834_v40 = vadd.f32 %v3833_v21, %v3702_v33  ;;  %v3982_v18 = vmul.f32 %v3981_v0, %v3974_v46 }
 0x475   :  { %v3978_v43 = vmul.f32 %v3977_v37, %v3963_v35  ;;  %v4023_v53 = vmul.f32 %v4022_v41, %v4010_v6 }
 0x476   :  { %3835 = vst.msk [vmem:[#allocation5] sm:$0x3] %vm42_vm13, %v3834_v40 }
 0x477   :  { %v3979_v56 = vmul.f32 %v3978_v43, %v3974_v46 }
 0x479   :  { %v3980_v10 = vsub.f32 %v3976_v8, %v3979_v56 }
 0x47b   :  { %v3699_v49 = vpop.xlane.xlu1 %3698  ;;  %v3983_v58 = vadd.f32 %v3982_v18, %v3980_v10 }
 0x47c   :  { %v3700_v52 = vadd.f32 %v3699_v49, %v3568_v63 }
 0x47d   :  { %v3999_v9 = vld [vmem:[#allocation5] sm:$0x3]  ;;  %v3984_v36 = vsel %vm42_vm13, %v3983_v58, 0.0 }
 0x47e   :  { %3701 = vst.msk [vmem:[#allocation4] sm:$0x3] %vm42_vm13, %v3700_v52  ;;  %v4011_v48 = vmax.f32 %v3999_v9, 1e-24  ;;  %3985 = vadd.xlane.f32.xlu2 %v3984_v36 }
 0x480   :  { %4554 = vrsqrt.f32 %v4011_v48  ;;  %vm4018_vm4 = vweird.f32 %v4011_v48 }
 0x485   :  { %v3998_v13 = vld [vmem:[#allocation4] sm:$0x3] }
 0x486   :  { %v4555_v54 = vpop.eup %4554  ;;  %v4024_v3 = vmul.f32 2.0, %v3998_v13 }
 0x487   :  { %v4013_v62 = vmul.f32 %v4555_v54, %v4011_v48  ;;  %vm4019_vm11 = vweird.f32 %v4555_v54 }
 0x488   :  { %vm4020_vm6 = vmor %vm4018_vm4, %vm4019_vm11  ;;  %v4025_v1 = vmul.f32 %v4024_v3, %v4010_v6 }
 0x489   :  { %v4014_v27 = vmul.f32 %v4555_v54, %v4013_v62 }
 0x48b   :  { %v4015_v4 = vmul.f32 0.5, %v4014_v27 }
 0x48d   :  { %v4016_v30 = vsub.f32 1.5, %v4015_v4 }
 0x48f   :  { %v4017_v16 = vmul.f32 %v4555_v54, %v4016_v30 }
 0x491   :  { %v4021_v25 = vsel %vm4020_vm6, %v4555_v54, %v4017_v16 }
 0x492   :  { %v4026_v44 = vmul.f32 %v4025_v1, %v4021_v25  ;;  %v4028_v45 = vmul.f32 %v4021_v25, %v3999_v9 }
 0x494   :  { %v4027_v23 = vsub.f32 %v4023_v53, %v4026_v44  ;;  %v4029_v60 = vmul.f32 %v4028_v45, %v4021_v25 }
 0x496   :  { %v4030_v19 = vadd.f32 %v4029_v60, %v4027_v23 }
 0x498   :  { %v4031_v39 = vsel %vm42_vm13, %v4030_v19, 0.0 }
 0x499   :  { %4032 = vadd.xlane.f32.xlu1 %v4031_v39 }
 0x4f1   :  { %v3986_v47 = vpop.xlane.xlu2 %3985 }
 0x4f2   :  { %v3987_v61 = vrot.slane %v3986_v47, 4 }
 0x4f4   :  { %v3988_v15 = vadd.f32 %v3987_v61, %v3986_v47 }
 0x4f6   :  { %v3989_v12 = vrot.slane %v3988_v15, 2 }
 0x4f8   :  { %v3990_v59 = vadd.f32 %v3989_v12, %v3988_v15 }
 0x4fa   :  { %v3991_v29 = vrot.slane %v3990_v59, 1 }
 0x4fc   :  { %v3992_v32 = vadd.f32 %v3991_v29, %v3990_v59 }
 0x4fe   :  { %4232 = vpush %v3992_v32 }
 0x50c   :  { %v4033_v57 = vpop.xlane.xlu1 %4032 }
 0x50d   :  { %v4034_v51 = vrot.slane %v4033_v57, 4 }
 0x50f   :  { %v4035_v38 = vadd.f32 %v4034_v51, %v4033_v57 }
 0x511   :  { %v4036_v42 = vrot.slane %v4035_v38, 2 }
 0x513   :  { %v4037_v17 = vadd.f32 %v4036_v42, %v4035_v38 }
 0x515   :  { %v4038_v2 = vrot.slane %v4037_v17, 1 }
 0x517   :  { %v4039_v33 = vadd.f32 %v4038_v2, %v4037_v17 }
 0x519   :  { %4234 = vpush %v4039_v33 }
 0x52f   :  { %s4233_s5 = spop %4232 }
 0x530   :  { %s3994_s11 = smul.f32 0.001953125, %s4233_s5 }
 0x532   :  { %3996 = sst [smem:[#allocation11]] %s3994_s11 }
 0x54a   :  { %s4235_s13 = spop %4234 }
 0x54b   :  { %s4041_s14 = smul.f32 0.00390625, %s4235_s13 }
 0x54d   :  { %4043 = sst [smem:[#allocation11 + $0x1]] %s4041_s14 }
 0x54e   :  { %4052 = dma.smem_to_hbm %s4640_s15, 16, %s4050_s12, [#allocation10]  }
 0x54f   :  { %4625 = dma.done.wait [#allocation10], 16  }
 0x550   :  { %4626 = vsyncadd [#allocation10], 4294967280 }
 0x551   :  { %4627 = dma.done.wait [#allocation9], 8192  }
 0x552   :  { %4628 = vsyncadd [#allocation9], 4294959104 }
 0x553   :  { %4074 = sfence }
 0x554   :  { %4075 = vsyncpa [#allocation8], 1 }
 0x555   :  { %4076 = vsyncpa [#allocation9], 1 }
 0x556   :  { %4077 = vsyncpa [#allocation10], 1 }

</bundles_post_ra>
